<compile_context>
chip_gen: v6e
topology: v6e:2x2x1
jax: 0.10.0
libtpu: 0.0.40
codegen_flags: <defaults>
</compile_context>

<pallas_src>
import functools
import numpy as np
import jax
import jax.numpy as jnp
from jax.experimental import pallas as pl
from jax.experimental.pallas import tpu as pltpu

_LOG2PI = float(np.log(2.0 * np.pi))

# MXU inputs in bf16 (f32 accumulate).  Set to jnp.float32 for exact f32 matmuls.
MXU_DTYPE = jnp.bfloat16


def _mdot(a, b):
    return jnp.dot(a.astype(MXU_DTYPE), b.astype(MXU_DTYPE),
                   preferred_element_type=jnp.float32)


# ----------------------------------------------------------------------------
# Fused per-Block Pallas kernel: K flow steps + prior + logp/logdet epilogue
# ----------------------------------------------------------------------------
def _block_kernel(x_ref, c1_ref, vec_ref, wt_ref, w1a_ref, w2_ref, w3_ref,
                  *rest, split, V, T, CH, H, K):
    if split:
        mask_ref, wp_ref, pvec_ref, z_ref, ldlp_ref = rest
    else:
        pvec_ref, z_ref, ldlp_ref = rest

    S = V * T
    half = CH // 2

    x_full = x_ref[...]                            # (S, CH) f32, one sample
    ld_rows = jnp.zeros((S, 1), jnp.float32)

    # ----------------- K FlowSteps, activations stay in VMEM/vregs -----------
    for k in range(K):
        vecv = vec_ref[k]                          # (1, 3*CH+H): [bias|exp_logs|b3|b2]
        bias = vecv[:, 0:CH]
        el = vecv[:, CH:2 * CH]
        b3 = vecv[:, 2 * CH:3 * CH]
        b2 = vecv[:, 3 * CH:]

        # ActNorm: (x + bias) * exp(logs)  (exp precomputed in glue)
        h = (x_full + bias) * el
        # Invertible 1x1 conv: single full-width MXU push  y = h @ W^T
        y = _mdot(h, wt_ref[k])
        ya = y[:, :half]
        yb = y[:, half:]

        # Affine coupling net (cond @ w1c + b1 precomputed in glue -> c1_ref)
        h1 = jnp.maximum(_mdot(ya, w1a_ref[k]) + c1_ref[k], 0.0)
        h2 = jnp.maximum(_mdot(h1, w2_ref[k]) + b2, 0.0)
        h3 = _mdot(h2, w3_ref[k]) + b3

        shift = h3[:, :half]
        t = h3[:, half:] + 2.0
        # numerically-stable log-sigmoid / sigmoid: one EUP exp + one log +
        # one (nearly free) approx reciprocal
        e = jnp.exp(-jnp.abs(t))                   # in (0, 1], never overflows
        log_scale = jnp.minimum(t, 0.0) - jnp.log(1.0 + e)
        inv = pl.reciprocal(1.0 + e, approx=True)
        scale = jnp.where(t >= 0, inv, e * inv)    # == sigmoid(t)

        xb = (yb + shift) * scale
        ld_rows = ld_rows + jnp.sum(log_scale, axis=-1, keepdims=True)
        x_full = jnp.concatenate([ya, xb], axis=1)

    # single full-width store of z (no half-channel masked stores)
    z_ref[...] = x_full
    xa = x_full[:, :half]
    xb = x_full[:, half:]

    # ----------------- prior + Gaussian log-likelihood -----------------------
    if split:
        # 3x3 'same' conv over (V, T) on the pass-through half: 9 sublane rolls
        # (XLU) + per-row validity masks, lane-stacked -> ONE (S,9*half)@(9*half,CH)
        # MXU push (replaces the old (rows,rows) permutation matmuls).
        taps = []
        for dv in range(3):
            for dt in range(3):
                tap = dv * 3 + dt
                d = (dv - 1) * T + (dt - 1)
                if d == 0:
                    taps.append(xa)                # center tap: always valid
                else:
                    rolled = pltpu.roll(xa, shift=(-d) % S, axis=0)
                    taps.append(rolled * mask_ref[:, tap:tap + 1])
        stacked = jnp.concatenate(taps, axis=1)    # (S, 9*half)
        acc = _mdot(stacked, wp_ref[...])          # (S, CH)
        pscale = pvec_ref[:, :CH]                  # exp(3*logs)
        pbs = pvec_ref[:, CH:]                     # bias * exp(3*logs)
        hh = acc * pscale + pbs                    # Conv2dZeros output
        mean = hh[:, :half]
        logsd = hh[:, half:]
        diff = xb - mean
        like = -0.5 * (_LOG2PI - logsd + diff * diff) * jnp.exp(-2.0 * logsd)
        lp_rows = jnp.sum(like, axis=-1, keepdims=True)
    else:
        # prior(zeros): mean/logsd are per-channel constants (from glue)
        mean = pvec_ref[:, :CH]
        logsd = pvec_ref[:, CH:]
        diff = x_full - mean
        like = -0.5 * (_LOG2PI - logsd + diff * diff) * jnp.exp(-2.0 * logsd)
        lp_rows = jnp.sum(like, axis=-1, keepdims=True)

    # ----------------- per-sample epilogue: one (8,128) tile write -----------
    lane = jax.lax.broadcasted_iota(jnp.int32, (8, 128), 1)
    ld_s = jnp.sum(ld_rows)
    lp_s = jnp.sum(lp_rows)
    ldlp_ref[0] = (jnp.where(lane == 0, ld_s, 0.0)
                   + jnp.where(lane == 1, lp_s, 0.0))


# ----------------------------------------------------------------------------
# Glow structure (plain-JAX glue around the fused per-Block kernel)
# ----------------------------------------------------------------------------
def _squeeze_time(x):
    N, C, V, T = x.shape
    return (x.reshape(N, C, V, T // 2, 2)
             .transpose(0, 1, 4, 2, 3)
             .reshape(N, 2 * C, V, T // 2))


def multi_scales(cond, L):
    # TODO(synk): multi_scales source unavailable; repeated time-squeeze stand-in.
    conds = []
    c = cond
    for _ in range(L):
        c = _squeeze_time(c)
        conds.append(c)
    return conds


def _to_rows(x):
    """(N, C, V, T) -> (N*V*T, C): batch folded into the row axis."""
    N, C, V, T = x.shape
    return x.reshape(N, C, V * T).transpose(0, 2, 1).reshape(N * V * T, C)


def _from_rows(z2, N, C, V, T):
    return z2.reshape(N, V * T, C).transpose(0, 2, 1).reshape(N, C, V, T)


def _conv_masks(V, T):
    """(V*T, 9) validity mask for the 9 taps of a 3x3 'same' conv over (V,T)."""
    s = np.arange(V * T)
    v = s // T
    t = s % T
    m = np.zeros((V * T, 9), np.float32)
    for dv in range(3):
        for dt in range(3):
            ok = ((v + dv - 1 >= 0) & (v + dv - 1 < V)
                  & (t + dt - 1 >= 0) & (t + dt - 1 < T))
            m[:, dv * 3 + dt] = ok.astype(np.float32)
    return jnp.asarray(m)


def block_forward(x, cond, bp, split, logdet):
    N, C0, V, T0 = x.shape
    x = _squeeze_time(x)                           # (N, CH, V, T)
    CH = 2 * C0
    T = T0 // 2
    S = V * T
    half = CH // 2
    flows = bp['flows']
    K = len(flows)
    H = flows[0]['w2'].shape[0]

    # single layout change per Block (not per flow step)
    x2 = _to_rows(x)                               # (N*S, CH)
    c2 = _to_rows(cond)                            # (N*S, Cc)

    # ---- pack per-step params into a handful of stacked operands ------------
    vec_all = jnp.stack([
        jnp.concatenate([fp['bias'], jnp.exp(fp['logs']), fp['b3'], fp['b2']],
                        axis=1) for fp in flows], axis=0)            # (K,1,3CH+H)
    wt_all = jnp.stack([fp['w_t'] for fp in flows]).astype(MXU_DTYPE)   # (K,CH,CH)
    w1a_all = jnp.stack([fp['w1a'] for fp in flows]).astype(MXU_DTYPE)  # (K,half,H)
    w2_all = jnp.stack([fp['w2'] for fp in flows]).astype(MXU_DTYPE)    # (K,H,H)
    w3_all = jnp.stack([fp['w3'] for fp in flows]).astype(MXU_DTYPE)    # (K,H,CH)

    # cond contribution of coupling layer 1 for all K steps: one XLA einsum,
    # off the kernel's serial per-step critical path.
    w1c_all = jnp.stack([fp['w1c'] for fp in flows])                 # (K,Cc,H)
    b1_all = jnp.stack([fp['b1'] for fp in flows])                   # (K,1,H)
    c1_all = jnp.einsum('rc,kch->krh', c2, w1c_all) + b1_all         # (K,N*S,H)

    # actnorm + invconv logdet terms: data-independent, S * sum(.)
    dlog = 0.0
    for fp in flows:
        dlog = dlog + jnp.sum(fp['logs']) + jnp.sum(fp['log_s'])

    if split:
        pscale = jnp.exp(bp['prior_logs'] * 3.0)                     # (1, CH)
        pvec = jnp.concatenate([pscale, bp['prior_b'] * pscale], axis=1)
        prior_ops = (_conv_masks(V, T),
                     bp['prior_w'].astype(MXU_DTYPE),                # (9*half, CH)
                     pvec)                                           # (1, 2*CH)
        prior_specs = [
            pl.BlockSpec((S, 9), lambda n: (0, 0)),
            pl.BlockSpec((9 * half, CH), lambda n: (0, 0)),
            pl.BlockSpec((1, 2 * CH), lambda n: (0, 0)),
        ]
    else:
        # prior input is all zeros -> conv contributes nothing; mean/logsd are
        # the (bias * exp(3*logs)) per-channel constants.
        pvec = bp['prior_b'] * jnp.exp(bp['prior_logs'] * 3.0)       # (1, 2*CH)
        prior_ops = (pvec,)
        prior_specs = [pl.BlockSpec((1, 2 * CH), lambda n: (0, 0))]

    kernel = functools.partial(_block_kernel, split=split,
                               V=V, T=T, CH=CH, H=H, K=K)

    z2, ldlp = pl.pallas_call(
        kernel,
        out_shape=(jax.ShapeDtypeStruct((N * S, CH), jnp.float32),
                   jax.ShapeDtypeStruct((N, 8, 128), jnp.float32)),
        grid=(N,),
        in_specs=[
            pl.BlockSpec((S, CH), lambda n: (n, 0)),                 # x2 / sample
            pl.BlockSpec((K, S, H), lambda n: (0, n, 0)),            # c1 / sample
            pl.BlockSpec((K, 1, 3 * CH + H), lambda n: (0, 0, 0)),   # vec table
            pl.BlockSpec((K, CH, CH), lambda n: (0, 0, 0)),          # w_t stack
            pl.BlockSpec((K, half, H), lambda n: (0, 0, 0)),         # w1a stack
            pl.BlockSpec((K, H, H), lambda n: (0, 0, 0)),            # w2 stack
            pl.BlockSpec((K, H, CH), lambda n: (0, 0, 0)),           # w3 stack
        ] + prior_specs,
        out_specs=(pl.BlockSpec((S, CH), lambda n: (n, 0)),
                   pl.BlockSpec((1, 8, 128), lambda n: (n, 0, 0))),
        compiler_params=pltpu.CompilerParams(
            dimension_semantics=("parallel",)),
    )(x2, c1_all, vec_all, wt_all, w1a_all, w2_all, w3_all, *prior_ops)

    ld = ldlp[:, 0, 0]
    lp = ldlp[:, 0, 1]
    logdet = logdet + float(S) * dlog + ld
    logp = lp

    z_nchw = _from_rows(z2, N, CH, V, T)
    if split:
        out = z_nchw[:, :C0]
        zkeep = z_nchw[:, C0:]
    else:
        out = z_nchw
        zkeep = z_nchw
    return logdet, logp, out, zkeep


def glow_forward(x, cond, params, *, L, in_channels, joints, length):
    N = x.shape[0]
    conds = multi_scales(cond, L)
    zs = []
    logp_sum = jnp.zeros((N,), jnp.float32)
    logdet_sum = jnp.zeros((N,), jnp.float32)
    logdet = jnp.zeros((N,), jnp.float32)   # TODO(synk): reference passes logdet=None
    for i in range(L):
        split = i < L - 1
        logdet, logp, x, z = block_forward(x, conds[i], params[i], split, logdet)
        zs.append(z)
        logdet_sum = logdet_sum + logdet     # cumulative, matching the reference
        logp_sum = logp_sum + logp
    logdet_factor = in_channels * joints * length
    nll = -(logdet + logp_sum) / float(np.log(2.0) * logdet_factor)
    glow_loss = jnp.mean(nll)
    return logp_sum, logdet_sum, zs, glow_loss


# ----------------------------------------------------------------------------
# Deterministic parameter initialization (shapes per the module __init__)
# ----------------------------------------------------------------------------
def init_glow_params(key, *, in_channels, cond_channels, hidden, L, K):
    C = in_channels
    CH = 2 * C
    H = hidden
    blocks = []
    for i in range(L):
        cc_i = cond_channels * (2 ** (i + 1))
        flows = []
        for _ in range(K):
            key, k0, k1, k2, k3, k4, k5, k6 = jax.random.split(key, 8)
            bias = 0.05 * jax.random.normal(k0, (1, CH), jnp.float32)
            logs = 0.05 * jax.random.normal(k1, (1, CH), jnp.float32)
            # Invertible 1x1 conv, LU-decomposed (as in InvertibleConv1x1 init)
            w0 = jax.random.normal(k2, (CH, CH), jnp.float32)
            q, _ = jnp.linalg.qr(w0)
            p_mat, l_mat, u_mat = jax.scipy.linalg.lu(q)
            s_diag = jnp.diag(u_mat)
            sign_s = jnp.sign(s_diag)
            log_s = jnp.log(jnp.abs(s_diag))
            w = p_mat @ l_mat @ (jnp.triu(u_mat, 1) + jnp.diag(sign_s * jnp.exp(log_s)))
            # coupling net (MLP stand-in, small random instead of zero-init so
            # the kernel compute path is exercised)
            w1a = 0.05 * jax.random.normal(k3, (C, H), jnp.float32)
            w1c = 0.05 * jax.random.normal(k4, (cc_i, H), jnp.float32)
            w2 = 0.05 * jax.random.normal(k5, (H, H), jnp.float32)
            w3 = 0.05 * jax.random.normal(k6, (H, CH), jnp.float32)
            flows.append(dict(
                bias=bias, logs=logs, w_t=w.T, log_s=log_s,
                w1a=w1a, w1c=w1c, b1=jnp.zeros((1, H), jnp.float32),
                w2=w2, b2=jnp.zeros((1, H), jnp.float32),
                w3=w3, b3=jnp.zeros((1, CH), jnp.float32)))
        split = i < L - 1
        cin_p = C if split else CH
        cout_p = 2 * C if split else 2 * CH
        key, kp, kb, kl = jax.random.split(key, 4)
        wp = 0.05 * jax.random.normal(kp, (cout_p, cin_p, 3, 3), jnp.float32)
        # (Cout, Cin, 3, 3) -> (9*Cin, Cout); tap-major (dv, dt) then cin order,
        # matching the in-kernel 9-tap stacked conv.
        wp_mat = wp.transpose(2, 3, 1, 0).reshape(9 * cin_p, cout_p)
        blocks.append(dict(
            flows=flows,
            prior_w=wp_mat,
            prior_b=0.05 * jax.random.normal(kb, (1, cout_p), jnp.float32),
            prior_logs=0.05 * jax.random.normal(kl, (1, cout_p), jnp.float32)))
    return blocks


# ----------------------------------------------------------------------------
if __name__ == "__main__":
    # cfg.Glow: in_channels=4, joints(V)=8, length(T)=16, L=2, K=2, hidden=32
    IN_CHANNELS = 4
    COND_CHANNELS = 4
    JOINTS = 8
    LENGTH = 16
    L = 2
    K = 2
    HIDDEN = 32
    N = 2

    key = jax.random.PRNGKey(0)
    kx, kc, kp = jax.random.split(key, 3)
    x = jax.random.normal(kx, (N, IN_CHANNELS, JOINTS, LENGTH), jnp.float32)
    cond = jax.random.normal(kc, (N, COND_CHANNELS, JOINTS, LENGTH), jnp.float32)
    params = init_glow_params(kp, in_channels=IN_CHANNELS,
                              cond_channels=COND_CHANNELS, hidden=HIDDEN,
                              L=L, K=K)

    fwd = jax.jit(functools.partial(glow_forward, L=L, in_channels=IN_CHANNELS,
                                    joints=JOINTS, length=LENGTH))
    logp_sum, logdet_sum, zs, glow_loss = fwd(x, cond, params)
    jax.block_until_ready((logp_sum, logdet_sum, zs, glow_loss))

    assert logp_sum.shape == (N,) and logdet_sum.shape == (N,)
    assert zs[0].shape == (N, IN_CHANNELS, JOINTS, LENGTH // 2)
    assert zs[1].shape == (N, 2 * IN_CHANNELS, JOINTS, LENGTH // 4)
    assert np.isfinite(float(glow_loss))
    print("KERNEL_OK")
</pallas_src>

<mosaic_0001>
module attributes {stable_mosaic.version = 11 : i64} {
  func.func @_block_kernel(%arg0: i32, %arg1: memref<64x8xf32, #tpu.memory_space<vmem>>, %arg2: memref<2x64x32xf32, #tpu.memory_space<vmem>>, %arg3: memref<2x1x56xf32, #tpu.memory_space<vmem>>, %arg4: memref<2x8x8xbf16, #tpu.memory_space<vmem>>, %arg5: memref<2x4x32xbf16, #tpu.memory_space<vmem>>, %arg6: memref<2x32x32xbf16, #tpu.memory_space<vmem>>, %arg7: memref<2x32x8xbf16, #tpu.memory_space<vmem>>, %arg8: memref<64x9xf32, #tpu.memory_space<vmem>>, %arg9: memref<36x8xbf16, #tpu.memory_space<vmem>>, %arg10: memref<1x16xf32, #tpu.memory_space<vmem>>, %arg11: memref<64x8xf32, #tpu.memory_space<vmem>>, %arg12: memref<1x8x128xf32, #tpu.memory_space<vmem>>) attributes {dimension_semantics = [#tpu.dimension_semantics<parallel>], iteration_bounds = array<i64: 2>, scalar_prefetch = 0 : i64, scratch_operands = 0 : i64, tpu.core_type = #tpu.core_type<tc>, window_params = [{transform_indices = @transform_0, window_bounds = array<i64: 64, 8>}, {transform_indices = @transform_1, window_bounds = array<i64: 2, 64, 32>}, {pipeline_mode = #tpu.pipeline_mode<synchronous>, transform_indices = @transform_2, window_bounds = array<i64: 2, 1, 56>}, {pipeline_mode = #tpu.pipeline_mode<synchronous>, transform_indices = @transform_3, window_bounds = array<i64: 2, 8, 8>}, {pipeline_mode = #tpu.pipeline_mode<synchronous>, transform_indices = @transform_4, window_bounds = array<i64: 2, 4, 32>}, {pipeline_mode = #tpu.pipeline_mode<synchronous>, transform_indices = @transform_5, window_bounds = array<i64: 2, 32, 32>}, {pipeline_mode = #tpu.pipeline_mode<synchronous>, transform_indices = @transform_6, window_bounds = array<i64: 2, 32, 8>}, {pipeline_mode = #tpu.pipeline_mode<synchronous>, transform_indices = @transform_7, window_bounds = array<i64: 64, 9>}, {pipeline_mode = #tpu.pipeline_mode<synchronous>, transform_indices = @transform_8, window_bounds = array<i64: 36, 8>}, {pipeline_mode = #tpu.pipeline_mode<synchronous>, transform_indices = @transform_9, window_bounds = array<i64: 1, 16>}, {transform_indices = @transform_10, window_bounds = array<i64: 64, 8>}, {transform_indices = @transform_11, window_bounds = array<i64: 1, 8, 128>}]} {
    %c0 = arith.constant 0 : index
    %c0_0 = arith.constant 0 : index
    %0 = vector.load %arg1[%c0, %c0_0] : memref<64x8xf32, #tpu.memory_space<vmem>>, vector<64x8xf32>
    %cst = arith.constant 0.000000e+00 : f32
    %1 = vector.broadcast %cst : f32 to vector<64x1xf32>
    %c0_1 = arith.constant 0 : index
    %c0_2 = arith.constant 0 : index
    %c0_3 = arith.constant 0 : index
    %2 = vector.load %arg3[%c0_1, %c0_2, %c0_3] : memref<2x1x56xf32, #tpu.memory_space<vmem>>, vector<1x1x56xf32>
    %3 = vector.shape_cast %2 : vector<1x1x56xf32> to vector<1x56xf32>
    %4 = vector.extract_strided_slice %3 {offsets = [0, 0], sizes = [1, 8], strides = [1, 1]} : vector<1x56xf32> to vector<1x8xf32>
    %5 = vector.extract_strided_slice %3 {offsets = [0, 8], sizes = [1, 8], strides = [1, 1]} : vector<1x56xf32> to vector<1x8xf32>
    %6 = vector.extract_strided_slice %3 {offsets = [0, 16], sizes = [1, 8], strides = [1, 1]} : vector<1x56xf32> to vector<1x8xf32>
    %7 = vector.extract_strided_slice %3 {offsets = [0, 24], sizes = [1, 32], strides = [1, 1]} : vector<1x56xf32> to vector<1x32xf32>
    %8 = vector.broadcast %4 : vector<1x8xf32> to vector<64x8xf32>
    %9 = arith.addf %0, %8 : vector<64x8xf32>
    %10 = vector.broadcast %5 : vector<1x8xf32> to vector<64x8xf32>
    %11 = arith.mulf %9, %10 : vector<64x8xf32>
    %c0_4 = arith.constant 0 : index
    %c0_5 = arith.constant 0 : index
    %c0_6 = arith.constant 0 : index
    %12 = vector.load %arg4[%c0_4, %c0_5, %c0_6] : memref<2x8x8xbf16, #tpu.memory_space<vmem>>, vector<1x8x8xbf16>
    %13 = vector.shape_cast %12 : vector<1x8x8xbf16> to vector<8x8xbf16>
    %14 = arith.truncf %11 : vector<64x8xf32> to vector<64x8xbf16>
    %cst_7 = arith.constant dense<0.000000e+00> : vector<64x8xf32>
    %15 = tpu.matmul %14, %13, %cst_7 {dimension_numbers = #tpu.dot_dimension_numbers<[1], [0], [0], [1], [0, 0, 1, 1], [], []>} : vector<64x8xbf16>, vector<8x8xbf16>, vector<64x8xf32> -> vector<64x8xf32>
    %16 = vector.extract_strided_slice %15 {offsets = [0, 0], sizes = [64, 4], strides = [1, 1]} : vector<64x8xf32> to vector<64x4xf32>
    %17 = vector.extract_strided_slice %15 {offsets = [0, 4], sizes = [64, 4], strides = [1, 1]} : vector<64x8xf32> to vector<64x4xf32>
    %c0_8 = arith.constant 0 : index
    %c0_9 = arith.constant 0 : index
    %c0_10 = arith.constant 0 : index
    %18 = vector.load %arg5[%c0_8, %c0_9, %c0_10] : memref<2x4x32xbf16, #tpu.memory_space<vmem>>, vector<1x4x32xbf16>
    %19 = vector.shape_cast %18 : vector<1x4x32xbf16> to vector<4x32xbf16>
    %20 = arith.truncf %16 : vector<64x4xf32> to vector<64x4xbf16>
    %cst_11 = arith.constant dense<0.000000e+00> : vector<64x32xf32>
    %21 = tpu.matmul %20, %19, %cst_11 {dimension_numbers = #tpu.dot_dimension_numbers<[1], [0], [0], [1], [0, 0, 1, 1], [], []>} : vector<64x4xbf16>, vector<4x32xbf16>, vector<64x32xf32> -> vector<64x32xf32>
    %c0_12 = arith.constant 0 : index
    %c0_13 = arith.constant 0 : index
    %c0_14 = arith.constant 0 : index
    %22 = vector.load %arg2[%c0_12, %c0_13, %c0_14] : memref<2x64x32xf32, #tpu.memory_space<vmem>>, vector<1x64x32xf32>
    %23 = vector.shape_cast %22 : vector<1x64x32xf32> to vector<64x32xf32>
    %24 = arith.addf %21, %23 : vector<64x32xf32>
    %cst_15 = arith.constant 0.000000e+00 : f32
    %25 = vector.broadcast %cst_15 : f32 to vector<64x32xf32>
    %26 = arith.maximumf %24, %25 : vector<64x32xf32>
    %c0_16 = arith.constant 0 : index
    %c0_17 = arith.constant 0 : index
    %c0_18 = arith.constant 0 : index
    %27 = vector.load %arg6[%c0_16, %c0_17, %c0_18] : memref<2x32x32xbf16, #tpu.memory_space<vmem>>, vector<1x32x32xbf16>
    %28 = vector.shape_cast %27 : vector<1x32x32xbf16> to vector<32x32xbf16>
    %29 = arith.truncf %26 : vector<64x32xf32> to vector<64x32xbf16>
    %cst_19 = arith.constant dense<0.000000e+00> : vector<64x32xf32>
    %30 = tpu.matmul %29, %28, %cst_19 {dimension_numbers = #tpu.dot_dimension_numbers<[1], [0], [0], [1], [0, 0, 1, 1], [], []>} : vector<64x32xbf16>, vector<32x32xbf16>, vector<64x32xf32> -> vector<64x32xf32>
    %31 = vector.broadcast %7 : vector<1x32xf32> to vector<64x32xf32>
    %32 = arith.addf %30, %31 : vector<64x32xf32>
    %cst_20 = arith.constant 0.000000e+00 : f32
    %33 = vector.broadcast %cst_20 : f32 to vector<64x32xf32>
    %34 = arith.maximumf %32, %33 : vector<64x32xf32>
    %c0_21 = arith.constant 0 : index
    %c0_22 = arith.constant 0 : index
    %c0_23 = arith.constant 0 : index
    %35 = vector.load %arg7[%c0_21, %c0_22, %c0_23] : memref<2x32x8xbf16, #tpu.memory_space<vmem>>, vector<1x32x8xbf16>
    %36 = vector.shape_cast %35 : vector<1x32x8xbf16> to vector<32x8xbf16>
    %37 = arith.truncf %34 : vector<64x32xf32> to vector<64x32xbf16>
    %cst_24 = arith.constant dense<0.000000e+00> : vector<64x8xf32>
    %38 = tpu.matmul %37, %36, %cst_24 {dimension_numbers = #tpu.dot_dimension_numbers<[1], [0], [0], [1], [0, 0, 1, 1], [], []>} : vector<64x32xbf16>, vector<32x8xbf16>, vector<64x8xf32> -> vector<64x8xf32>
    %39 = vector.broadcast %6 : vector<1x8xf32> to vector<64x8xf32>
    %40 = arith.addf %38, %39 : vector<64x8xf32>
    %41 = vector.extract_strided_slice %40 {offsets = [0, 0], sizes = [64, 4], strides = [1, 1]} : vector<64x8xf32> to vector<64x4xf32>
    %42 = vector.extract_strided_slice %40 {offsets = [0, 4], sizes = [64, 4], strides = [1, 1]} : vector<64x8xf32> to vector<64x4xf32>
    %cst_25 = arith.constant 2.000000e+00 : f32
    %43 = vector.broadcast %cst_25 : f32 to vector<64x4xf32>
    %44 = arith.addf %42, %43 : vector<64x4xf32>
    %45 = math.absf %44 : vector<64x4xf32>
    %cst_26 = arith.constant 0.000000e+00 : f32
    %46 = vector.broadcast %cst_26 : f32 to vector<64x4xf32>
    %47 = arith.subf %46, %45 : vector<64x4xf32>
    %48 = math.exp %47 : vector<64x4xf32>
    %cst_27 = arith.constant 0.000000e+00 : f32
    %49 = vector.broadcast %cst_27 : f32 to vector<64x4xf32>
    %50 = arith.minimumf %44, %49 : vector<64x4xf32>
    %cst_28 = arith.constant 1.000000e+00 : f32
    %51 = vector.broadcast %cst_28 : f32 to vector<64x4xf32>
    %52 = arith.addf %51, %48 : vector<64x4xf32>
    %53 = math.log %52 : vector<64x4xf32>
    %54 = arith.subf %50, %53 : vector<64x4xf32>
    %cst_29 = arith.constant 1.000000e+00 : f32
    %55 = vector.broadcast %cst_29 : f32 to vector<64x4xf32>
    %56 = arith.addf %55, %48 : vector<64x4xf32>
    %57 = tpu.reciprocal %56 {approx = true} : vector<64x4xf32> -> vector<64x4xf32>
    %cst_30 = arith.constant 0.000000e+00 : f32
    %58 = vector.broadcast %cst_30 : f32 to vector<64x4xf32>
    %59 = arith.cmpf oge, %44, %58 : vector<64x4xf32>
    %60 = arith.mulf %48, %57 : vector<64x4xf32>
    %61 = arith.select %59, %57, %60 : vector<64x4xi1>, vector<64x4xf32>
    %62 = arith.addf %17, %41 : vector<64x4xf32>
    %63 = arith.mulf %62, %61 : vector<64x4xf32>
    %cst_31 = arith.constant dense<0.000000e+00> : vector<64xf32>
    %64 = vector.multi_reduction <add>, %54, %cst_31 [1] : vector<64x4xf32> to vector<64xf32>
    %65 = vector.shape_cast %64 : vector<64xf32> to vector<64x1xf32>
    %66 = arith.addf %1, %65 : vector<64x1xf32>
    %67 = tpu.concatenate %16, %63 in 1 : vector<64x4xf32>, vector<64x4xf32> -> vector<64x8xf32>
    %c1 = arith.constant 1 : index
    %c0_32 = arith.constant 0 : index
    %c0_33 = arith.constant 0 : index
    %68 = vector.load %arg3[%c1, %c0_32, %c0_33] : memref<2x1x56xf32, #tpu.memory_space<vmem>>, vector<1x1x56xf32>
    %69 = vector.shape_cast %68 : vector<1x1x56xf32> to vector<1x56xf32>
    %70 = vector.extract_strided_slice %69 {offsets = [0, 0], sizes = [1, 8], strides = [1, 1]} : vector<1x56xf32> to vector<1x8xf32>
    %71 = vector.extract_strided_slice %69 {offsets = [0, 8], sizes = [1, 8], strides = [1, 1]} : vector<1x56xf32> to vector<1x8xf32>
    %72 = vector.extract_strided_slice %69 {offsets = [0, 16], sizes = [1, 8], strides = [1, 1]} : vector<1x56xf32> to vector<1x8xf32>
    %73 = vector.extract_strided_slice %69 {offsets = [0, 24], sizes = [1, 32], strides = [1, 1]} : vector<1x56xf32> to vector<1x32xf32>
    %74 = vector.broadcast %70 : vector<1x8xf32> to vector<64x8xf32>
    %75 = arith.addf %67, %74 : vector<64x8xf32>
    %76 = vector.broadcast %71 : vector<1x8xf32> to vector<64x8xf32>
    %77 = arith.mulf %75, %76 : vector<64x8xf32>
    %c1_34 = arith.constant 1 : index
    %c0_35 = arith.constant 0 : index
    %c0_36 = arith.constant 0 : index
    %78 = vector.load %arg4[%c1_34, %c0_35, %c0_36] : memref<2x8x8xbf16, #tpu.memory_space<vmem>>, vector<1x8x8xbf16>
    %79 = vector.shape_cast %78 : vector<1x8x8xbf16> to vector<8x8xbf16>
    %80 = arith.truncf %77 : vector<64x8xf32> to vector<64x8xbf16>
    %cst_37 = arith.constant dense<0.000000e+00> : vector<64x8xf32>
    %81 = tpu.matmul %80, %79, %cst_37 {dimension_numbers = #tpu.dot_dimension_numbers<[1], [0], [0], [1], [0, 0, 1, 1], [], []>} : vector<64x8xbf16>, vector<8x8xbf16>, vector<64x8xf32> -> vector<64x8xf32>
    %82 = vector.extract_strided_slice %81 {offsets = [0, 0], sizes = [64, 4], strides = [1, 1]} : vector<64x8xf32> to vector<64x4xf32>
    %83 = vector.extract_strided_slice %81 {offsets = [0, 4], sizes = [64, 4], strides = [1, 1]} : vector<64x8xf32> to vector<64x4xf32>
    %c1_38 = arith.constant 1 : index
    %c0_39 = arith.constant 0 : index
    %c0_40 = arith.constant 0 : index
    %84 = vector.load %arg5[%c1_38, %c0_39, %c0_40] : memref<2x4x32xbf16, #tpu.memory_space<vmem>>, vector<1x4x32xbf16>
    %85 = vector.shape_cast %84 : vector<1x4x32xbf16> to vector<4x32xbf16>
    %86 = arith.truncf %82 : vector<64x4xf32> to vector<64x4xbf16>
    %cst_41 = arith.constant dense<0.000000e+00> : vector<64x32xf32>
    %87 = tpu.matmul %86, %85, %cst_41 {dimension_numbers = #tpu.dot_dimension_numbers<[1], [0], [0], [1], [0, 0, 1, 1], [], []>} : vector<64x4xbf16>, vector<4x32xbf16>, vector<64x32xf32> -> vector<64x32xf32>
    %c1_42 = arith.constant 1 : index
    %c0_43 = arith.constant 0 : index
    %c0_44 = arith.constant 0 : index
    %88 = vector.load %arg2[%c1_42, %c0_43, %c0_44] : memref<2x64x32xf32, #tpu.memory_space<vmem>>, vector<1x64x32xf32>
    %89 = vector.shape_cast %88 : vector<1x64x32xf32> to vector<64x32xf32>
    %90 = arith.addf %87, %89 : vector<64x32xf32>
    %cst_45 = arith.constant 0.000000e+00 : f32
    %91 = vector.broadcast %cst_45 : f32 to vector<64x32xf32>
    %92 = arith.maximumf %90, %91 : vector<64x32xf32>
    %c1_46 = arith.constant 1 : index
    %c0_47 = arith.constant 0 : index
    %c0_48 = arith.constant 0 : index
    %93 = vector.load %arg6[%c1_46, %c0_47, %c0_48] : memref<2x32x32xbf16, #tpu.memory_space<vmem>>, vector<1x32x32xbf16>
    %94 = vector.shape_cast %93 : vector<1x32x32xbf16> to vector<32x32xbf16>
    %95 = arith.truncf %92 : vector<64x32xf32> to vector<64x32xbf16>
    %cst_49 = arith.constant dense<0.000000e+00> : vector<64x32xf32>
    %96 = tpu.matmul %95, %94, %cst_49 {dimension_numbers = #tpu.dot_dimension_numbers<[1], [0], [0], [1], [0, 0, 1, 1], [], []>} : vector<64x32xbf16>, vector<32x32xbf16>, vector<64x32xf32> -> vector<64x32xf32>
    %97 = vector.broadcast %73 : vector<1x32xf32> to vector<64x32xf32>
    %98 = arith.addf %96, %97 : vector<64x32xf32>
    %cst_50 = arith.constant 0.000000e+00 : f32
    %99 = vector.broadcast %cst_50 : f32 to vector<64x32xf32>
    %100 = arith.maximumf %98, %99 : vector<64x32xf32>
    %c1_51 = arith.constant 1 : index
    %c0_52 = arith.constant 0 : index
    %c0_53 = arith.constant 0 : index
    %101 = vector.load %arg7[%c1_51, %c0_52, %c0_53] : memref<2x32x8xbf16, #tpu.memory_space<vmem>>, vector<1x32x8xbf16>
    %102 = vector.shape_cast %101 : vector<1x32x8xbf16> to vector<32x8xbf16>
    %103 = arith.truncf %100 : vector<64x32xf32> to vector<64x32xbf16>
    %cst_54 = arith.constant dense<0.000000e+00> : vector<64x8xf32>
    %104 = tpu.matmul %103, %102, %cst_54 {dimension_numbers = #tpu.dot_dimension_numbers<[1], [0], [0], [1], [0, 0, 1, 1], [], []>} : vector<64x32xbf16>, vector<32x8xbf16>, vector<64x8xf32> -> vector<64x8xf32>
    %105 = vector.broadcast %72 : vector<1x8xf32> to vector<64x8xf32>
    %106 = arith.addf %104, %105 : vector<64x8xf32>
    %107 = vector.extract_strided_slice %106 {offsets = [0, 0], sizes = [64, 4], strides = [1, 1]} : vector<64x8xf32> to vector<64x4xf32>
    %108 = vector.extract_strided_slice %106 {offsets = [0, 4], sizes = [64, 4], strides = [1, 1]} : vector<64x8xf32> to vector<64x4xf32>
    %cst_55 = arith.constant 2.000000e+00 : f32
    %109 = vector.broadcast %cst_55 : f32 to vector<64x4xf32>
    %110 = arith.addf %108, %109 : vector<64x4xf32>
    %111 = math.absf %110 : vector<64x4xf32>
    %cst_56 = arith.constant 0.000000e+00 : f32
    %112 = vector.broadcast %cst_56 : f32 to vector<64x4xf32>
    %113 = arith.subf %112, %111 : vector<64x4xf32>
    %114 = math.exp %113 : vector<64x4xf32>
    %cst_57 = arith.constant 0.000000e+00 : f32
    %115 = vector.broadcast %cst_57 : f32 to vector<64x4xf32>
    %116 = arith.minimumf %110, %115 : vector<64x4xf32>
    %cst_58 = arith.constant 1.000000e+00 : f32
    %117 = vector.broadcast %cst_58 : f32 to vector<64x4xf32>
    %118 = arith.addf %117, %114 : vector<64x4xf32>
    %119 = math.log %118 : vector<64x4xf32>
    %120 = arith.subf %116, %119 : vector<64x4xf32>
    %cst_59 = arith.constant 1.000000e+00 : f32
    %121 = vector.broadcast %cst_59 : f32 to vector<64x4xf32>
    %122 = arith.addf %121, %114 : vector<64x4xf32>
    %123 = tpu.reciprocal %122 {approx = true} : vector<64x4xf32> -> vector<64x4xf32>
    %cst_60 = arith.constant 0.000000e+00 : f32
    %124 = vector.broadcast %cst_60 : f32 to vector<64x4xf32>
    %125 = arith.cmpf oge, %110, %124 : vector<64x4xf32>
    %126 = arith.mulf %114, %123 : vector<64x4xf32>
    %127 = arith.select %125, %123, %126 : vector<64x4xi1>, vector<64x4xf32>
    %128 = arith.addf %83, %107 : vector<64x4xf32>
    %129 = arith.mulf %128, %127 : vector<64x4xf32>
    %cst_61 = arith.constant dense<0.000000e+00> : vector<64xf32>
    %130 = vector.multi_reduction <add>, %120, %cst_61 [1] : vector<64x4xf32> to vector<64xf32>
    %131 = vector.shape_cast %130 : vector<64xf32> to vector<64x1xf32>
    %132 = arith.addf %66, %131 : vector<64x1xf32>
    %133 = tpu.concatenate %82, %129 in 1 : vector<64x4xf32>, vector<64x4xf32> -> vector<64x8xf32>
    %c0_62 = arith.constant 0 : index
    %c0_63 = arith.constant 0 : index
    %134 = vector.load %arg11[%c0_62, %c0_63] : memref<64x8xf32, #tpu.memory_space<vmem>>, vector<64x8xf32>
    tpu.vector_store %arg11[%c0_62, %c0_63], %133 {strides = array<i32>} : memref<64x8xf32, #tpu.memory_space<vmem>>, vector<64x8xf32>,
    %135 = vector.extract_strided_slice %133 {offsets = [0, 0], sizes = [64, 4], strides = [1, 1]} : vector<64x8xf32> to vector<64x4xf32>
    %136 = vector.extract_strided_slice %133 {offsets = [0, 4], sizes = [64, 4], strides = [1, 1]} : vector<64x8xf32> to vector<64x4xf32>
    %c9_i32 = arith.constant 9 : i32
    %137 = tpu.dynamic_rotate %135 by %c9_i32 dim 0 : vector<64x4xf32>, i32 -> vector<64x4xf32>
    %c0_64 = arith.constant 0 : index
    %c0_65 = arith.constant 0 : index
    %138 = vector.load %arg8[%c0_64, %c0_65] : memref<64x9xf32, #tpu.memory_space<vmem>>, vector<64x1xf32>
    %139 = vector.broadcast %138 : vector<64x1xf32> to vector<64x4xf32>
    %140 = arith.mulf %137, %139 : vector<64x4xf32>
    %c8_i32 = arith.constant 8 : i32
    %141 = tpu.dynamic_rotate %135 by %c8_i32 dim 0 : vector<64x4xf32>, i32 -> vector<64x4xf32>
    %c0_66 = arith.constant 0 : index
    %c1_67 = arith.constant 1 : index
    %142 = vector.load %arg8[%c0_66, %c1_67] : memref<64x9xf32, #tpu.memory_space<vmem>>, vector<64x1xf32>
    %143 = vector.broadcast %142 : vector<64x1xf32> to vector<64x4xf32>
    %144 = arith.mulf %141, %143 : vector<64x4xf32>
    %c7_i32 = arith.constant 7 : i32
    %145 = tpu.dynamic_rotate %135 by %c7_i32 dim 0 : vector<64x4xf32>, i32 -> vector<64x4xf32>
    %c0_68 = arith.constant 0 : index
    %c2 = arith.constant 2 : index
    %146 = vector.load %arg8[%c0_68, %c2] : memref<64x9xf32, #tpu.memory_space<vmem>>, vector<64x1xf32>
    %147 = vector.broadcast %146 : vector<64x1xf32> to vector<64x4xf32>
    %148 = arith.mulf %145, %147 : vector<64x4xf32>
    %c1_i32 = arith.constant 1 : i32
    %149 = tpu.dynamic_rotate %135 by %c1_i32 dim 0 : vector<64x4xf32>, i32 -> vector<64x4xf32>
    %c0_69 = arith.constant 0 : index
    %c3 = arith.constant 3 : index
    %150 = vector.load %arg8[%c0_69, %c3] : memref<64x9xf32, #tpu.memory_space<vmem>>, vector<64x1xf32>
    %151 = vector.broadcast %150 : vector<64x1xf32> to vector<64x4xf32>
    %152 = arith.mulf %149, %151 : vector<64x4xf32>
    %c63_i32 = arith.constant 63 : i32
    %153 = tpu.dynamic_rotate %135 by %c63_i32 dim 0 : vector<64x4xf32>, i32 -> vector<64x4xf32>
    %c0_70 = arith.constant 0 : index
    %c5 = arith.constant 5 : index
    %154 = vector.load %arg8[%c0_70, %c5] : memref<64x9xf32, #tpu.memory_space<vmem>>, vector<64x1xf32>
    %155 = vector.broadcast %154 : vector<64x1xf32> to vector<64x4xf32>
    %156 = arith.mulf %153, %155 : vector<64x4xf32>
    %c57_i32 = arith.constant 57 : i32
    %157 = tpu.dynamic_rotate %135 by %c57_i32 dim 0 : vector<64x4xf32>, i32 -> vector<64x4xf32>
    %c0_71 = arith.constant 0 : index
    %c6 = arith.constant 6 : index
    %158 = vector.load %arg8[%c0_71, %c6] : memref<64x9xf32, #tpu.memory_space<vmem>>, vector<64x1xf32>
    %159 = vector.broadcast %158 : vector<64x1xf32> to vector<64x4xf32>
    %160 = arith.mulf %157, %159 : vector<64x4xf32>
    %c56_i32 = arith.constant 56 : i32
    %161 = tpu.dynamic_rotate %135 by %c56_i32 dim 0 : vector<64x4xf32>, i32 -> vector<64x4xf32>
    %c0_72 = arith.constant 0 : index
    %c7 = arith.constant 7 : index
    %162 = vector.load %arg8[%c0_72, %c7] : memref<64x9xf32, #tpu.memory_space<vmem>>, vector<64x1xf32>
    %163 = vector.broadcast %162 : vector<64x1xf32> to vector<64x4xf32>
    %164 = arith.mulf %161, %163 : vector<64x4xf32>
    %c55_i32 = arith.constant 55 : i32
    %165 = tpu.dynamic_rotate %135 by %c55_i32 dim 0 : vector<64x4xf32>, i32 -> vector<64x4xf32>
    %c0_73 = arith.constant 0 : index
    %c8 = arith.constant 8 : index
    %166 = vector.load %arg8[%c0_73, %c8] : memref<64x9xf32, #tpu.memory_space<vmem>>, vector<64x1xf32>
    %167 = vector.broadcast %166 : vector<64x1xf32> to vector<64x4xf32>
    %168 = arith.mulf %165, %167 : vector<64x4xf32>
    %169 = tpu.concatenate %140, %144, %148, %152, %135, %156, %160, %164, %168 in 1 : vector<64x4xf32>, vector<64x4xf32>, vector<64x4xf32>, vector<64x4xf32>, vector<64x4xf32>, vector<64x4xf32>, vector<64x4xf32>, vector<64x4xf32>, vector<64x4xf32> -> vector<64x36xf32>
    %c0_74 = arith.constant 0 : index
    %c0_75 = arith.constant 0 : index
    %170 = vector.load %arg9[%c0_74, %c0_75] : memref<36x8xbf16, #tpu.memory_space<vmem>>, vector<36x8xbf16>
    %171 = arith.truncf %169 : vector<64x36xf32> to vector<64x36xbf16>
    %cst_76 = arith.constant dense<0.000000e+00> : vector<64x8xf32>
    %172 = tpu.matmul %171, %170, %cst_76 {dimension_numbers = #tpu.dot_dimension_numbers<[1], [0], [0], [1], [0, 0, 1, 1], [], []>} : vector<64x36xbf16>, vector<36x8xbf16>, vector<64x8xf32> -> vector<64x8xf32>
    %c0_77 = arith.constant 0 : index
    %c0_78 = arith.constant 0 : index
    %173 = vector.load %arg10[%c0_77, %c0_78] : memref<1x16xf32, #tpu.memory_space<vmem>>, vector<1x8xf32>
    %c0_79 = arith.constant 0 : index
    %c8_80 = arith.constant 8 : index
    %174 = vector.load %arg10[%c0_79, %c8_80] : memref<1x16xf32, #tpu.memory_space<vmem>>, vector<1x8xf32>
    %175 = vector.broadcast %173 : vector<1x8xf32> to vector<64x8xf32>
    %176 = arith.mulf %172, %175 : vector<64x8xf32>
    %177 = vector.broadcast %174 : vector<1x8xf32> to vector<64x8xf32>
    %178 = arith.addf %176, %177 : vector<64x8xf32>
    %179 = vector.extract_strided_slice %178 {offsets = [0, 0], sizes = [64, 4], strides = [1, 1]} : vector<64x8xf32> to vector<64x4xf32>
    %180 = vector.extract_strided_slice %178 {offsets = [0, 4], sizes = [64, 4], strides = [1, 1]} : vector<64x8xf32> to vector<64x4xf32>
    %181 = arith.subf %136, %179 : vector<64x4xf32>
    %cst_81 = arith.constant 1.83787704 : f32
    %182 = vector.broadcast %cst_81 : f32 to vector<64x4xf32>
    %183 = arith.subf %182, %180 : vector<64x4xf32>
    %184 = arith.mulf %181, %181 : vector<64x4xf32>
    %185 = arith.addf %183, %184 : vector<64x4xf32>
    %cst_82 = arith.constant -5.000000e-01 : f32
    %186 = vector.broadcast %cst_82 : f32 to vector<64x4xf32>
    %187 = arith.mulf %186, %185 : vector<64x4xf32>
    %cst_83 = arith.constant -2.000000e+00 : f32
    %188 = vector.broadcast %cst_83 : f32 to vector<64x4xf32>
    %189 = arith.mulf %188, %180 : vector<64x4xf32>
    %190 = math.exp %189 : vector<64x4xf32>
    %191 = arith.mulf %187, %190 : vector<64x4xf32>
    %cst_84 = arith.constant dense<0.000000e+00> : vector<64xf32>
    %192 = vector.multi_reduction <add>, %191, %cst_84 [1] : vector<64x4xf32> to vector<64xf32>
    %193 = vector.shape_cast %192 : vector<64xf32> to vector<64x1xf32>
    %194 = tpu.iota {dimensions = array<i32: 1>} : vector<8x128xi32>
    %195 = vector.shape_cast %132 : vector<64x1xf32> to vector<1x64x1xf32>
    %cst_85 = arith.constant dense<0.000000e+00> : vector<1xf32>
    %196 = vector.multi_reduction <add>, %195, %cst_85 [1, 2] : vector<1x64x1xf32> to vector<1xf32>
    %197 = vector.shape_cast %196 : vector<1xf32> to vector<1x1x1xf32>
    %198 = vector.extract %197[0, 0, 0] : f32 from vector<1x1x1xf32>
    %199 = vector.shape_cast %193 : vector<64x1xf32> to vector<1x64x1xf32>
    %cst_86 = arith.constant dense<0.000000e+00> : vector<1xf32>
    %200 = vector.multi_reduction <add>, %199, %cst_86 [1, 2] : vector<1x64x1xf32> to vector<1xf32>
    %201 = vector.shape_cast %200 : vector<1xf32> to vector<1x1x1xf32>
    %202 = vector.extract %201[0, 0, 0] : f32 from vector<1x1x1xf32>
    %c0_i32 = arith.constant 0 : i32
    %203 = vector.broadcast %c0_i32 : i32 to vector<8x128xi32>
    %204 = arith.cmpi eq, %194, %203 : vector<8x128xi32>
    %cst_87 = arith.constant 0.000000e+00 : f32
    %205 = vector.broadcast %198 : f32 to vector<8x128xf32>
    %206 = vector.broadcast %cst_87 : f32 to vector<8x128xf32>
    %207 = arith.select %204, %205, %206 : vector<8x128xi1>, vector<8x128xf32>
    %c1_i32_88 = arith.constant 1 : i32
    %208 = vector.broadcast %c1_i32_88 : i32 to vector<8x128xi32>
    %209 = arith.cmpi eq, %194, %208 : vector<8x128xi32>
    %cst_89 = arith.constant 0.000000e+00 : f32
    %210 = vector.broadcast %202 : f32 to vector<8x128xf32>
    %211 = vector.broadcast %cst_89 : f32 to vector<8x128xf32>
    %212 = arith.select %209, %210, %211 : vector<8x128xi1>, vector<8x128xf32>
    %213 = arith.addf %207, %212 : vector<8x128xf32>
    %c0_90 = arith.constant 0 : index
    %c0_91 = arith.constant 0 : index
    %c0_92 = arith.constant 0 : index
    %214 = vector.load %arg12[%c0_90, %c0_91, %c0_92] : memref<1x8x128xf32, #tpu.memory_space<vmem>>, vector<1x8x128xf32>
    %215 = vector.shape_cast %214 : vector<1x8x128xf32> to vector<8x128xf32>
    %216 = vector.shape_cast %213 : vector<8x128xf32> to vector<1x8x128xf32>
    tpu.vector_store %arg12[%c0_90, %c0_91, %c0_92], %216 {strides = array<i32>} : memref<1x8x128xf32, #tpu.memory_space<vmem>>, vector<1x8x128xf32>,
    return
  }
  func.func @transform_0(%arg0: i32) -> (i32, i32) {
    %c0_i32 = arith.constant 0 : i32
    %c0_i32_0 = arith.constant 0 : i32
    return %arg0, %c0_i32 : i32, i32
  }
  func.func @transform_1(%arg0: i32) -> (i32, i32, i32) {
    %c0_i32 = arith.constant 0 : i32
    %c0_i32_0 = arith.constant 0 : i32
    %c0_i32_1 = arith.constant 0 : i32
    return %c0_i32, %arg0, %c0_i32_0 : i32, i32, i32
  }
  func.func @transform_2(%arg0: i32) -> (i32, i32, i32) {
    %c0_i32 = arith.constant 0 : i32
    %c0_i32_0 = arith.constant 0 : i32
    %c0_i32_1 = arith.constant 0 : i32
    %c0_i32_2 = arith.constant 0 : i32
    return %c0_i32, %c0_i32_0, %c0_i32_1 : i32, i32, i32
  }
  func.func @transform_3(%arg0: i32) -> (i32, i32, i32) {
    %c0_i32 = arith.constant 0 : i32
    %c0_i32_0 = arith.constant 0 : i32
    %c0_i32_1 = arith.constant 0 : i32
    %c0_i32_2 = arith.constant 0 : i32
    return %c0_i32, %c0_i32_0, %c0_i32_1 : i32, i32, i32
  }
  func.func @transform_4(%arg0: i32) -> (i32, i32, i32) {
    %c0_i32 = arith.constant 0 : i32
    %c0_i32_0 = arith.constant 0 : i32
    %c0_i32_1 = arith.constant 0 : i32
    %c0_i32_2 = arith.constant 0 : i32
    return %c0_i32, %c0_i32_0, %c0_i32_1 : i32, i32, i32
  }
  func.func @transform_5(%arg0: i32) -> (i32, i32, i32) {
    %c0_i32 = arith.constant 0 : i32
    %c0_i32_0 = arith.constant 0 : i32
    %c0_i32_1 = arith.constant 0 : i32
    %c0_i32_2 = arith.constant 0 : i32
    return %c0_i32, %c0_i32_0, %c0_i32_1 : i32, i32, i32
  }
  func.func @transform_6(%arg0: i32) -> (i32, i32, i32) {
    %c0_i32 = arith.constant 0 : i32
    %c0_i32_0 = arith.constant 0 : i32
    %c0_i32_1 = arith.constant 0 : i32
    %c0_i32_2 = arith.constant 0 : i32
    return %c0_i32, %c0_i32_0, %c0_i32_1 : i32, i32, i32
  }
  func.func @transform_7(%arg0: i32) -> (i32, i32) {
    %c0_i32 = arith.constant 0 : i32
    %c0_i32_0 = arith.constant 0 : i32
    %c0_i32_1 = arith.constant 0 : i32
    return %c0_i32, %c0_i32_0 : i32, i32
  }
  func.func @transform_8(%arg0: i32) -> (i32, i32) {
    %c0_i32 = arith.constant 0 : i32
    %c0_i32_0 = arith.constant 0 : i32
    %c0_i32_1 = arith.constant 0 : i32
    return %c0_i32, %c0_i32_0 : i32, i32
  }
  func.func @transform_9(%arg0: i32) -> (i32, i32) {
    %c0_i32 = arith.constant 0 : i32
    %c0_i32_0 = arith.constant 0 : i32
    %c0_i32_1 = arith.constant 0 : i32
    return %c0_i32, %c0_i32_0 : i32, i32
  }
  func.func @transform_10(%arg0: i32) -> (i32, i32) {
    %c0_i32 = arith.constant 0 : i32
    %c0_i32_0 = arith.constant 0 : i32
    return %arg0, %c0_i32 : i32, i32
  }
  func.func @transform_11(%arg0: i32) -> (i32, i32, i32) {
    %c0_i32 = arith.constant 0 : i32
    %c0_i32_0 = arith.constant 0 : i32
    %c0_i32_1 = arith.constant 0 : i32
    return %arg0, %c0_i32, %c0_i32_0 : i32, i32, i32
  }
}

module attributes {stable_mosaic.version = 11 : i64} {
  func.func @_block_kernel(%arg0: i32, %arg1: memref<32x8xf32, #tpu.memory_space<vmem>>, %arg2: memref<2x32x32xf32, #tpu.memory_space<vmem>>, %arg3: memref<2x1x56xf32, #tpu.memory_space<vmem>>, %arg4: memref<2x8x8xbf16, #tpu.memory_space<vmem>>, %arg5: memref<2x4x32xbf16, #tpu.memory_space<vmem>>, %arg6: memref<2x32x32xbf16, #tpu.memory_space<vmem>>, %arg7: memref<2x32x8xbf16, #tpu.memory_space<vmem>>, %arg8: memref<1x16xf32, #tpu.memory_space<vmem>>, %arg9: memref<32x8xf32, #tpu.memory_space<vmem>>, %arg10: memref<1x8x128xf32, #tpu.memory_space<vmem>>) attributes {dimension_semantics = [#tpu.dimension_semantics<parallel>], iteration_bounds = array<i64: 2>, scalar_prefetch = 0 : i64, scratch_operands = 0 : i64, tpu.core_type = #tpu.core_type<tc>, window_params = [{transform_indices = @transform_0, window_bounds = array<i64: 32, 8>}, {transform_indices = @transform_1, window_bounds = array<i64: 2, 32, 32>}, {pipeline_mode = #tpu.pipeline_mode<synchronous>, transform_indices = @transform_2, window_bounds = array<i64: 2, 1, 56>}, {pipeline_mode = #tpu.pipeline_mode<synchronous>, transform_indices = @transform_3, window_bounds = array<i64: 2, 8, 8>}, {pipeline_mode = #tpu.pipeline_mode<synchronous>, transform_indices = @transform_4, window_bounds = array<i64: 2, 4, 32>}, {pipeline_mode = #tpu.pipeline_mode<synchronous>, transform_indices = @transform_5, window_bounds = array<i64: 2, 32, 32>}, {pipeline_mode = #tpu.pipeline_mode<synchronous>, transform_indices = @transform_6, window_bounds = array<i64: 2, 32, 8>}, {pipeline_mode = #tpu.pipeline_mode<synchronous>, transform_indices = @transform_7, window_bounds = array<i64: 1, 16>}, {transform_indices = @transform_8, window_bounds = array<i64: 32, 8>}, {transform_indices = @transform_9, window_bounds = array<i64: 1, 8, 128>}]} {
    %c0 = arith.constant 0 : index
    %c0_0 = arith.constant 0 : index
    %0 = vector.load %arg1[%c0, %c0_0] : memref<32x8xf32, #tpu.memory_space<vmem>>, vector<32x8xf32>
    %cst = arith.constant 0.000000e+00 : f32
    %1 = vector.broadcast %cst : f32 to vector<32x1xf32>
    %c0_1 = arith.constant 0 : index
    %c0_2 = arith.constant 0 : index
    %c0_3 = arith.constant 0 : index
    %2 = vector.load %arg3[%c0_1, %c0_2, %c0_3] : memref<2x1x56xf32, #tpu.memory_space<vmem>>, vector<1x1x56xf32>
    %3 = vector.shape_cast %2 : vector<1x1x56xf32> to vector<1x56xf32>
    %4 = vector.extract_strided_slice %3 {offsets = [0, 0], sizes = [1, 8], strides = [1, 1]} : vector<1x56xf32> to vector<1x8xf32>
    %5 = vector.extract_strided_slice %3 {offsets = [0, 8], sizes = [1, 8], strides = [1, 1]} : vector<1x56xf32> to vector<1x8xf32>
    %6 = vector.extract_strided_slice %3 {offsets = [0, 16], sizes = [1, 8], strides = [1, 1]} : vector<1x56xf32> to vector<1x8xf32>
    %7 = vector.extract_strided_slice %3 {offsets = [0, 24], sizes = [1, 32], strides = [1, 1]} : vector<1x56xf32> to vector<1x32xf32>
    %8 = vector.broadcast %4 : vector<1x8xf32> to vector<32x8xf32>
    %9 = arith.addf %0, %8 : vector<32x8xf32>
    %10 = vector.broadcast %5 : vector<1x8xf32> to vector<32x8xf32>
    %11 = arith.mulf %9, %10 : vector<32x8xf32>
    %c0_4 = arith.constant 0 : index
    %c0_5 = arith.constant 0 : index
    %c0_6 = arith.constant 0 : index
    %12 = vector.load %arg4[%c0_4, %c0_5, %c0_6] : memref<2x8x8xbf16, #tpu.memory_space<vmem>>, vector<1x8x8xbf16>
    %13 = vector.shape_cast %12 : vector<1x8x8xbf16> to vector<8x8xbf16>
    %14 = arith.truncf %11 : vector<32x8xf32> to vector<32x8xbf16>
    %cst_7 = arith.constant dense<0.000000e+00> : vector<32x8xf32>
    %15 = tpu.matmul %14, %13, %cst_7 {dimension_numbers = #tpu.dot_dimension_numbers<[1], [0], [0], [1], [0, 0, 1, 1], [], []>} : vector<32x8xbf16>, vector<8x8xbf16>, vector<32x8xf32> -> vector<32x8xf32>
    %16 = vector.extract_strided_slice %15 {offsets = [0, 0], sizes = [32, 4], strides = [1, 1]} : vector<32x8xf32> to vector<32x4xf32>
    %17 = vector.extract_strided_slice %15 {offsets = [0, 4], sizes = [32, 4], strides = [1, 1]} : vector<32x8xf32> to vector<32x4xf32>
    %c0_8 = arith.constant 0 : index
    %c0_9 = arith.constant 0 : index
    %c0_10 = arith.constant 0 : index
    %18 = vector.load %arg5[%c0_8, %c0_9, %c0_10] : memref<2x4x32xbf16, #tpu.memory_space<vmem>>, vector<1x4x32xbf16>
    %19 = vector.shape_cast %18 : vector<1x4x32xbf16> to vector<4x32xbf16>
    %20 = arith.truncf %16 : vector<32x4xf32> to vector<32x4xbf16>
    %cst_11 = arith.constant dense<0.000000e+00> : vector<32x32xf32>
    %21 = tpu.matmul %20, %19, %cst_11 {dimension_numbers = #tpu.dot_dimension_numbers<[1], [0], [0], [1], [0, 0, 1, 1], [], []>} : vector<32x4xbf16>, vector<4x32xbf16>, vector<32x32xf32> -> vector<32x32xf32>
    %c0_12 = arith.constant 0 : index
    %c0_13 = arith.constant 0 : index
    %c0_14 = arith.constant 0 : index
    %22 = vector.load %arg2[%c0_12, %c0_13, %c0_14] : memref<2x32x32xf32, #tpu.memory_space<vmem>>, vector<1x32x32xf32>
    %23 = vector.shape_cast %22 : vector<1x32x32xf32> to vector<32x32xf32>
    %24 = arith.addf %21, %23 : vector<32x32xf32>
    %cst_15 = arith.constant 0.000000e+00 : f32
    %25 = vector.broadcast %cst_15 : f32 to vector<32x32xf32>
    %26 = arith.maximumf %24, %25 : vector<32x32xf32>
    %c0_16 = arith.constant 0 : index
    %c0_17 = arith.constant 0 : index
    %c0_18 = arith.constant 0 : index
    %27 = vector.load %arg6[%c0_16, %c0_17, %c0_18] : memref<2x32x32xbf16, #tpu.memory_space<vmem>>, vector<1x32x32xbf16>
    %28 = vector.shape_cast %27 : vector<1x32x32xbf16> to vector<32x32xbf16>
    %29 = arith.truncf %26 : vector<32x32xf32> to vector<32x32xbf16>
    %cst_19 = arith.constant dense<0.000000e+00> : vector<32x32xf32>
    %30 = tpu.matmul %29, %28, %cst_19 {dimension_numbers = #tpu.dot_dimension_numbers<[1], [0], [0], [1], [0, 0, 1, 1], [], []>} : vector<32x32xbf16>, vector<32x32xbf16>, vector<32x32xf32> -> vector<32x32xf32>
    %31 = vector.broadcast %7 : vector<1x32xf32> to vector<32x32xf32>
    %32 = arith.addf %30, %31 : vector<32x32xf32>
    %cst_20 = arith.constant 0.000000e+00 : f32
    %33 = vector.broadcast %cst_20 : f32 to vector<32x32xf32>
    %34 = arith.maximumf %32, %33 : vector<32x32xf32>
    %c0_21 = arith.constant 0 : index
    %c0_22 = arith.constant 0 : index
    %c0_23 = arith.constant 0 : index
    %35 = vector.load %arg7[%c0_21, %c0_22, %c0_23] : memref<2x32x8xbf16, #tpu.memory_space<vmem>>, vector<1x32x8xbf16>
    %36 = vector.shape_cast %35 : vector<1x32x8xbf16> to vector<32x8xbf16>
    %37 = arith.truncf %34 : vector<32x32xf32> to vector<32x32xbf16>
    %cst_24 = arith.constant dense<0.000000e+00> : vector<32x8xf32>
    %38 = tpu.matmul %37, %36, %cst_24 {dimension_numbers = #tpu.dot_dimension_numbers<[1], [0], [0], [1], [0, 0, 1, 1], [], []>} : vector<32x32xbf16>, vector<32x8xbf16>, vector<32x8xf32> -> vector<32x8xf32>
    %39 = vector.broadcast %6 : vector<1x8xf32> to vector<32x8xf32>
    %40 = arith.addf %38, %39 : vector<32x8xf32>
    %41 = vector.extract_strided_slice %40 {offsets = [0, 0], sizes = [32, 4], strides = [1, 1]} : vector<32x8xf32> to vector<32x4xf32>
    %42 = vector.extract_strided_slice %40 {offsets = [0, 4], sizes = [32, 4], strides = [1, 1]} : vector<32x8xf32> to vector<32x4xf32>
    %cst_25 = arith.constant 2.000000e+00 : f32
    %43 = vector.broadcast %cst_25 : f32 to vector<32x4xf32>
    %44 = arith.addf %42, %43 : vector<32x4xf32>
    %45 = math.absf %44 : vector<32x4xf32>
    %cst_26 = arith.constant 0.000000e+00 : f32
    %46 = vector.broadcast %cst_26 : f32 to vector<32x4xf32>
    %47 = arith.subf %46, %45 : vector<32x4xf32>
    %48 = math.exp %47 : vector<32x4xf32>
    %cst_27 = arith.constant 0.000000e+00 : f32
    %49 = vector.broadcast %cst_27 : f32 to vector<32x4xf32>
    %50 = arith.minimumf %44, %49 : vector<32x4xf32>
    %cst_28 = arith.constant 1.000000e+00 : f32
    %51 = vector.broadcast %cst_28 : f32 to vector<32x4xf32>
    %52 = arith.addf %51, %48 : vector<32x4xf32>
    %53 = math.log %52 : vector<32x4xf32>
    %54 = arith.subf %50, %53 : vector<32x4xf32>
    %cst_29 = arith.constant 1.000000e+00 : f32
    %55 = vector.broadcast %cst_29 : f32 to vector<32x4xf32>
    %56 = arith.addf %55, %48 : vector<32x4xf32>
    %57 = tpu.reciprocal %56 {approx = true} : vector<32x4xf32> -> vector<32x4xf32>
    %cst_30 = arith.constant 0.000000e+00 : f32
    %58 = vector.broadcast %cst_30 : f32 to vector<32x4xf32>
    %59 = arith.cmpf oge, %44, %58 : vector<32x4xf32>
    %60 = arith.mulf %48, %57 : vector<32x4xf32>
    %61 = arith.select %59, %57, %60 : vector<32x4xi1>, vector<32x4xf32>
    %62 = arith.addf %17, %41 : vector<32x4xf32>
    %63 = arith.mulf %62, %61 : vector<32x4xf32>
    %cst_31 = arith.constant dense<0.000000e+00> : vector<32xf32>
    %64 = vector.multi_reduction <add>, %54, %cst_31 [1] : vector<32x4xf32> to vector<32xf32>
    %65 = vector.shape_cast %64 : vector<32xf32> to vector<32x1xf32>
    %66 = arith.addf %1, %65 : vector<32x1xf32>
    %67 = tpu.concatenate %16, %63 in 1 : vector<32x4xf32>, vector<32x4xf32> -> vector<32x8xf32>
    %c1 = arith.constant 1 : index
    %c0_32 = arith.constant 0 : index
    %c0_33 = arith.constant 0 : index
    %68 = vector.load %arg3[%c1, %c0_32, %c0_33] : memref<2x1x56xf32, #tpu.memory_space<vmem>>, vector<1x1x56xf32>
    %69 = vector.shape_cast %68 : vector<1x1x56xf32> to vector<1x56xf32>
    %70 = vector.extract_strided_slice %69 {offsets = [0, 0], sizes = [1, 8], strides = [1, 1]} : vector<1x56xf32> to vector<1x8xf32>
    %71 = vector.extract_strided_slice %69 {offsets = [0, 8], sizes = [1, 8], strides = [1, 1]} : vector<1x56xf32> to vector<1x8xf32>
    %72 = vector.extract_strided_slice %69 {offsets = [0, 16], sizes = [1, 8], strides = [1, 1]} : vector<1x56xf32> to vector<1x8xf32>
    %73 = vector.extract_strided_slice %69 {offsets = [0, 24], sizes = [1, 32], strides = [1, 1]} : vector<1x56xf32> to vector<1x32xf32>
    %74 = vector.broadcast %70 : vector<1x8xf32> to vector<32x8xf32>
    %75 = arith.addf %67, %74 : vector<32x8xf32>
    %76 = vector.broadcast %71 : vector<1x8xf32> to vector<32x8xf32>
    %77 = arith.mulf %75, %76 : vector<32x8xf32>
    %c1_34 = arith.constant 1 : index
    %c0_35 = arith.constant 0 : index
    %c0_36 = arith.constant 0 : index
    %78 = vector.load %arg4[%c1_34, %c0_35, %c0_36] : memref<2x8x8xbf16, #tpu.memory_space<vmem>>, vector<1x8x8xbf16>
    %79 = vector.shape_cast %78 : vector<1x8x8xbf16> to vector<8x8xbf16>
    %80 = arith.truncf %77 : vector<32x8xf32> to vector<32x8xbf16>
    %cst_37 = arith.constant dense<0.000000e+00> : vector<32x8xf32>
    %81 = tpu.matmul %80, %79, %cst_37 {dimension_numbers = #tpu.dot_dimension_numbers<[1], [0], [0], [1], [0, 0, 1, 1], [], []>} : vector<32x8xbf16>, vector<8x8xbf16>, vector<32x8xf32> -> vector<32x8xf32>
    %82 = vector.extract_strided_slice %81 {offsets = [0, 0], sizes = [32, 4], strides = [1, 1]} : vector<32x8xf32> to vector<32x4xf32>
    %83 = vector.extract_strided_slice %81 {offsets = [0, 4], sizes = [32, 4], strides = [1, 1]} : vector<32x8xf32> to vector<32x4xf32>
    %c1_38 = arith.constant 1 : index
    %c0_39 = arith.constant 0 : index
    %c0_40 = arith.constant 0 : index
    %84 = vector.load %arg5[%c1_38, %c0_39, %c0_40] : memref<2x4x32xbf16, #tpu.memory_space<vmem>>, vector<1x4x32xbf16>
    %85 = vector.shape_cast %84 : vector<1x4x32xbf16> to vector<4x32xbf16>
    %86 = arith.truncf %82 : vector<32x4xf32> to vector<32x4xbf16>
    %cst_41 = arith.constant dense<0.000000e+00> : vector<32x32xf32>
    %87 = tpu.matmul %86, %85, %cst_41 {dimension_numbers = #tpu.dot_dimension_numbers<[1], [0], [0], [1], [0, 0, 1, 1], [], []>} : vector<32x4xbf16>, vector<4x32xbf16>, vector<32x32xf32> -> vector<32x32xf32>
    %c1_42 = arith.constant 1 : index
    %c0_43 = arith.constant 0 : index
    %c0_44 = arith.constant 0 : index
    %88 = vector.load %arg2[%c1_42, %c0_43, %c0_44] : memref<2x32x32xf32, #tpu.memory_space<vmem>>, vector<1x32x32xf32>
    %89 = vector.shape_cast %88 : vector<1x32x32xf32> to vector<32x32xf32>
    %90 = arith.addf %87, %89 : vector<32x32xf32>
    %cst_45 = arith.constant 0.000000e+00 : f32
    %91 = vector.broadcast %cst_45 : f32 to vector<32x32xf32>
    %92 = arith.maximumf %90, %91 : vector<32x32xf32>
    %c1_46 = arith.constant 1 : index
    %c0_47 = arith.constant 0 : index
    %c0_48 = arith.constant 0 : index
    %93 = vector.load %arg6[%c1_46, %c0_47, %c0_48] : memref<2x32x32xbf16, #tpu.memory_space<vmem>>, vector<1x32x32xbf16>
    %94 = vector.shape_cast %93 : vector<1x32x32xbf16> to vector<32x32xbf16>
    %95 = arith.truncf %92 : vector<32x32xf32> to vector<32x32xbf16>
    %cst_49 = arith.constant dense<0.000000e+00> : vector<32x32xf32>
    %96 = tpu.matmul %95, %94, %cst_49 {dimension_numbers = #tpu.dot_dimension_numbers<[1], [0], [0], [1], [0, 0, 1, 1], [], []>} : vector<32x32xbf16>, vector<32x32xbf16>, vector<32x32xf32> -> vector<32x32xf32>
    %97 = vector.broadcast %73 : vector<1x32xf32> to vector<32x32xf32>
    %98 = arith.addf %96, %97 : vector<32x32xf32>
    %cst_50 = arith.constant 0.000000e+00 : f32
    %99 = vector.broadcast %cst_50 : f32 to vector<32x32xf32>
    %100 = arith.maximumf %98, %99 : vector<32x32xf32>
    %c1_51 = arith.constant 1 : index
    %c0_52 = arith.constant 0 : index
    %c0_53 = arith.constant 0 : index
    %101 = vector.load %arg7[%c1_51, %c0_52, %c0_53] : memref<2x32x8xbf16, #tpu.memory_space<vmem>>, vector<1x32x8xbf16>
    %102 = vector.shape_cast %101 : vector<1x32x8xbf16> to vector<32x8xbf16>
    %103 = arith.truncf %100 : vector<32x32xf32> to vector<32x32xbf16>
    %cst_54 = arith.constant dense<0.000000e+00> : vector<32x8xf32>
    %104 = tpu.matmul %103, %102, %cst_54 {dimension_numbers = #tpu.dot_dimension_numbers<[1], [0], [0], [1], [0, 0, 1, 1], [], []>} : vector<32x32xbf16>, vector<32x8xbf16>, vector<32x8xf32> -> vector<32x8xf32>
    %105 = vector.broadcast %72 : vector<1x8xf32> to vector<32x8xf32>
    %106 = arith.addf %104, %105 : vector<32x8xf32>
    %107 = vector.extract_strided_slice %106 {offsets = [0, 0], sizes = [32, 4], strides = [1, 1]} : vector<32x8xf32> to vector<32x4xf32>
    %108 = vector.extract_strided_slice %106 {offsets = [0, 4], sizes = [32, 4], strides = [1, 1]} : vector<32x8xf32> to vector<32x4xf32>
    %cst_55 = arith.constant 2.000000e+00 : f32
    %109 = vector.broadcast %cst_55 : f32 to vector<32x4xf32>
    %110 = arith.addf %108, %109 : vector<32x4xf32>
    %111 = math.absf %110 : vector<32x4xf32>
    %cst_56 = arith.constant 0.000000e+00 : f32
    %112 = vector.broadcast %cst_56 : f32 to vector<32x4xf32>
    %113 = arith.subf %112, %111 : vector<32x4xf32>
    %114 = math.exp %113 : vector<32x4xf32>
    %cst_57 = arith.constant 0.000000e+00 : f32
    %115 = vector.broadcast %cst_57 : f32 to vector<32x4xf32>
    %116 = arith.minimumf %110, %115 : vector<32x4xf32>
    %cst_58 = arith.constant 1.000000e+00 : f32
    %117 = vector.broadcast %cst_58 : f32 to vector<32x4xf32>
    %118 = arith.addf %117, %114 : vector<32x4xf32>
    %119 = math.log %118 : vector<32x4xf32>
    %120 = arith.subf %116, %119 : vector<32x4xf32>
    %cst_59 = arith.constant 1.000000e+00 : f32
    %121 = vector.broadcast %cst_59 : f32 to vector<32x4xf32>
    %122 = arith.addf %121, %114 : vector<32x4xf32>
    %123 = tpu.reciprocal %122 {approx = true} : vector<32x4xf32> -> vector<32x4xf32>
    %cst_60 = arith.constant 0.000000e+00 : f32
    %124 = vector.broadcast %cst_60 : f32 to vector<32x4xf32>
    %125 = arith.cmpf oge, %110, %124 : vector<32x4xf32>
    %126 = arith.mulf %114, %123 : vector<32x4xf32>
    %127 = arith.select %125, %123, %126 : vector<32x4xi1>, vector<32x4xf32>
    %128 = arith.addf %83, %107 : vector<32x4xf32>
    %129 = arith.mulf %128, %127 : vector<32x4xf32>
    %cst_61 = arith.constant dense<0.000000e+00> : vector<32xf32>
    %130 = vector.multi_reduction <add>, %120, %cst_61 [1] : vector<32x4xf32> to vector<32xf32>
    %131 = vector.shape_cast %130 : vector<32xf32> to vector<32x1xf32>
    %132 = arith.addf %66, %131 : vector<32x1xf32>
    %133 = tpu.concatenate %82, %129 in 1 : vector<32x4xf32>, vector<32x4xf32> -> vector<32x8xf32>
    %c0_62 = arith.constant 0 : index
    %c0_63 = arith.constant 0 : index
    %134 = vector.load %arg9[%c0_62, %c0_63] : memref<32x8xf32, #tpu.memory_space<vmem>>, vector<32x8xf32>
    tpu.vector_store %arg9[%c0_62, %c0_63], %133 {strides = array<i32>} : memref<32x8xf32, #tpu.memory_space<vmem>>, vector<32x8xf32>,
    %c0_64 = arith.constant 0 : index
    %c0_65 = arith.constant 0 : index
    %135 = vector.load %arg8[%c0_64, %c0_65] : memref<1x16xf32, #tpu.memory_space<vmem>>, vector<1x8xf32>
    %c0_66 = arith.constant 0 : index
    %c8 = arith.constant 8 : index
    %136 = vector.load %arg8[%c0_66, %c8] : memref<1x16xf32, #tpu.memory_space<vmem>>, vector<1x8xf32>
    %137 = vector.broadcast %135 : vector<1x8xf32> to vector<32x8xf32>
    %138 = arith.subf %133, %137 : vector<32x8xf32>
    %cst_67 = arith.constant 1.83787704 : f32
    %139 = vector.broadcast %cst_67 : f32 to vector<1x8xf32>
    %140 = arith.subf %139, %136 : vector<1x8xf32>
    %141 = arith.mulf %138, %138 : vector<32x8xf32>
    %142 = vector.broadcast %140 : vector<1x8xf32> to vector<32x8xf32>
    %143 = arith.addf %142, %141 : vector<32x8xf32>
    %cst_68 = arith.constant -5.000000e-01 : f32
    %144 = vector.broadcast %cst_68 : f32 to vector<32x8xf32>
    %145 = arith.mulf %144, %143 : vector<32x8xf32>
    %cst_69 = arith.constant -2.000000e+00 : f32
    %146 = vector.broadcast %cst_69 : f32 to vector<1x8xf32>
    %147 = arith.mulf %146, %136 : vector<1x8xf32>
    %148 = math.exp %147 : vector<1x8xf32>
    %149 = vector.broadcast %148 : vector<1x8xf32> to vector<32x8xf32>
    %150 = arith.mulf %145, %149 : vector<32x8xf32>
    %cst_70 = arith.constant dense<0.000000e+00> : vector<32xf32>
    %151 = vector.multi_reduction <add>, %150, %cst_70 [1] : vector<32x8xf32> to vector<32xf32>
    %152 = vector.shape_cast %151 : vector<32xf32> to vector<32x1xf32>
    %153 = tpu.iota {dimensions = array<i32: 1>} : vector<8x128xi32>
    %154 = vector.shape_cast %132 : vector<32x1xf32> to vector<1x32x1xf32>
    %cst_71 = arith.constant dense<0.000000e+00> : vector<1xf32>
    %155 = vector.multi_reduction <add>, %154, %cst_71 [1, 2] : vector<1x32x1xf32> to vector<1xf32>
    %156 = vector.shape_cast %155 : vector<1xf32> to vector<1x1x1xf32>
    %157 = vector.extract %156[0, 0, 0] : f32 from vector<1x1x1xf32>
    %158 = vector.shape_cast %152 : vector<32x1xf32> to vector<1x32x1xf32>
    %cst_72 = arith.constant dense<0.000000e+00> : vector<1xf32>
    %159 = vector.multi_reduction <add>, %158, %cst_72 [1, 2] : vector<1x32x1xf32> to vector<1xf32>
    %160 = vector.shape_cast %159 : vector<1xf32> to vector<1x1x1xf32>
    %161 = vector.extract %160[0, 0, 0] : f32 from vector<1x1x1xf32>
    %c0_i32 = arith.constant 0 : i32
    %162 = vector.broadcast %c0_i32 : i32 to vector<8x128xi32>
    %163 = arith.cmpi eq, %153, %162 : vector<8x128xi32>
    %cst_73 = arith.constant 0.000000e+00 : f32
    %164 = vector.broadcast %157 : f32 to vector<8x128xf32>
    %165 = vector.broadcast %cst_73 : f32 to vector<8x128xf32>
    %166 = arith.select %163, %164, %165 : vector<8x128xi1>, vector<8x128xf32>
    %c1_i32 = arith.constant 1 : i32
    %167 = vector.broadcast %c1_i32 : i32 to vector<8x128xi32>
    %168 = arith.cmpi eq, %153, %167 : vector<8x128xi32>
    %cst_74 = arith.constant 0.000000e+00 : f32
    %169 = vector.broadcast %161 : f32 to vector<8x128xf32>
    %170 = vector.broadcast %cst_74 : f32 to vector<8x128xf32>
    %171 = arith.select %168, %169, %170 : vector<8x128xi1>, vector<8x128xf32>
    %172 = arith.addf %166, %171 : vector<8x128xf32>
    %c0_75 = arith.constant 0 : index
    %c0_76 = arith.constant 0 : index
    %c0_77 = arith.constant 0 : index
    %173 = vector.load %arg10[%c0_75, %c0_76, %c0_77] : memref<1x8x128xf32, #tpu.memory_space<vmem>>, vector<1x8x128xf32>
    %174 = vector.shape_cast %173 : vector<1x8x128xf32> to vector<8x128xf32>
    %175 = vector.shape_cast %172 : vector<8x128xf32> to vector<1x8x128xf32>
    tpu.vector_store %arg10[%c0_75, %c0_76, %c0_77], %175 {strides = array<i32>} : memref<1x8x128xf32, #tpu.memory_space<vmem>>, vector<1x8x128xf32>,
    return
  }
  func.func @transform_0(%arg0: i32) -> (i32, i32) {
    %c0_i32 = arith.constant 0 : i32
    %c0_i32_0 = arith.constant 0 : i32
    return %arg0, %c0_i32 : i32, i32
  }
  func.func @transform_1(%arg0: i32) -> (i32, i32, i32) {
    %c0_i32 = arith.constant 0 : i32
    %c0_i32_0 = arith.constant 0 : i32
    %c0_i32_1 = arith.constant 0 : i32
    return %c0_i32, %arg0, %c0_i32_0 : i32, i32, i32
  }
  func.func @transform_2(%arg0: i32) -> (i32, i32, i32) {
    %c0_i32 = arith.constant 0 : i32
    %c0_i32_0 = arith.constant 0 : i32
    %c0_i32_1 = arith.constant 0 : i32
    %c0_i32_2 = arith.constant 0 : i32
    return %c0_i32, %c0_i32_0, %c0_i32_1 : i32, i32, i32
  }
  func.func @transform_3(%arg0: i32) -> (i32, i32, i32) {
    %c0_i32 = arith.constant 0 : i32
    %c0_i32_0 = arith.constant 0 : i32
    %c0_i32_1 = arith.constant 0 : i32
    %c0_i32_2 = arith.constant 0 : i32
    return %c0_i32, %c0_i32_0, %c0_i32_1 : i32, i32, i32
  }
  func.func @transform_4(%arg0: i32) -> (i32, i32, i32) {
    %c0_i32 = arith.constant 0 : i32
    %c0_i32_0 = arith.constant 0 : i32
    %c0_i32_1 = arith.constant 0 : i32
    %c0_i32_2 = arith.constant 0 : i32
    return %c0_i32, %c0_i32_0, %c0_i32_1 : i32, i32, i32
  }
  func.func @transform_5(%arg0: i32) -> (i32, i32, i32) {
    %c0_i32 = arith.constant 0 : i32
    %c0_i32_0 = arith.constant 0 : i32
    %c0_i32_1 = arith.constant 0 : i32
    %c0_i32_2 = arith.constant 0 : i32
    return %c0_i32, %c0_i32_0, %c0_i32_1 : i32, i32, i32
  }
  func.func @transform_6(%arg0: i32) -> (i32, i32, i32) {
    %c0_i32 = arith.constant 0 : i32
    %c0_i32_0 = arith.constant 0 : i32
    %c0_i32_1 = arith.constant 0 : i32
    %c0_i32_2 = arith.constant 0 : i32
    return %c0_i32, %c0_i32_0, %c0_i32_1 : i32, i32, i32
  }
  func.func @transform_7(%arg0: i32) -> (i32, i32) {
    %c0_i32 = arith.constant 0 : i32
    %c0_i32_0 = arith.constant 0 : i32
    %c0_i32_1 = arith.constant 0 : i32
    return %c0_i32, %c0_i32_0 : i32, i32
  }
  func.func @transform_8(%arg0: i32) -> (i32, i32) {
    %c0_i32 = arith.constant 0 : i32
    %c0_i32_0 = arith.constant 0 : i32
    return %arg0, %c0_i32 : i32, i32
  }
  func.func @transform_9(%arg0: i32) -> (i32, i32, i32) {
    %c0_i32 = arith.constant 0 : i32
    %c0_i32_0 = arith.constant 0 : i32
    %c0_i32_1 = arith.constant 0 : i32
    return %arg0, %c0_i32, %c0_i32_0 : i32, i32, i32
  }
}

</mosaic_0001>

<bundles_post_ra>
// kernel: glow_forward.3
= control target key start
LH: loop header
LB: loop body
LE: loop exit
PB: predicated region body
PF: predicated region fallthrough
CT: control target
= control target key end

     0   :  { %s1845_s30 = smov 0   ;;  %s1847_s10 = smov 0   ;;  %s2177_s0 = inlined_call_operand.vmem [shape: f32[64,8], index: 0, kind: input, shape index: {}]   ;;  %s2178_s1 = inlined_call_operand.vmem [shape: f32[2,64,32], index: 1, kind: input, shape index: {}]   ;;  %s2179_s2 = inlined_call_operand.vmem [shape: f32[2,1,56], index: 2, kind: input, shape index: {}]   ;;  %s2180_s3 = inlined_call_operand.vmem [shape: bf16[2,8,8], index: 3, kind: input, shape index: {}]   ;;  %s2181_s4 = inlined_call_operand.vmem [shape: bf16[2,4,32], index: 4, kind: input, shape index: {}]   ;;  %s2182_s5 = inlined_call_operand.vmem [shape: bf16[2,32,32], index: 5, kind: input, shape index: {}]   ;;  %s2183_s6 = inlined_call_operand.vmem [shape: bf16[2,32,8], index: 6, kind: input, shape index: {}]   ;;  %s2184_s7 = inlined_call_operand.vmem [shape: f32[1,16], index: 7, kind: input, shape index: {}]   ;;  %s2185_s8 = inlined_call_operand.vmem [shape: f32[64,8], index: 8, kind: output, shape index: {0}]   ;;  %s2186_s9 = inlined_call_operand.vmem [shape: f32[2,8,128], index: 9, kind: output, shape index: {1}]  }
   0x1   :  { %s1849_s11 = smov 0  }
   0x2 LB: > { %s1861_s12 = sadd.s32 4294967295, %s1787_s11   ;;  %s1864_s13 = sadd.s32 1, %s1787_s11   ;;  %s1787_s11 = sphi %s1849_s11, %s2189_s11   ;;  %s1783_s10 = sphi %s1847_s10, %s2188_s10   ;;  %s1779_s30 = sphi %s1845_s30, %s2187_s30  }
   0x3   : > { %s50_s14 = ssub.s32 %s1787_s11, %s1864_s13  ;;  %s53_s15 = sadd.s32 1, %s1783_s10 }
   0x4   : > { %p51_p0 = scmp.eq.s32.totalorder %s50_s14, 0  ;;  %p60_p1 = scmp.ne.s32.totalorder %s1783_s10, %s1779_s30 }
   0x5   : > { %p61_p2 = scmp.eq.s32.totalorder %s1787_s11, 0  ;;  %p1530_p4 = scmp.ge.s32.totalorder %s1787_s11, 2 }
   0x6   : > { %s1873_s16 = scalar_select %p51_p0, %s1783_s10, %s53_s15  }
   0x7   : > { %p62_p3 = por %p61_p2, %p60_p1  ;;  %282 = sbr.rel (%p1530_p4) target bundleno = 20 (0x14), region = 40 }
   0xc   : > { %294 = sbr.rel (!%p62_p3) target bundleno = 20 (0x14), region = 48  ;;  %s296_s17 = sand.u32 (%p62_p3), 1, %s1783_s10  }
   0xd   : > { %s1584_s18 = sshll.u32 (%p62_p3), %s1787_s11, 5  ;;  %s1531_s19 = sshll.u32 (%p62_p3), %s296_s17, 6 }
   0xe   : > { %s301_s22 = scalar_lea.vmem (%p62_p3), %s2178_s1, %s1584_s18  ;;  %s298_s23 = scalar_lea.vmem (%p62_p3), [#allocation2], %s1531_s19 }
   0xf   : > { %v344_v0 = vld [vmem:[%s301_s22] sm:$0xff] (%p62_p3)  ;;  %v346_v1 = vld [vmem:[%s301_s22 + $0x8] sm:$0xff] (%p62_p3)  ;;  %v348_v2 = vld [vmem:[%s301_s22 + $0x10] sm:$0xff] (%p62_p3) }
  0x10   : > { %345 = vst [vmem:[%s298_s23] sm:$0xff] (%p62_p3), %v344_v0  ;;  %347 = vst [vmem:[%s298_s23 + $0x8] sm:$0xff] (%p62_p3), %v346_v1  ;;  %v350_v3 = vld [vmem:[%s301_s22 + $0x18] sm:$0xff] (%p62_p3)  ;;  %v352_v4 = vld [vmem:[%s301_s22 + $0x40] sm:$0xff] (%p62_p3) }
  0x11   : > { %349 = vst [vmem:[%s298_s23 + $0x10] sm:$0xff] %v348_v2  ;;  %v354_v5 = vld [vmem:[%s301_s22 + $0x48] sm:$0xff]  ;;  %351 = vst [vmem:[%s298_s23 + $0x18] sm:$0xff] %v350_v3  ;;  %v356_v6 = vld [vmem:[%s301_s22 + $0x50] sm:$0xff] }
  0x12   : > { %353 = vst [vmem:[%s298_s23 + $0x20] sm:$0xff] %v352_v4  ;;  %355 = vst [vmem:[%s298_s23 + $0x28] sm:$0xff] %v354_v5  ;;  %v358_v7 = vld [vmem:[%s301_s22 + $0x58] sm:$0xff] }
  0x13   : > { %357 = vst [vmem:[%s298_s23 + $0x30] sm:$0xff] %v356_v6  ;;  %359 = vst [vmem:[%s298_s23 + $0x38] sm:$0xff] %v358_v7 }
  0x14 PF: > { %p1534_p5 = scmp.ge.s32.totalorder %s1787_s11, 1  ;;  %p364_p6 = scmp.lt.s32.totalorder %s1787_s11, 3 }
  0x16   : > { %p365_p7 = pnand %p1534_p5, %p364_p6 }
  0x17   : > { %s1789_s28 = smov (!%p365_p7), 120   ;;  %s1536_s29 = sshll.u32 (!%p365_p7), %s1861_s12, 2 }
  0x18   : > { %368 = sbr.rel (%p365_p7) target bundleno = 2621 (0xa3d), region = 86  ;;  %p416_p8 = scmp.lt.s32.totalorder (!%p365_p7), %s1536_s29, 7 }
  0x19   : > { %s1790_s24 = smov (!%p365_p7), 104   ;;  %s371_s25 = sand.u32 (!%p365_p7), 1, %s1779_s30  }
  0x1a   : > { %s1535_s26 = sshll.u32 (!%p365_p7), %s371_s25, 6  ;;  %s1791_s18 = smov (!%p365_p7), 112  }
  0x1b   : > { %s1938_s27 = scalar_lea.vmem (!%p365_p7), [#allocation2], %s1535_s26  ;;  %s1792_s19 = smov (!%p365_p7), 4  }
  0x1c   : > { %p428_p9 = scmp.lt.s32.totalorder (!%p365_p7), %s1861_s12, 1 }
  0x1d   : > { %v1886_v8 = vld [vmem:[%s2179_s2] ss:$0 sm:$0xff]  ;;  %vm465_vm0 = vcmask 1043456   ;;  %s2191_s29 = smov (!%p416_p8, %s1536_s29), 7  ;;  %vm458_vm1 = vcmask 64512   ;;  %vm532_vm2 = vcmask 1041408  }
  0x1e   : > { %v455_v9 = vld [vmem:[%s2180_s3] sm:$0xf]  ;;  %448 = vrot.lane.b32.xlu0 %v1886_v8, %s1789_s28  ;;  %s1537_s11 = sshll.u32 %s2191_s29, 3  ;;  %vm525_vm3 = vcmask 31744   ;;  %v1707_v34 = vld [vmem:[%s2182_s5 + $0x8] sm:$0xff]   ;;  %v524_v39 = vld [vmem:[%s1938_s27 + $0x18] sm:$0xff] }
  0x1f   : > { %1669 = vmatprep.subr.msk.bf16.mxu0 %vm465_vm0, %v455_v9  ;;  %v467_v10 = vsel %vm465_vm0, %v455_v9, 0  ;;  %s419_s17 = scalar_lea.vmem %s2177_s0, %s1537_s11  ;;  %v518_v26 = vld [vmem:[%s2181_s4] sm:$0x3]  ;;  %v523_v40 = vld [vmem:[%s1938_s27 + $0x10] sm:$0xff]  ;;  %v522_v42 = vld [vmem:[%s1938_s27 + $0x8] sm:$0xff]  ;;  %vm610_vm4 = vcmask 261120   ;;  %688 = vrot.lane.b32.xlu1 %v1886_v8, %s1791_s18 }
  0x20   : > { %1614 = vmatpush3.bf16.msra.mxu0 %v467_v10  ;;  %v435_v11 = vld [vmem:[%s419_s17 + $0x10] sm:$0xff]  ;;  %v436_v12 = vld [vmem:[%s419_s17 + $0x18] sm:$0xff]  ;;  %v433_v13 = vld [vmem:[%s419_s17] sm:$0xff]  ;;  %1670 = vmatprep.subr.msk.bf16.mxu1 %vm532_vm2, %v518_v26  ;;  %v534_v27 = vsel %vm532_vm2, %v518_v26, 0  ;;  %s1793_s29 = smov 8   ;;  %vm1381_vm13 = vcmask 7168  }
  0x21   : > { %v434_v14 = vld [vmem:[%s419_s17 + $0x8] sm:$0xff]  ;;  %v446_v15 = vadd.f32 %v1886_v8, %v435_v11  ;;  %v447_v16 = vadd.f32 %v1886_v8, %v436_v12  ;;  %v444_v17 = vadd.f32 %v1886_v8, %v433_v13  ;;  %1620 = vmatpush3.bf16.msra.mxu1 %v534_v27  ;;  %1625 = vmatprep.subr.bf16.mxu0 %v1707_v34  ;;  %v1708_v35 = vld [vmem:[%s2182_s5] sm:$0xff]   ;;  %s2193_s12 = smov (!%p428_p9, %s1861_s12), 1 }
  0x22   : > { %v445_v18 = vadd.f32 %v1886_v8, %v434_v14  ;;  %607 = vrot.lane.b32.xlu0 %v1886_v8, %s1790_s24  ;;  %v521_v38 = vld [vmem:[%s1938_s27] sm:$0xff]  ;;  %v1709_v54 = vld [vmem:[%s2183_s6 + $0x8] sm:$0xff]   ;;  %s1540_s25 = sshll.u32 %s2193_s12, 3 }
  0x23   : > { %1633 = vmatprep.subr.bf16.mxu1 %v1709_v54  ;;  %v1710_v55 = vld [vmem:[%s2183_s6] sm:$0xff]   ;;  %s431_s15 = scalar_lea.vmem %s2186_s9, %s1540_s25 }
  0x90   : > { %v449_v19 = vpop.permute.xlu0 %448 }
  0x91   : > { %v453_v20 = vmul.f32 %v449_v19, %v446_v15  ;;  %v454_v21 = vmul.f32 %v449_v19, %v447_v16  ;;  %v451_v22 = vmul.f32 %v449_v19, %v444_v17  ;;  %v452_v23 = vmul.f32 %v449_v19, %v445_v18  ;;  %v689_v7 = vpop.permute.xlu1 %688 }
  0x93   : > { %v456_v24 = vpack.c.bf16 %v452_v23, %v451_v22  ;;  %v457_v25 = vpack.c.bf16 %v454_v21, %v453_v20  ;;  %v1556_v22 = vld [vmem:[%s2180_s3 + $0x4] sm:$0xf] }
  0x94   : > { %v608_v58 = vpop.permute.xlu0 %607  ;;  %v892_v23 = vsel %vm465_vm0, %v1556_v22, 0 }
  0x95   : > { %1615 = vmatprep.mubr.msk.bf16.mxu0 %vm458_vm1, %v456_v24 }
  0x96   : > { %1616 = vmatmul.mubr.msk.bf16.vlgmr.msra.gmra.mxu0 %vm458_vm1, %v457_v25 }
  0x97   : > { %1626 = vmatpush3.bf16.msra.mxu0 %v1707_v34 }
  0x98   : > { %1627 = vmatprep.subr.bf16.mxu0 %v1708_v35 }
  0x9b   : > { %1628 = vmatpush3.bf16.msra.mxu0 %v1708_v35 }
  0x9c   : > { %1671 = vmatprep.subr.msk.bf16.mxu0 %vm465_vm0, %v1556_v22 }
 0x156   : > { %v1915_v28 = vpop.f32.mrf.mxu0 }
 0x158   : > { %v1917_v29 = vpop.f32.mrf.mxu0 }
 0x15a   : > { %v1919_v30 = vpop.f32.mrf.mxu0 }
 0x15b   : > { %v520_v33 = vpack.c.bf16 %v1919_v30, %v1915_v28 }
 0x15c   : > { %v1921_v31 = vpop.f32.mrf.mxu0 }
 0x15d   : > { %v519_v32 = vpack.c.bf16 %v1921_v31, %v1917_v29 }
 0x15f   : > { %1621 = vmatprep.mubr.msk.bf16.mxu1 %vm525_vm3, %v519_v32  ;;  %v1978_v32 = vld [vmem:[%s2179_s2 + $0x1] ss:$0 sm:$0xff] }
 0x160   : > { %1622 = vmatmul.mubr.msk.bf16.vlgmr.msra.gmra.mxu1 %vm525_vm3, %v520_v33 }
 0x161   : > { %1634 = vmatpush3.bf16.msra.mxu1 %v1709_v54 }
 0x162   : > { %1635 = vmatprep.subr.bf16.mxu1 %v1710_v55 }
 0x165   : > { %1636 = vmatpush3.bf16.msra.mxu1 %v1710_v55 }
 0x220   : > { %v1623_v36 = vpop.f32.mrf.mxu1 }
 0x221   : > { %v579_v45 = vadd.f32 %v1623_v36, %v523_v40 }
 0x222   : > { %v570_v37 = vpop.f32.mrf.mxu1 }
 0x223   : > { %v571_v43 = vadd.f32 %v570_v37, %v521_v38  ;;  %v587_v51 = vmax.f32 %v579_v45, 0.0 }
 0x224   : > { %v1624_v41 = vpop.f32.mrf.mxu1 }
 0x225   : > { %v582_v44 = vadd.f32 %v1624_v41, %v524_v39  ;;  %v585_v49 = vmax.f32 %v571_v43, 0.0 }
 0x226   : > { %v573_v46 = vpop.f32.mrf.mxu1 }
 0x227   : > { %v574_v47 = vadd.f32 %v573_v46, %v522_v42  ;;  %v588_v48 = vmax.f32 %v582_v44, 0.0 }
 0x229   : > { %v586_v50 = vmax.f32 %v574_v47, 0.0  ;;  %v594_v53 = vpack.c.bf16 %v588_v48, %v587_v51 }
 0x22b   : > { %v593_v52 = vpack.c.bf16 %v586_v50, %v585_v49 }
 0x22d   : > { %1629 = vmatprep.mubr.msk.bf16.mxu0 %vm610_vm4, %v593_v52 }
 0x22e   : > { %1630 = vmatmul.mubr.msk.bf16.vlgmr.msra.gmra.mxu0 %vm610_vm4, %v594_v53 }
 0x22f   : > { %1642 = vmatpush3.bf16.msra.mxu0 %v892_v23 }
 0x2ee   : > { %v1631_v56 = vpop.f32.mrf.mxu0 }
 0x2ef   : > { %v660_v62 = vadd.f32 %v1631_v56, %v608_v58 }
 0x2f0   : > { %v651_v57 = vpop.f32.mrf.mxu0 }
 0x2f1   : > { %v652_v60 = vadd.f32 %v651_v57, %v608_v58  ;;  %v668_v4 = vmax.f32 %v660_v62, 0.0 }
 0x2f2   : > { %v1632_v59 = vpop.f32.mrf.mxu0 }
 0x2f3   : > { %v663_v61 = vadd.f32 %v1632_v59, %v608_v58  ;;  %v666_v2 = vmax.f32 %v652_v60, 0.0 }
 0x2f4   : > { %v654_v63 = vpop.f32.mrf.mxu0 }
 0x2f5   : > { %v655_v0 = vadd.f32 %v654_v63, %v608_v58  ;;  %v669_v1 = vmax.f32 %v663_v61, 0.0 }
 0x2f7   : > { %v667_v3 = vmax.f32 %v655_v0, 0.0  ;;  %v675_v6 = vpack.c.bf16 %v669_v1, %v668_v4 }
 0x2f9   : > { %v674_v5 = vpack.c.bf16 %v667_v3, %v666_v2 }
 0x2fb   : > { %1637 = vmatprep.mubr.msk.bf16.mxu1 %vm610_vm4, %v674_v5 }
 0x2fc   : > { %1638 = vmatmul.mubr.msk.bf16.vlgmr.msra.gmra.mxu1 %vm610_vm4, %v675_v6 }
 0x3bc   : > { %v1639_v8 = vpop.f32.mrf.mxu1 }
 0x3bd   : > { %v740_v9 = vadd.f32 %v1639_v8, %v689_v7 }
 0x3be   : > { %v731_v10 = vpop.f32.mrf.mxu1 }
 0x3bf   : > { %v1956_v11 = vadd.f32 2.0, %v740_v9  ;;  %v732_v12 = vadd.f32 %v731_v10, %v689_v7 }
 0x3c0   : > { %v1640_v13 = vpop.f32.mrf.mxu1 }
 0x3c1   : > { %v752_v14 = vand.u32 2147483647, %v1956_v11  ;;  %v1959_v15 = vadd.f32 2.0, %v732_v12  ;;  %v743_v16 = vadd.f32 %v1640_v13, %v689_v7  ;;  %806 = vrot.lane.b32.xlu1 %v732_v12, %s1792_s19  ;;  %v768_v48 = vmin.f32 %v1956_v11, 0.0 }
 0x3c2   : > { %v734_v17 = vpop.f32.mrf.mxu1  ;;  %vm792_vm6 = vcmp.ge.f32.partialorder %v1956_v11, 0.0 }
 0x3c3   : > { %v756_v18 = vsub.f32 0.0, %v752_v14  ;;  %v750_v19 = vand.u32 2147483647, %v1959_v15  ;;  %v1963_v20 = vadd.f32 2.0, %v743_v16  ;;  %v735_v21 = vadd.f32 %v734_v17, %v689_v7 }
 0x3c4   : > { %v766_v51 = vmin.f32 %v1959_v15, 0.0  ;;  %vm790_vm5 = vcmp.ge.f32.partialorder %v1959_v15, 0.0 }
 0x3c5   : > { %v762_v24 = vmul.f32 1.442695, %v756_v18  ;;  %v754_v25 = vsub.f32 0.0, %v750_v19  ;;  %v753_v26 = vand.u32 2147483647, %v1963_v20  ;;  %v1971_v27 = vadd.f32 2.0, %v735_v21  ;;  %808 = vrot.lane.b32.xlu0 %v735_v21, %s1792_s19  ;;  %810 = vrot.lane.b32.xlu1 %v740_v9, %s1792_s19 }
 0x3c6   : > { %v769_v56 = vmin.f32 %v1963_v20, 0.0  ;;  %vm793_vm8 = vcmp.ge.f32.partialorder %v1963_v20, 0.0 }
 0x3c7   : > { %1715 = vpow2.f32 %v762_v24  ;;  %v758_v33 = vmul.f32 1.442695, %v754_v25  ;;  %v757_v34 = vsub.f32 0.0, %v753_v26  ;;  %v751_v35 = vand.u32 2147483647, %v1971_v27 }
 0x3c8   : > { %v767_v59 = vmin.f32 %v1971_v27, 0.0  ;;  %vm791_vm7 = vcmp.ge.f32.partialorder %v1971_v27, 0.0 }
 0x3c9   : > { %1717 = vpow2.f32 %v758_v33  ;;  %v764_v36 = vmul.f32 1.442695, %v757_v34  ;;  %v755_v37 = vsub.f32 0.0, %v751_v35  ;;  %812 = vrot.lane.b32.xlu0 %v743_v16, %s1792_s19  ;;  %874 = vrot.lane.b32.xlu1 %v1978_v32, %s1789_s28 }
 0x3cb   : > { %1719 = vpow2.f32 %v764_v36  ;;  %v760_v38 = vmul.f32 1.442695, %v755_v37 }
 0x3cd   : > { %1721 = vpow2.f32 %v760_v38  ;;  %1033 = vrot.lane.b32.xlu0 %v1978_v32, %s1790_s24  ;;  %1114 = vrot.lane.b32.xlu1 %v1978_v32, %s1791_s18  ;;  %s2097_s24 = scalar_lea.vmem %s2185_s8, %s1537_s11  ;;  %s1794_s11 = smov 124  }
 0x3d4   : > { %v1716_v39 = vpop.eup %1715 }
 0x3d5   : > { %v772_v40 = vadd.f32 1.0, %v1716_v39 }
 0x3d6   : > { %v1718_v41 = vpop.eup %1717 }
 0x3d7   : > { %v770_v42 = vadd.f32 1.0, %v1718_v41  ;;  %1723 = vlog2.f32 %v772_v40 }
 0x3d8   : > { %v1720_v43 = vpop.eup %1719 }
 0x3d9   : > { %v773_v44 = vadd.f32 1.0, %v1720_v43  ;;  %1725 = vlog2.f32 %v770_v42 }
 0x3da   : > { %v1722_v45 = vpop.eup %1721 }
 0x3db   : > { %v771_v46 = vadd.f32 1.0, %v1722_v45  ;;  %1727 = vlog2.f32 %v773_v44 }
 0x3dd   : > { %1729 = vlog2.f32 %v771_v46 }
 0x3de   : > { %1731 = vrcp.f32 %v770_v42 }
 0x3df   : > { %1733 = vrcp.f32 %v772_v40  ;;  %v1559_v40 = vld [vmem:[%s2181_s4 + $0x2] sm:$0x3] }
 0x3e0   : > { %1735 = vrcp.f32 %v771_v46  ;;  %1672 = vmatprep.subr.msk.bf16.mxu1 %vm532_vm2, %v1559_v40  ;;  %v1711_v46 = vld [vmem:[%s2182_s5 + $0x18] sm:$0xff]  }
 0x3e1   : > { %1737 = vrcp.f32 %v773_v44  ;;  %1653 = vmatprep.subr.bf16.mxu0 %v1711_v46 }
 0x3e4   : > { %v1724_v47 = vpop.eup %1723 }
 0x3e5   : > { %v779_v49 = vmul.f32 0.6931472, %v1724_v47  ;;  %v1712_v47 = vld [vmem:[%s2182_s5 + $0x10] sm:$0xff]  }
 0x3e6   : > { %v1726_v50 = vpop.eup %1725 }
 0x3e7   : > { %v775_v52 = vmul.f32 0.6931472, %v1726_v50  ;;  %v1990_v53 = vsub.f32 %v768_v48, %v779_v49  ;;  %v1560_v50 = vld [vmem:[%s1938_s27 + $0x20] sm:$0xff] }
 0x3e8   : > { %v1728_v54 = vpop.eup %1727 }
 0x3e9   : > { %v1992_v55 = vsub.f32 %v766_v51, %v775_v52  ;;  %v781_v57 = vmul.f32 0.6931472, %v1728_v54  ;;  %v1563_v51 = vld [vmem:[%s1938_s27 + $0x38] sm:$0xff]  ;;  %v1562_v52 = vld [vmem:[%s1938_s27 + $0x30] sm:$0xff] }
 0x3ea   : > { %v1730_v58 = vpop.eup %1729 }
 0x3eb   : > { %v777_v60 = vmul.f32 0.6931472, %v1730_v58  ;;  %v1996_v61 = vsub.f32 %v769_v56, %v781_v57  ;;  %v1732_v63 = vpop.eup %1731  ;;  %v1561_v56 = vld [vmem:[%s1938_s27 + $0x28] sm:$0xff] }
 0x3ec   : > { %v1734_v0 = vpop.eup %1733  ;;  %v794_v1 = vmul.f32 %v1732_v63, %v1718_v41  ;;  %v959_v41 = vsel %vm532_vm2, %v1559_v40, 0 }
 0x3ed   : > { %v1998_v62 = vsub.f32 %v767_v59, %v777_v60  ;;  %v1736_v2 = vpop.eup %1735  ;;  %v796_v7 = vmul.f32 %v1734_v0, %v1716_v39  ;;  %1648 = vmatpush3.bf16.msra.mxu1 %v959_v41 }
 0x3ee   : > { %v798_v5 = vsel %vm790_vm5, %v1732_v63, %v794_v1  ;;  %v795_v6 = vmul.f32 %v1736_v2, %v1722_v45  ;;  %v1738_v8 = vpop.eup %1737 }
 0x3ef   : > { %v800_v17 = vsel %vm792_vm6, %v1734_v0, %v796_v7  ;;  %v797_v18 = vmul.f32 %v1738_v8, %v1720_v43  ;;  %v1714_v7 = vld [vmem:[%s2183_s6 + $0x10] sm:$0xff]  }
 0x3f0   : > { %v799_v16 = vsel %vm791_vm7, %v1736_v2, %v795_v6  ;;  %v1713_v6 = vld [vmem:[%s2183_s6 + $0x18] sm:$0xff]  }
 0x3f1   : > { %v801_v26 = vsel %vm793_vm8, %v1738_v8, %v797_v18  ;;  %1661 = vmatprep.subr.bf16.mxu1 %v1713_v6 }
 0x433   : > { %v807_v3 = vpop.permute.xlu1 %806 }
 0x434   : > { %v818_v4 = vadd.f32 %v807_v3, %v1917_v29 }
 0x436   : > { %v822_v9 = vmul.f32 %v818_v4, %v798_v5 }
 0x437   : > { %v809_v10 = vpop.permute.xlu0 %808  ;;  %v811_v12 = vpop.permute.xlu1 %810 }
 0x438   : > { %v858_v13 = vsel %vm525_vm3, %v1917_v29, %v822_v9  ;;  %v819_v14 = vadd.f32 %v809_v10, %v1921_v31  ;;  %v820_v15 = vadd.f32 %v1915_v28, %v811_v12 }
 0x439   : > { %v870_v23 = vadd.f32 %v1978_v32, %v858_v13 }
 0x43a   : > { %v823_v19 = vmul.f32 %v819_v14, %v799_v16  ;;  %v824_v21 = vmul.f32 %v820_v15, %v800_v17 }
 0x43b   : > { %v813_v22 = vpop.permute.xlu0 %812  ;;  %v875_v25 = vpop.permute.xlu1 %874 }
 0x43c   : > { %v859_v11 = vsel %vm525_vm3, %v1921_v31, %v823_v19  ;;  %v860_v29 = vsel %vm525_vm3, %v1915_v28, %v824_v21  ;;  %v821_v24 = vadd.f32 %v1919_v30, %v813_v22  ;;  %v877_v35 = vmul.f32 %v875_v25, %v870_v23 }
 0x43d   : > { %v871_v27 = vadd.f32 %v1978_v32, %v859_v11  ;;  %v872_v34 = vadd.f32 %v1978_v32, %v860_v29 }
 0x43e   : > { %v825_v33 = vmul.f32 %v821_v24, %v801_v26  ;;  %v2064_v24 = vld [vmem:[%s2184_s7] sm:$0x1] }
 0x43f   : > { %v878_v36 = vmul.f32 %v875_v25, %v871_v27  ;;  %v879_v28 = vmul.f32 %v875_v25, %v872_v34  ;;  %v1034_v10 = vpop.permute.xlu0 %1033  ;;  %v1338_v27 = vmul.f32 -2.0, %v2064_v24  ;;  %v1303_v41 = vsub.f32 1.837877, %v2064_v24 }
 0x440   : > { %v861_v37 = vsel %vm525_vm3, %v1919_v30, %v825_v33 }
 0x441   : > { %v873_v31 = vadd.f32 %v1978_v32, %v861_v37  ;;  %v883_v38 = vpack.c.bf16 %v878_v36, %v877_v35  ;;  %v1339_v35 = vmul.f32 1.442695, %v1338_v27 }
 0x443   : > { %v880_v39 = vmul.f32 %v875_v25, %v873_v31  ;;  %1643 = vmatprep.mubr.msk.bf16.mxu0 %vm458_vm1, %v883_v38  ;;  %v1115_v25 = vpop.permute.xlu1 %1114  ;;  %1739 = vpow2.f32 %v1339_v35 }
 0x445   : > { %v884_v20 = vpack.c.bf16 %v880_v39, %v879_v28  ;;  %v1294_v28 = vlaneseq }
 0x447   : > { %1644 = vmatmul.mubr.msk.bf16.vlgmr.msra.gmra.mxu0 %vm458_vm1, %v884_v20  ;;  %v1295_v39 = vshrl.u32 %v1294_v28, 7 }
 0x448   : > { %1654 = vmatpush3.bf16.msra.mxu0 %v1711_v46 }
 0x449   : > { %1655 = vmatprep.subr.bf16.mxu0 %v1712_v47  ;;  %v1296_v40 = vsub.s32 0, %v1295_v39 }
 0x44c   : > { %1656 = vmatpush3.bf16.msra.mxu0 %v1712_v47 }
 0x450   : > { %v1740_v20 = vpop.eup %1739 }
 0x507   : > { %v2027_v30 = vpop.f32.mrf.mxu0 }
 0x509   : > { %v2029_v32 = vpop.f32.mrf.mxu0 }
 0x50b   : > { %v2031_v42 = vpop.f32.mrf.mxu0 }
 0x50c   : > { %v946_v45 = vpack.c.bf16 %v2031_v42, %v2027_v30 }
 0x50d   : > { %v2033_v43 = vpop.f32.mrf.mxu0 }
 0x50e   : > { %v945_v44 = vpack.c.bf16 %v2033_v43, %v2029_v32 }
 0x510   : > { %1649 = vmatprep.mubr.msk.bf16.mxu1 %vm525_vm3, %v945_v44  ;;  %v2073_v44 = vrot.slane %v1740_v20, %v1296_v40 }
 0x511   : > { %1650 = vmatmul.mubr.msk.bf16.vlgmr.msra.gmra.mxu1 %vm525_vm3, %v946_v45  ;;  %v2075_v45 = vrot.slane %v1303_v41, %v1296_v40 }
 0x512   : > { %1662 = vmatpush3.bf16.msra.mxu1 %v1713_v6 }
 0x513   : > { %1663 = vmatprep.subr.bf16.mxu1 %v1714_v7 }
 0x516   : > { %1664 = vmatpush3.bf16.msra.mxu1 %v1714_v7 }
 0x5d1   : > { %v1651_v48 = vpop.f32.mrf.mxu1 }
 0x5d2   : > { %v1004_v59 = vadd.f32 %v1651_v48, %v1562_v52 }
 0x5d3   : > { %v995_v49 = vpop.f32.mrf.mxu1 }
 0x5d4   : > { %v996_v57 = vadd.f32 %v1560_v50, %v995_v49  ;;  %v1012_v3 = vmax.f32 %v1004_v59, 0.0 }
 0x5d5   : > { %v1652_v54 = vpop.f32.mrf.mxu1 }
 0x5d6   : > { %v1007_v58 = vadd.f32 %v1652_v54, %v1563_v51  ;;  %v1010_v1 = vmax.f32 %v996_v57, 0.0 }
 0x5d7   : > { %v998_v60 = vpop.f32.mrf.mxu1 }
 0x5d8   : > { %v999_v63 = vadd.f32 %v1561_v56, %v998_v60  ;;  %v1013_v0 = vmax.f32 %v1007_v58, 0.0 }
 0x5da   : > { %v1011_v2 = vmax.f32 %v999_v63, 0.0  ;;  %v1020_v5 = vpack.c.bf16 %v1013_v0, %v1012_v3 }
 0x5dc   : > { %v1019_v4 = vpack.c.bf16 %v1011_v2, %v1010_v1 }
 0x5de   : > { %1657 = vmatprep.mubr.msk.bf16.mxu0 %vm610_vm4, %v1019_v4 }
 0x5df   : > { %1658 = vmatmul.mubr.msk.bf16.vlgmr.msra.gmra.mxu0 %vm610_vm4, %v1020_v5 }
 0x69f   : > { %v1659_v8 = vpop.f32.mrf.mxu0 }
 0x6a0   : > { %v1085_v15 = vadd.f32 %v1659_v8, %v1034_v10 }
 0x6a1   : > { %v1076_v9 = vpop.f32.mrf.mxu0 }
 0x6a2   : > { %v1077_v13 = vadd.f32 %v1076_v9, %v1034_v10  ;;  %v1093_v22 = vmax.f32 %v1085_v15, 0.0 }
 0x6a3   : > { %v1660_v12 = vpop.f32.mrf.mxu0 }
 0x6a4   : > { %v1088_v14 = vadd.f32 %v1660_v12, %v1034_v10  ;;  %v1091_v19 = vmax.f32 %v1077_v13, 0.0 }
 0x6a5   : > { %v1079_v16 = vpop.f32.mrf.mxu0 }
 0x6a6   : > { %v1080_v17 = vadd.f32 %v1079_v16, %v1034_v10  ;;  %v1094_v18 = vmax.f32 %v1088_v14, 0.0 }
 0x6a8   : > { %v1092_v21 = vmax.f32 %v1080_v17, 0.0  ;;  %v1101_v11 = vpack.c.bf16 %v1094_v18, %v1093_v22 }
 0x6aa   : > { %v1100_v23 = vpack.c.bf16 %v1092_v21, %v1091_v19  ;;  %v1297_v21 = vrot.slane %v2064_v24, %v1296_v40 }
 0x6ac   : > { %1665 = vmatprep.mubr.msk.bf16.mxu1 %vm610_vm4, %v1100_v23 }
 0x6ad   : > { %1666 = vmatmul.mubr.msk.bf16.vlgmr.msra.gmra.mxu1 %vm610_vm4, %v1101_v11 }
 0x76d   : > { %v1667_v29 = vpop.f32.mrf.mxu1 }
 0x76e   : > { %v1166_v37 = vadd.f32 %v1667_v29, %v1115_v25 }
 0x76f   : > { %v1157_v26 = vpop.f32.mrf.mxu1 }
 0x770   : > { %v1158_v33 = vadd.f32 %v1157_v26, %v1115_v25  ;;  %v2079_v47 = vadd.f32 2.0, %v1166_v37 }
 0x771   : > { %v1668_v34 = vpop.f32.mrf.mxu1 }
 0x772   : > { %1232 = vrot.lane.b32.xlu0 %v1158_v33, %s1792_s19  ;;  %v1169_v38 = vadd.f32 %v1668_v34, %v1115_v25  ;;  %v2077_v46 = vadd.f32 2.0, %v1158_v33  ;;  %v1178_v50 = vand.u32 2147483647, %v2079_v47  ;;  %vm1218_vm10 = vcmp.ge.f32.partialorder %v2079_v47, 0.0 }
 0x773   : > { %v1160_v36 = vpop.f32.mrf.mxu1 }
 0x774   : > { %v1161_v31 = vadd.f32 %v1160_v36, %v1115_v25  ;;  %v1176_v48 = vand.u32 2147483647, %v2077_v46  ;;  %v2085_v52 = vadd.f32 2.0, %v1169_v38  ;;  %v1182_v56 = vsub.f32 0.0, %v1178_v50 }
 0x775   : > { %vm1216_vm9 = vcmp.ge.f32.partialorder %v2077_v46, 0.0 }
 0x776   : > { %1234 = vrot.lane.b32.xlu1 %v1161_v31, %s1792_s19  ;;  %1236 = vrot.lane.b32.xlu0 %v1166_v37, %s1792_s19  ;;  %v2082_v49 = vadd.f32 2.0, %v1161_v31  ;;  %v1180_v51 = vsub.f32 0.0, %v1176_v48  ;;  %v1179_v58 = vand.u32 2147483647, %v2085_v52  ;;  %v1188_v60 = vmul.f32 1.442695, %v1182_v56 }
 0x777   : > { %vm1219_vm12 = vcmp.ge.f32.partialorder %v2085_v52, 0.0 }
 0x778   : > { %v1177_v54 = vand.u32 2147483647, %v2082_v49  ;;  %v1184_v57 = vmul.f32 1.442695, %v1180_v51  ;;  %v1183_v63 = vsub.f32 0.0, %v1179_v58  ;;  %vm1217_vm11 = vcmp.ge.f32.partialorder %v2082_v49, 0.0 }
 0x77a   : > { %1238 = vrot.lane.b32.xlu1 %v1169_v38, %s1792_s19  ;;  %v1181_v59 = vsub.f32 0.0, %v1177_v54  ;;  %1741 = vpow2.f32 %v1184_v57  ;;  %v1190_v1 = vmul.f32 1.442695, %v1183_v63 }
 0x77b   : > { %1743 = vpow2.f32 %v1188_v60  ;;  %v1192_v60 = vmin.f32 %v2077_v46, 0.0  ;;  %v1195_v46 = vmin.f32 %v2085_v52, 0.0 }
 0x77c   : > { %v1186_v0 = vmul.f32 1.442695, %v1181_v59 }
 0x77e   : > { %1745 = vpow2.f32 %v1186_v0 }
 0x77f   : > { %1747 = vpow2.f32 %v1190_v1 }
 0x787   : > { %v1742_v2 = vpop.eup %1741 }
 0x788   : > { %v1744_v3 = vpop.eup %1743  ;;  %v1196_v4 = vadd.f32 1.0, %v1742_v2 }
 0x789   : > { %v1198_v6 = vadd.f32 1.0, %v1744_v3 }
 0x78a   : > { %1749 = vrcp.f32 %v1196_v4 }
 0x78b   : > { %v1746_v5 = vpop.eup %1745  ;;  %1751 = vrcp.f32 %v1198_v6 }
 0x78c   : > { %v1197_v7 = vadd.f32 1.0, %v1746_v5  ;;  %v1748_v8 = vpop.eup %1747 }
 0x78d   : > { %v1199_v9 = vadd.f32 1.0, %v1748_v8 }
 0x78e   : > { %1753 = vrcp.f32 %v1197_v7 }
 0x78f   : > { %1755 = vrcp.f32 %v1199_v9 }
 0x790   : > { %1757 = vlog2.f32 %v1196_v4 }
 0x791   : > { %1759 = vlog2.f32 %v1197_v7 }
 0x792   : > { %1761 = vlog2.f32 %v1198_v6 }
 0x793   : > { %1763 = vlog2.f32 %v1199_v9 }
 0x797   : > { %v1750_v10 = vpop.eup %1749 }
 0x798   : > { %v1752_v12 = vpop.eup %1751  ;;  %v1220_v13 = vmul.f32 %v1750_v10, %v1742_v2 }
 0x799   : > { %v1222_v19 = vmul.f32 %v1752_v12, %v1744_v3 }
 0x79a   : > { %v1224_v17 = vsel %vm1216_vm9, %v1750_v10, %v1220_v13 }
 0x79b   : > { %v1754_v14 = vpop.eup %1753  ;;  %v1226_v33 = vsel %vm1218_vm10, %v1752_v12, %v1222_v19 }
 0x79c   : > { %v1221_v18 = vmul.f32 %v1754_v14, %v1746_v5  ;;  %v1756_v22 = vpop.eup %1755  ;;  %v1194_v5 = vmin.f32 %v2079_v47, 0.0 }
 0x79d   : > { %v1223_v34 = vmul.f32 %v1756_v22, %v1748_v8  ;;  %v1758_v56 = vpop.eup %1757 }
 0x79e   : > { %v1225_v27 = vsel %vm1217_vm11, %v1754_v14, %v1221_v18  ;;  %v1201_v58 = vmul.f32 0.6931472, %v1758_v56  ;;  %v1760_v59 = vpop.eup %1759 }
 0x79f   : > { %v1227_v40 = vsel %vm1219_vm12, %v1756_v22, %v1223_v34  ;;  %v1203_v0 = vmul.f32 0.6931472, %v1760_v59  ;;  %v1762_v1 = vpop.eup %1761 }
 0x7a0   : > { %v1208_v63 = vsub.f32 %v1192_v60, %v1201_v58  ;;  %v1205_v3 = vmul.f32 0.6931472, %v1762_v1  ;;  %v1764_v4 = vpop.eup %1763 }
 0x7a2   : > { %v1210_v6 = vsub.f32 %v1194_v5, %v1205_v3 }
 0x7e4   : > { %v1233_v15 = vpop.permute.xlu0 %1232 }
 0x7e5   : > { %v1244_v16 = vadd.f32 %v1233_v15, %v2029_v32 }
 0x7e7   : > { %v1248_v23 = vmul.f32 %v1244_v16, %v1224_v17 }
 0x7e8   : > { %v1235_v11 = vpop.permute.xlu1 %1234  ;;  %v1237_v29 = vpop.permute.xlu0 %1236 }
 0x7e9   : > { %v1245_v25 = vadd.f32 %v1235_v11, %v2033_v43  ;;  %v1246_v24 = vadd.f32 %v2027_v30, %v1237_v29  ;;  %v1284_v26 = vsel %vm525_vm3, %v2029_v32, %v1248_v23 }
 0x7ea   : > { %v1299_v35 = vsub.f32 %v1284_v26, %v1297_v21  ;;  %1288 = vst.msk [vmem:[%s2097_s24] sm:$0xff] %vm458_vm1, %v1284_v26 }
 0x7eb   : > { %v1249_v36 = vmul.f32 %v1245_v25, %v1225_v27  ;;  %v1250_v37 = vmul.f32 %v1246_v24, %v1226_v33 }
 0x7ec   : > { %v1239_v31 = vpop.permute.xlu1 %1238  ;;  %v1304_v38 = vmul.f32 %v1299_v35, %v1299_v35 }
 0x7ed   : > { %v1247_v39 = vadd.f32 %v2031_v42, %v1239_v31  ;;  %v1285_v32 = vsel %vm525_vm3, %v2033_v43, %v1249_v36  ;;  %v1286_v20 = vsel %vm525_vm3, %v2027_v30, %v1250_v37 }
 0x7ee   : > { %1318 = vrot.lane.b32.xlu0 %v1304_v38, %s1793_s29  ;;  %v1300_v41 = vsub.f32 %v1285_v32, %v1297_v21  ;;  %1289 = vst.msk [vmem:[%s2097_s24 + $0x8] sm:$0xff] %vm458_vm1, %v1285_v32  ;;  %v1301_v48 = vsub.f32 %v1286_v20, %v1297_v21  ;;  %1290 = vst.msk [vmem:[%s2097_s24 + $0x10] sm:$0xff] %vm458_vm1, %v1286_v20 }
 0x7ef   : > { %v1251_v50 = vmul.f32 %v1247_v39, %v1227_v40 }
 0x7f0   : > { %v1305_v51 = vmul.f32 %v1300_v41, %v1300_v41  ;;  %v1306_v54 = vmul.f32 %v1301_v48, %v1301_v48 }
 0x7f1   : > { %v1287_v43 = vsel %vm525_vm3, %v2031_v42, %v1251_v50  ;;  %v1193_v42 = vmin.f32 %v2082_v49, 0.0 }
 0x7f2   : > { %1320 = vrot.lane.b32.xlu1 %v1305_v51, %s1793_s29  ;;  %1322 = vrot.lane.b32.xlu0 %v1306_v54, %s1793_s29  ;;  %v1302_v30 = vsub.f32 %v1287_v43, %v1297_v21  ;;  %1291 = vst.msk [vmem:[%s2097_s24 + $0x18] sm:$0xff] %vm458_vm1, %v1287_v43 }
 0x7f3   : > { %v1209_v2 = vsub.f32 %v1193_v42, %v1203_v0 }
 0x7f4   : > { %v1307_v57 = vmul.f32 %v1302_v30, %v1302_v30 }
 0x7f6   : > { %1324 = vrot.lane.b32.xlu1 %v1307_v57, %s1793_s29  ;;  %830 = vrot.lane.b32.xlu0 %v1992_v55, %s1794_s11  ;;  %v1207_v55 = vmul.f32 0.6931472, %v1764_v4 }
 0x7f8   : > { %v1211_v7 = vsub.f32 %v1195_v46, %v1207_v55 }
 0x7fa   : > { %832 = vrot.lane.b32.xlu1 %v1998_v62, %s1794_s11  ;;  %1256 = vrot.lane.b32.xlu0 %v1208_v63, %s1794_s11 }
 0x7fe   : > { %1258 = vrot.lane.b32.xlu1 %v1209_v2, %s1794_s11  ;;  %834 = vrot.lane.b32.xlu0 %v1990_v53, %s1794_s11 }
 0x802   : > { %1260 = vrot.lane.b32.xlu1 %v1210_v6, %s1794_s11  ;;  %836 = vrot.lane.b32.xlu0 %v1996_v61, %s1794_s11 }
 0x806   : > { %1262 = vrot.lane.b32.xlu1 %v1211_v7, %s1794_s11 }
 0x860   : > { %v1319_v62 = vpop.permute.xlu0 %1318 }
 0x861   : > { %v1330_v49 = vadd.f32 %v1319_v62, %v2075_v45 }
 0x863   : > { %v1334_v8 = vmul.f32 -0.5, %v1330_v49 }
 0x864   : > { %v1321_v9 = vpop.permute.xlu1 %1320  ;;  %v1323_v10 = vpop.permute.xlu0 %1322 }
 0x865   : > { %v1347_v12 = vmul.f32 %v2073_v44, %v1334_v8  ;;  %v1331_v53 = vadd.f32 %v1321_v9, %v2075_v45  ;;  %v1332_v47 = vadd.f32 %v1323_v10, %v2075_v45 }
 0x867   : > { %v1335_v13 = vmul.f32 -0.5, %v1331_v53  ;;  %v1336_v14 = vmul.f32 -0.5, %v1332_v47  ;;  %1355 = vrot.lane.b32.xlu0 %v1347_v12, %s1789_s28 }
 0x868   : > { %v1325_v61 = vpop.permute.xlu1 %1324  ;;  %v831_v19 = vpop.permute.xlu0 %830 }
 0x869   : > { %v1348_v52 = vmul.f32 %v2073_v44, %v1335_v13  ;;  %v1349_v15 = vmul.f32 %v2073_v44, %v1336_v14  ;;  %v1333_v16 = vadd.f32 %v1325_v61, %v2075_v45  ;;  %v842_v22 = vsel %vm525_vm3, %v831_v19, 0.0 }
 0x86b   : > { %v1337_v17 = vmul.f32 -0.5, %v1333_v16  ;;  %1357 = vrot.lane.b32.xlu1 %v1348_v52, %s1789_s28  ;;  %1359 = vrot.lane.b32.xlu0 %v1349_v15, %s1789_s28 }
 0x86c   : > { %v833_v21 = vpop.permute.xlu1 %832  ;;  %v1257_v23 = vpop.permute.xlu0 %1256 }
 0x86d   : > { %v1350_v18 = vmul.f32 %v2073_v44, %v1337_v17  ;;  %v1268_v29 = vsel %vm525_vm3, %v1257_v23, 0.0  ;;  %v845_v26 = vsel %vm525_vm3, %v833_v21, 0.0 }
 0x86f   : > { %1361 = vrot.lane.b32.xlu1 %v1350_v18, %s1789_s28 }
 0x870   : > { %v1259_v11 = vpop.permute.xlu1 %1258  ;;  %v835_v25 = vpop.permute.xlu0 %834 }
 0x871   : > { %v1271_v24 = vsel %vm525_vm3, %v1259_v11, 0.0  ;;  %v848_v33 = vsel %vm525_vm3, %v835_v25, 0.0 }
 0x874   : > { %v1261_v45 = vpop.permute.xlu1 %1260  ;;  %v837_v34 = vpop.permute.xlu0 %836 }
 0x875   : > { %v1274_v44 = vsel %vm525_vm3, %v1261_v45, 0.0  ;;  %v851_v36 = vsel %vm525_vm3, %v837_v34, 0.0 }
 0x878   : > { %v1263_v27 = vpop.permute.xlu1 %1262 }
 0x879   : > { %v1277_v35 = vsel %vm525_vm3, %v1263_v27, 0.0 }
 0x88a   : > { %843 = vadd.xlane.f32.xlu0 %v842_v22 }
 0x88e   : > { %1269 = vadd.xlane.f32.xlu0 %v1268_v29  ;;  %v1380_v29 = vand.u32 127, %v1294_v28 }
 0x890   : > { %vm1414_vm14 = vcmp.eq.s32.totalorder %v1380_v29, 0  ;;  %vm1417_vm15 = vcmp.eq.s32.totalorder %v1380_v29, 1 }
 0x892   : > { %1272 = vadd.xlane.f32.xlu0 %v1271_v24 }
 0x893   : > { %846 = vadd.xlane.f32.xlu1 %v845_v26 }
 0x896   : > { %1275 = vadd.xlane.f32.xlu0 %v1274_v44 }
 0x897   : > { %849 = vadd.xlane.f32.xlu1 %v848_v33 }
 0x89a   : > { %1278 = vadd.xlane.f32.xlu0 %v1277_v35 }
 0x89b   : > { %852 = vadd.xlane.f32.xlu1 %v851_v36 }
 0x8d9   : > { %v1356_v37 = vpop.permute.xlu0 %1355 }
 0x8da   : > { %v1367_v31 = vsel %vm458_vm1, %v1356_v37, 0.0 }
 0x8db   : > { %1368 = vadd.xlane.f32.xlu1 %v1367_v31 }
 0x8dd   : > { %v1358_v38 = vpop.permute.xlu1 %1357  ;;  %v1360_v39 = vpop.permute.xlu0 %1359 }
 0x8de   : > { %v1370_v32 = vsel %vm458_vm1, %v1358_v38, 0.0  ;;  %v1373_v20 = vsel %vm458_vm1, %v1360_v39, 0.0 }
 0x8df   : > { %1371 = vadd.xlane.f32.xlu0 %v1370_v32  ;;  %1374 = vadd.xlane.f32.xlu1 %v1373_v20 }
 0x8e1   : > { %v1362_v40 = vpop.permute.xlu1 %1361 }
 0x8e2   : > { %v1376_v41 = vsel %vm458_vm1, %v1362_v40, 0.0 }
 0x8e3   : > { %1377 = vadd.xlane.f32.xlu0 %v1376_v41 }
 0x913   : > { %v844_v48 = vpop.xlane.xlu0 %843 }
 0x917   : > { %v1270_v50 = vpop.xlane.xlu0 %1269 }
 0x918   : > { %v1280_v43 = vadd.f32 %v1270_v50, %v844_v48 }
 0x91a   : > { %v1382_v60 = vsel %vm1381_vm13, %v1280_v43, 0.0 }
 0x91b   : > { %v1273_v51 = vpop.xlane.xlu0 %1272 }
 0x91c   : > { %v847_v54 = vpop.xlane.xlu1 %846 }
 0x91d   : > { %v1281_v56 = vadd.f32 %v1273_v51, %v847_v54 }
 0x91f   : > { %v1276_v30 = vpop.xlane.xlu0 %1275  ;;  %v1383_v58 = vsel %vm1381_vm13, %v1281_v56, 0.0 }
 0x920   : > { %v850_v57 = vpop.xlane.xlu1 %849  ;;  %v1384_v1 = vadd.f32 %v1383_v58, %v1382_v60 }
 0x921   : > { %v1282_v59 = vadd.f32 %v1276_v30, %v850_v57 }
 0x923   : > { %v1385_v63 = vsel %vm1381_vm13, %v1282_v59, 0.0  ;;  %v1279_v0 = vpop.xlane.xlu0 %1278 }
 0x924   : > { %v853_v42 = vpop.xlane.xlu1 %852  ;;  %v1386_v3 = vadd.f32 %v1385_v63, %v1384_v1 }
 0x925   : > { %v1283_v2 = vadd.f32 %v1279_v0, %v853_v42 }
 0x927   : > { %v1387_v4 = vsel %vm1381_vm13, %v1283_v2, 0.0 }
 0x928   : > { %v1388_v5 = vadd.f32 %v1387_v4, %v1386_v3 }
 0x92a   : > { %1389 = vadd.xlane.f32.xlu1 %v1388_v5 }
 0x964   : > { %v1369_v6 = vpop.xlane.xlu1 %1368 }
 0x965   : > { %v1398_v7 = vsel %vm1381_vm13, %v1369_v6, 0.0 }
 0x968   : > { %v1375_v55 = vpop.xlane.xlu1 %1374  ;;  %v1372_v46 = vpop.xlane.xlu0 %1371 }
 0x969   : > { %v1399_v62 = vsel %vm1381_vm13, %v1372_v46, 0.0  ;;  %v1401_v8 = vsel %vm1381_vm13, %v1375_v55, 0.0 }
 0x96a   : > { %v1400_v49 = vadd.f32 %v1399_v62, %v1398_v7 }
 0x96c   : > { %v1378_v9 = vpop.xlane.xlu0 %1377  ;;  %v1402_v10 = vadd.f32 %v1401_v8, %v1400_v49 }
 0x96d   : > { %v1403_v12 = vsel %vm1381_vm13, %v1378_v9, 0.0 }
 0x96e   : > { %v1404_v53 = vadd.f32 %v1403_v12, %v1402_v10 }
 0x970   : > { %1405 = vadd.xlane.f32.xlu0 %v1404_v53 }
 0x9b3   : > { %v1390_v47 = vpop.xlane.xlu1 %1389 }
 0x9b4   : > { %v1391_v13 = vrot.slane %v1390_v47, 4 }
 0x9b6   : > { %v1392_v14 = vadd.f32 %v1391_v13, %v1390_v47 }
 0x9b8   : > { %v1393_v61 = vrot.slane %v1392_v14, 2 }
 0x9ba   : > { %v1394_v52 = vadd.f32 %v1393_v61, %v1392_v14 }
 0x9bc   : > { %v1395_v15 = vrot.slane %v1394_v52, 1 }
 0x9be   : > { %v1396_v16 = vadd.f32 %v1395_v15, %v1394_v52 }
 0x9c0   : > { %1673 = vpush %v1396_v16 }
 0x9f1   : > { %s1674_s28 = spop %1673 }
 0x9f2   : > { %v1415_v45 = vstv %s1674_s28 }
 0x9f3   : > { %v1416_v24 = vsel %vm1414_vm14, %v1415_v45, 0.0 }
 0x9f9   : > { %v1406_v17 = vpop.xlane.xlu0 %1405 }
 0x9fa   : > { %v1407_v18 = vrot.slane %v1406_v17, 4 }
 0x9fc   : > { %v1408_v19 = vadd.f32 %v1407_v18, %v1406_v17 }
 0x9fe   : > { %v1409_v21 = vrot.slane %v1408_v19, 2 }
 0xa00   : > { %v1410_v22 = vadd.f32 %v1409_v21, %v1408_v19 }
 0xa02   : > { %v1411_v23 = vrot.slane %v1410_v22, 1 }
 0xa04   : > { %v1412_v11 = vadd.f32 %v1411_v23, %v1410_v22 }
 0xa06   : > { %1675 = vpush %v1412_v11 }
 0xa37   : > { %s1676_s26 = spop %1675 }
 0xa38   : > { %v1418_v25 = vstv %s1676_s26 }
 0xa39   : > { %v1419_v26 = vsel %vm1417_vm15, %v1418_v25, 0.0 }
 0xa3a   : > { %v1420_v44 = vadd.f32 %v1419_v26, %v1416_v24 }
 0xa3c   : > { %1421 = vst [vmem:[%s431_s15] sm:$0xff] %v1420_v44 }
 0xa3d PF: > { %p17_p10 = scmp.ge.s32.totalorder %s1864_s13, 4   ;;  %s2187_s30 = smov %s1783_s10 }
 0xa3e   : > { %s2188_s10 = smov %s1873_s16  ;;  %s2189_s11 = smov %s1864_s13 }
 0xa3f   :  { %19 = sbr.rel (!%p17_p10) target bundleno = 2 (0x2), region = 146 }

// kernel: glow_forward.2
= control target key start
LH: loop header
LB: loop body
LE: loop exit
PB: predicated region body
PF: predicated region fallthrough
CT: control target
= control target key end

     0   :  { %s3710_s17 = smov 0   ;;  %s3712_s18 = smov 0   ;;  %s5073_s0 = inlined_call_operand.vmem [shape: f32[128,8], index: 0, kind: input, shape index: {}]   ;;  %s5074_s1 = inlined_call_operand.vmem [shape: f32[2,128,32], index: 1, kind: input, shape index: {}]   ;;  %s5075_s2 = inlined_call_operand.vmem [shape: f32[2,1,56], index: 2, kind: input, shape index: {}]   ;;  %s5076_s3 = inlined_call_operand.vmem [shape: bf16[2,8,8], index: 3, kind: input, shape index: {}]   ;;  %s5077_s4 = inlined_call_operand.vmem [shape: bf16[2,4,32], index: 4, kind: input, shape index: {}]   ;;  %s5078_s5 = inlined_call_operand.vmem [shape: bf16[2,32,32], index: 5, kind: input, shape index: {}]   ;;  %s5079_s6 = inlined_call_operand.vmem [shape: bf16[2,32,8], index: 6, kind: input, shape index: {}]   ;;  %s5080_s7 = inlined_call_operand.vmem [shape: f32[64,9], index: 7, kind: input, shape index: {}]   ;;  %s5081_s8 = inlined_call_operand.vmem [shape: bf16[36,8], index: 8, kind: input, shape index: {}]   ;;  %s5082_s9 = inlined_call_operand.vmem [shape: f32[1,16], index: 9, kind: input, shape index: {}]   ;;  %s5083_s10 = inlined_call_operand.vmem [shape: f32[128,8], index: 10, kind: output, shape index: {0}]   ;;  %s5084_s11 = inlined_call_operand.vmem [shape: f32[2,8,128], index: 11, kind: output, shape index: {1}]  }
   0x1   :  { %s3714_s19 = smov 0  }
   0x2 LB: > { %s3726_s20 = sadd.s32 4294967295, %s3628_s19   ;;  %s3729_s21 = sadd.s32 1, %s3628_s19   ;;  %s3628_s19 = sphi %s3714_s19, %s5193_s19   ;;  %s3624_s18 = sphi %s3712_s18, %s5192_s18   ;;  %s3620_s17 = sphi %s3710_s17, %s5191_s17  }
   0x3   : > { %s52_s22 = ssub.s32 %s3628_s19, %s3729_s21  ;;  %s55_s23 = sadd.s32 1, %s3624_s18 }
   0x4   : > { %p53_p0 = scmp.eq.s32.totalorder %s52_s22, 0  ;;  %p62_p1 = scmp.ne.s32.totalorder %s3624_s18, %s3620_s17 }
   0x5   : > { %p63_p2 = scmp.eq.s32.totalorder %s3628_s19, 0  ;;  %p3005_p4 = scmp.ge.s32.totalorder %s3628_s19, 2 }
   0x6   : > { %s3738_s24 = scalar_select %p53_p0, %s3624_s18, %s55_s23  }
   0x7   : > { %p64_p3 = por %p63_p2, %p62_p1  ;;  %332 = sbr.rel (%p3005_p4) target bundleno = 24 (0x18), region = 48 }
   0xc   : > { %344 = sbr.rel (!%p64_p3) target bundleno = 24 (0x18), region = 56  ;;  %s346_s25 = sand.u32 (%p64_p3), 1, %s3624_s18  }
   0xd   : > { %s3087_s26 = sshll.u32 (%p64_p3), %s3628_s19, 6  ;;  %s3006_s27 = sshll.u32 (%p64_p3), %s346_s25, 7 }
   0xe   : > { %s3746_s30 = scalar_lea.vmem (%p64_p3), %s5074_s1, %s3087_s26  ;;  %s348_s12 = scalar_lea.vmem (%p64_p3), [#allocation2], %s3006_s27 }
   0xf   : > { %v410_v0 = vld [vmem:[%s3746_s30] sm:$0xff] (%p64_p3)  ;;  %v412_v1 = vld [vmem:[%s3746_s30 + $0x8] sm:$0xff] (%p64_p3)  ;;  %v414_v2 = vld [vmem:[%s3746_s30 + $0x10] sm:$0xff] (%p64_p3) }
  0x10   : > { %411 = vst [vmem:[%s348_s12] sm:$0xff] (%p64_p3), %v410_v0  ;;  %413 = vst [vmem:[%s348_s12 + $0x8] sm:$0xff] (%p64_p3), %v412_v1  ;;  %v416_v3 = vld [vmem:[%s3746_s30 + $0x18] sm:$0xff] (%p64_p3)  ;;  %v418_v4 = vld [vmem:[%s3746_s30 + $0x20] sm:$0xff] (%p64_p3) }
  0x11   : > { %415 = vst [vmem:[%s348_s12 + $0x10] sm:$0xff] %v414_v2  ;;  %v420_v5 = vld [vmem:[%s3746_s30 + $0x28] sm:$0xff]  ;;  %417 = vst [vmem:[%s348_s12 + $0x18] sm:$0xff] %v416_v3  ;;  %v422_v6 = vld [vmem:[%s3746_s30 + $0x30] sm:$0xff] }
  0x12   : > { %419 = vst [vmem:[%s348_s12 + $0x20] sm:$0xff] %v418_v4  ;;  %421 = vst [vmem:[%s348_s12 + $0x28] sm:$0xff] %v420_v5  ;;  %v424_v7 = vld [vmem:[%s3746_s30 + $0x38] sm:$0xff]  ;;  %v426_v8 = vld [vmem:[%s3746_s30 + $0x80] sm:$0xff] }
  0x13   : > { %423 = vst [vmem:[%s348_s12 + $0x30] sm:$0xff] %v422_v6  ;;  %425 = vst [vmem:[%s348_s12 + $0x38] sm:$0xff] %v424_v7  ;;  %v428_v9 = vld [vmem:[%s3746_s30 + $0x88] sm:$0xff]  ;;  %v430_v10 = vld [vmem:[%s3746_s30 + $0x90] sm:$0xff] }
  0x14   : > { %427 = vst [vmem:[%s348_s12 + $0x40] sm:$0xff] %v426_v8  ;;  %v432_v11 = vld [vmem:[%s3746_s30 + $0x98] sm:$0xff]  ;;  %429 = vst [vmem:[%s348_s12 + $0x48] sm:$0xff] %v428_v9  ;;  %v434_v12 = vld [vmem:[%s3746_s30 + $0xa0] sm:$0xff] }
  0x15   : > { %431 = vst [vmem:[%s348_s12 + $0x50] sm:$0xff] %v430_v10  ;;  %433 = vst [vmem:[%s348_s12 + $0x58] sm:$0xff] %v432_v11  ;;  %v436_v13 = vld [vmem:[%s3746_s30 + $0xa8] sm:$0xff]  ;;  %v438_v14 = vld [vmem:[%s3746_s30 + $0xb0] sm:$0xff] }
  0x16   : > { %435 = vst [vmem:[%s348_s12 + $0x60] sm:$0xff] %v434_v12  ;;  %437 = vst [vmem:[%s348_s12 + $0x68] sm:$0xff] %v436_v13  ;;  %v440_v15 = vld [vmem:[%s3746_s30 + $0xb8] sm:$0xff] }
  0x17   : > { %439 = vst [vmem:[%s348_s12 + $0x70] sm:$0xff] %v438_v14  ;;  %441 = vst [vmem:[%s348_s12 + $0x78] sm:$0xff] %v440_v15 }
  0x18 PF: > { %p3009_p5 = scmp.ge.s32.totalorder %s3628_s19, 1  ;;  %p446_p6 = scmp.lt.s32.totalorder %s3628_s19, 3 }
  0x1a   : > { %p447_p7 = pnand %p3009_p5, %p446_p6 }
  0x1c   : > { %450 = sbr.rel (%p447_p7) target bundleno = 3018 (0xbca), region = 94 }
  0x21   : > { %v3769_v16 = vld [vmem:[%s5075_s2] ss:$0 sm:$0xff]  ;;  %vm571_vm0 = vcmask 1043456   ;;  %s3630_s22 = smov 120   ;;  %s3011_s19 = sshll.u32 %s3726_s20, 3  ;;  %vm558_vm1 = vcmask 64512  }
  0x22   : > { %v553_v17 = vld [vmem:[%s5076_s3] sm:$0xf]  ;;  %542 = vrot.lane.b32.xlu0 %v3769_v16, %s3630_s22  ;;  %p502_p8 = scmp.lt.s32.totalorder %s3011_s19, 15  ;;  %vm666_vm2 = vcmask 1041408   ;;  %vm653_vm3 = vcmask 31744   ;;  %v3483_v62 = vld [vmem:[%s5078_s5 + $0x8] sm:$0xff]  }
  0x23   : > { %3243 = vmatprep.subr.msk.bf16.mxu0 %vm571_vm0, %v553_v17  ;;  %v573_v18 = vsel %vm571_vm0, %v553_v17, 0  ;;  %3244 = vmatprep.subr.msk.bf16.mxu1 %vm571_vm0, %v553_v17  ;;  %v640_v48 = vld [vmem:[%s5077_s4] sm:$0x3]  ;;  %v3485_v0 = vld [vmem:[%s5079_s6 + $0x8] sm:$0xff]   ;;  %s3631_s25 = smov 104   ;;  %s453_s26 = sand.u32 1, %s3620_s17  }
  0x24   : > { %3140 = vmatpush3.bf16.msra.mxu0 %v573_v18  ;;  %3242 = vmatpush3.bf16.msra.mxu1 %v573_v18  ;;  %s5195_s19 = smov (!%p502_p8, %s3011_s19), 15  ;;  %v668_v49 = vsel %vm666_vm2, %v640_v48, 0  ;;  %v3484_v63 = vld [vmem:[%s5078_s5] sm:$0xff]   ;;  %vm766_vm4 = vcmask 261120   ;;  %s3632_s30 = smov 112  }
  0x25   : > { %s3012_s23 = sshll.u32 %s5195_s19, 3  ;;  %3245 = vmatprep.subr.msk.bf16.mxu1 %vm666_vm2, %v640_v48  ;;  %3159 = vmatprep.subr.bf16.mxu0 %v3483_v62  ;;  %s3633_s14 = smov 4  }
  0x26   : > { %s505_s27 = scalar_lea.vmem %s5073_s0, %s3012_s23  ;;  %763 = vrot.lane.b32.xlu0 %v3769_v16, %s3631_s25  ;;  %872 = vrot.lane.b32.xlu1 %v3769_v16, %s3632_s30  ;;  %s4438_s12 = scalar_lea.vmem %s5083_s10, %s3012_s23 }
  0x27   : > { %v519_v19 = vld [vmem:[%s505_s27] sm:$0xff]  ;;  %v520_v20 = vld [vmem:[%s505_s27 + $0x8] sm:$0xff]  ;;  %v521_v23 = vld [vmem:[%s505_s27 + $0x10] sm:$0xff]  ;;  %s3642_s19 = smov 16   ;;  %s3643_s23 = smov 28  }
  0x28   : > { %v523_v21 = vld [vmem:[%s505_s27 + $0x20] sm:$0xff]  ;;  %v524_v22 = vld [vmem:[%s505_s27 + $0x28] sm:$0xff]  ;;  %v522_v24 = vld [vmem:[%s505_s27 + $0x18] sm:$0xff]  ;;  %v534_v27 = vadd.f32 %v3769_v16, %v519_v19  ;;  %v535_v28 = vadd.f32 %v3769_v16, %v520_v20  ;;  %v536_v31 = vadd.f32 %v3769_v16, %v521_v23  ;;  %s3644_s13 = smov 8   ;;  %s3646_s15 = smov 12  }
  0x29   : > { %v525_v25 = vld [vmem:[%s505_s27 + $0x30] sm:$0xff]  ;;  %v526_v26 = vld [vmem:[%s505_s27 + $0x38] sm:$0xff]  ;;  %v538_v29 = vadd.f32 %v3769_v16, %v523_v21  ;;  %v539_v30 = vadd.f32 %v3769_v16, %v524_v22  ;;  %v537_v32 = vadd.f32 %v3769_v16, %v522_v24  ;;  %s3010_s27 = sshll.u32 %s453_s26, 7  ;;  %s3647_s16 = smov 24  }
  0x2a   : > { %v540_v33 = vadd.f32 %v3769_v16, %v525_v25  ;;  %v541_v34 = vadd.f32 %v3769_v16, %v526_v26  ;;  %s3845_s28 = scalar_lea.vmem [#allocation2], %s3010_s27  ;;  %s3648_s26 = smov 32  }
  0x2b   : > { %v645_v3 = vld [vmem:[%s3845_s28] sm:$0xff]  ;;  %v648_v4 = vld [vmem:[%s3845_s28 + $0x18] sm:$0xff]  ;;  %v647_v5 = vld [vmem:[%s3845_s28 + $0x10] sm:$0xff]  ;;  %p514_p9 = scmp.lt.s32.totalorder %s3726_s20, 1 }
  0x2c   : > { %v646_v7 = vld [vmem:[%s3845_s28 + $0x8] sm:$0xff]  ;;  %v649_v20 = vld [vmem:[%s3845_s28 + $0x20] sm:$0xff]  ;;  %v652_v21 = vld [vmem:[%s3845_s28 + $0x38] sm:$0xff] }
  0x2d   : > { %v651_v23 = vld [vmem:[%s3845_s28 + $0x30] sm:$0xff]  ;;  %v650_v26 = vld [vmem:[%s3845_s28 + $0x28] sm:$0xff]  ;;  %s5197_s20 = smov (!%p514_p9, %s3726_s20), 1 }
  0x94   : > { %v543_v35 = vpop.permute.xlu0 %542 }
  0x95   : > { %v545_v36 = vmul.f32 %v543_v35, %v534_v27  ;;  %v546_v37 = vmul.f32 %v543_v35, %v535_v28  ;;  %v549_v38 = vmul.f32 %v543_v35, %v538_v29  ;;  %v550_v39 = vmul.f32 %v543_v35, %v539_v30 }
  0x96   : > { %v547_v40 = vmul.f32 %v543_v35, %v536_v31  ;;  %v548_v41 = vmul.f32 %v543_v35, %v537_v32  ;;  %v551_v42 = vmul.f32 %v543_v35, %v540_v33  ;;  %v552_v43 = vmul.f32 %v543_v35, %v541_v34 }
  0x97   : > { %v554_v44 = vpack.c.bf16 %v546_v37, %v545_v36  ;;  %v556_v45 = vpack.c.bf16 %v550_v39, %v549_v38  ;;  %v3486_v38 = vld [vmem:[%s5079_s6] sm:$0xff]  }
  0x98   : > { %v555_v46 = vpack.c.bf16 %v548_v41, %v547_v40  ;;  %v557_v47 = vpack.c.bf16 %v552_v43, %v551_v42  ;;  %v764_v41 = vpop.permute.xlu0 %763 }
  0x99   : > { %3141 = vmatprep.mubr.msk.bf16.mxu0 %vm558_vm1, %v554_v44  ;;  %3145 = vmatprep.mubr.msk.bf16.mxu1 %vm558_vm1, %v556_v45 }
  0x9a   : > { %3142 = vmatmul.mubr.msk.bf16.vlgmr.msra.gmra.mxu0 %vm558_vm1, %v555_v46  ;;  %3146 = vmatmul.mubr.msk.bf16.vlgmr.msra.gmra.mxu1 %vm558_vm1, %v557_v47 }
  0x9b   : > { %3150 = vmatpush3.bf16.msra.mxu1 %v668_v49  ;;  %3160 = vmatpush3.bf16.msra.mxu0 %v3483_v62 }
  0x9c   : > { %3161 = vmatprep.subr.bf16.mxu0 %v3484_v63  ;;  %3171 = vmatprep.subr.bf16.mxu1 %v3485_v0 }
  0x9f   : > { %3162 = vmatpush3.bf16.msra.mxu0 %v3484_v63 }
 0x15a   : > { %v3805_v50 = vpop.f32.mrf.mxu0  ;;  %v3807_v51 = vpop.f32.mrf.mxu1 }
 0x15c   : > { %v3809_v52 = vpop.f32.mrf.mxu0  ;;  %v3811_v53 = vpop.f32.mrf.mxu1 }
 0x15e   : > { %v3813_v54 = vpop.f32.mrf.mxu0  ;;  %v3815_v55 = vpop.f32.mrf.mxu1 }
 0x15f   : > { %v642_v59 = vpack.c.bf16 %v3813_v54, %v3805_v50  ;;  %v644_v61 = vpack.c.bf16 %v3815_v55, %v3807_v51 }
 0x160   : > { %v3817_v56 = vpop.f32.mrf.mxu0  ;;  %v3819_v57 = vpop.f32.mrf.mxu1 }
 0x161   : > { %v641_v58 = vpack.c.bf16 %v3817_v56, %v3809_v52  ;;  %v643_v60 = vpack.c.bf16 %v3819_v57, %v3811_v53 }
 0x163   : > { %3151 = vmatprep.mubr.msk.bf16.mxu1 %vm653_vm3, %v641_v58 }
 0x164   : > { %3152 = vmatmul.mubr.msk.bf16.vlgmr.msra.gmra.mxu1 %vm653_vm3, %v642_v59 }
 0x165   : > { %3155 = vmatprep.mubr.msk.bf16.mxu1 %vm653_vm3, %v643_v60  ;;  %3172 = vmatpush3.bf16.msra.mxu1 %v3485_v0 }
 0x166   : > { %3173 = vmatprep.subr.bf16.mxu1 %v3486_v38 }
 0x169   : > { %3174 = vmatpush3.bf16.msra.mxu1 %v3486_v38 }
 0x16c   : > { %3156 = vmatmul.mubr.msk.bf16.gmra.mxu1 %vm653_vm3, %v644_v61 }
 0x224   : > { %v3153_v1 = vpop.f32.mrf.mxu1 }
 0x225   : > { %v713_v10 = vadd.f32 %v3153_v1, %v647_v5 }
 0x226   : > { %v704_v2 = vpop.f32.mrf.mxu1 }
 0x227   : > { %v705_v8 = vadd.f32 %v704_v2, %v645_v3  ;;  %v737_v18 = vmax.f32 %v713_v10, 0.0 }
 0x228   : > { %v3154_v6 = vpop.f32.mrf.mxu1 }
 0x229   : > { %v716_v9 = vadd.f32 %v3154_v6, %v648_v4  ;;  %v735_v15 = vmax.f32 %v705_v8, 0.0 }
 0x22a   : > { %v707_v11 = vpop.f32.mrf.mxu1 }
 0x22b   : > { %v708_v12 = vadd.f32 %v707_v11, %v646_v7  ;;  %v738_v13 = vmax.f32 %v716_v9, 0.0  ;;  %v873_v11 = vpop.permute.xlu1 %872 }
 0x22c   : > { %v3157_v14 = vpop.f32.mrf.mxu1 }
 0x22d   : > { %v736_v17 = vmax.f32 %v708_v12, 0.0  ;;  %v748_v24 = vpack.c.bf16 %v738_v13, %v737_v18  ;;  %v729_v29 = vadd.f32 %v3157_v14, %v651_v23  ;;  %v3039_v12 = vld [vmem:[%s5076_s3 + $0x4] sm:$0xf] }
 0x22e   : > { %v720_v19 = vpop.f32.mrf.mxu1  ;;  %3246 = vmatprep.subr.msk.bf16.mxu0 %vm571_vm0, %v3039_v12  ;;  %v1230_v14 = vsel %vm571_vm0, %v3039_v12, 0 }
 0x22f   : > { %v747_v22 = vpack.c.bf16 %v736_v17, %v735_v15  ;;  %v721_v27 = vadd.f32 %v720_v19, %v649_v20  ;;  %v741_v35 = vmax.f32 %v729_v29, 0.0 }
 0x230   : > { %v3158_v25 = vpop.f32.mrf.mxu1 }
 0x231   : > { %v732_v28 = vadd.f32 %v3158_v25, %v652_v21  ;;  %3163 = vmatprep.mubr.msk.bf16.mxu0 %vm766_vm4, %v747_v22  ;;  %v739_v33 = vmax.f32 %v721_v27, 0.0 }
 0x232   : > { %v723_v30 = vpop.f32.mrf.mxu1  ;;  %3164 = vmatmul.mubr.msk.bf16.vlgmr.msra.gmra.mxu0 %vm766_vm4, %v748_v24 }
 0x233   : > { %v724_v31 = vadd.f32 %v723_v30, %v650_v26  ;;  %v742_v32 = vmax.f32 %v732_v28, 0.0  ;;  %3184 = vmatpush3.bf16.msra.mxu0 %v1230_v14  ;;  %v3886_v30 = vld [vmem:[%s5075_s2 + $0x1] ss:$0 sm:$0xff] }
 0x235   : > { %v740_v34 = vmax.f32 %v724_v31, 0.0  ;;  %v750_v37 = vpack.c.bf16 %v742_v32, %v741_v35 }
 0x237   : > { %v749_v36 = vpack.c.bf16 %v740_v34, %v739_v33 }
 0x239   : > { %3167 = vmatprep.mubr.msk.bf16.mxu0 %vm766_vm4, %v749_v36 }
 0x23a   : > { %3168 = vmatmul.mubr.msk.bf16.gmra.mxu0 %vm766_vm4, %v750_v37 }
 0x2f2   : > { %v3165_v39 = vpop.f32.mrf.mxu0 }
 0x2f3   : > { %v822_v45 = vadd.f32 %v3165_v39, %v764_v41 }
 0x2f4   : > { %v813_v40 = vpop.f32.mrf.mxu0 }
 0x2f5   : > { %v814_v43 = vadd.f32 %v813_v40, %v764_v41  ;;  %v846_v60 = vmax.f32 %v822_v45, 0.0 }
 0x2f6   : > { %v3166_v42 = vpop.f32.mrf.mxu0 }
 0x2f7   : > { %v825_v44 = vadd.f32 %v3166_v42, %v764_v41  ;;  %v844_v58 = vmax.f32 %v814_v43, 0.0 }
 0x2f8   : > { %v816_v46 = vpop.f32.mrf.mxu0 }
 0x2f9   : > { %v817_v47 = vadd.f32 %v816_v46, %v764_v41  ;;  %v847_v48 = vmax.f32 %v825_v44, 0.0 }
 0x2fa   : > { %v3169_v49 = vpop.f32.mrf.mxu0 }
 0x2fb   : > { %v845_v59 = vmax.f32 %v817_v47, 0.0  ;;  %v857_v63 = vpack.c.bf16 %v847_v48, %v846_v60  ;;  %v838_v2 = vadd.f32 %v3169_v49, %v764_v41 }
 0x2fc   : > { %v829_v61 = vpop.f32.mrf.mxu0 }
 0x2fd   : > { %v856_v62 = vpack.c.bf16 %v845_v59, %v844_v58  ;;  %v830_v1 = vadd.f32 %v829_v61, %v764_v41  ;;  %v850_v8 = vmax.f32 %v838_v2, 0.0 }
 0x2fe   : > { %v3170_v0 = vpop.f32.mrf.mxu0 }
 0x2ff   : > { %v841_v16 = vadd.f32 %v3170_v0, %v764_v41  ;;  %3175 = vmatprep.mubr.msk.bf16.mxu1 %vm766_vm4, %v856_v62  ;;  %v848_v6 = vmax.f32 %v830_v1, 0.0 }
 0x300   : > { %v832_v3 = vpop.f32.mrf.mxu0  ;;  %3176 = vmatmul.mubr.msk.bf16.vlgmr.msra.gmra.mxu1 %vm766_vm4, %v857_v63 }
 0x301   : > { %v833_v4 = vadd.f32 %v832_v3, %v764_v41  ;;  %v851_v5 = vmax.f32 %v841_v16, 0.0 }
 0x303   : > { %v849_v7 = vmax.f32 %v833_v4, 0.0  ;;  %v859_v10 = vpack.c.bf16 %v851_v5, %v850_v8  ;;  %v3044_v4 = vld [vmem:[%s5077_s4 + $0x2] sm:$0x3] }
 0x304   : > { %3247 = vmatprep.subr.msk.bf16.mxu1 %vm666_vm2, %v3044_v4 }
 0x305   : > { %v858_v9 = vpack.c.bf16 %v849_v7, %v848_v6  ;;  %v1325_v6 = vsel %vm666_vm2, %v3044_v4, 0 }
 0x306   : > { %3194 = vmatpush3.bf16.msra.mxu1 %v1325_v6 }
 0x307   : > { %3179 = vmatprep.mubr.msk.bf16.mxu1 %vm766_vm4, %v858_v9 }
 0x308   : > { %3180 = vmatmul.mubr.msk.bf16.gmra.mxu1 %vm766_vm4, %v859_v10 }
 0x3c0   : > { %v3177_v13 = vpop.f32.mrf.mxu1 }
 0x3c1   : > { %v930_v15 = vadd.f32 %v3177_v13, %v873_v11 }
 0x3c2   : > { %v921_v17 = vpop.f32.mrf.mxu1 }
 0x3c3   : > { %v3873_v18 = vadd.f32 2.0, %v930_v15  ;;  %v922_v19 = vadd.f32 %v921_v17, %v873_v11  ;;  %1076 = vrot.lane.b32.xlu1 %v930_v15, %s3633_s14 }
 0x3c4   : > { %v3178_v20 = vpop.f32.mrf.mxu1 }
 0x3c5   : > { %v962_v21 = vand.u32 2147483647, %v3873_v18  ;;  %v3877_v22 = vadd.f32 2.0, %v922_v19  ;;  %v933_v23 = vadd.f32 %v3178_v20, %v873_v11  ;;  %vm1042_vm6 = vcmp.ge.f32.partialorder %v3873_v18, 0.0 }
 0x3c6   : > { %v924_v24 = vpop.f32.mrf.mxu1 }
 0x3c7   : > { %v970_v25 = vsub.f32 0.0, %v962_v21  ;;  %v960_v26 = vand.u32 2147483647, %v3877_v22  ;;  %v3880_v27 = vadd.f32 2.0, %v933_v23  ;;  %1072 = vrot.lane.b32.xlu1 %v922_v19, %s3633_s14  ;;  %v925_v28 = vadd.f32 %v924_v24, %v873_v11 }
 0x3c8   : > { %v3181_v29 = vpop.f32.mrf.mxu1  ;;  %vm1040_vm5 = vcmp.ge.f32.partialorder %v3877_v22, 0.0 }
 0x3c9   : > { %v980_v31 = vmul.f32 1.442695, %v970_v25  ;;  %v968_v32 = vsub.f32 0.0, %v960_v26  ;;  %v963_v33 = vand.u32 2147483647, %v3880_v27  ;;  %v3889_v34 = vadd.f32 2.0, %v925_v28  ;;  %1074 = vrot.lane.b32.xlu0 %v925_v28, %s3633_s14 }
 0x3ca   : > { %v946_v35 = vadd.f32 %v3181_v29, %v873_v11  ;;  %v937_v36 = vpop.f32.mrf.mxu1  ;;  %vm1043_vm8 = vcmp.ge.f32.partialorder %v3880_v27, 0.0 }
 0x3cb   : > { %3494 = vpow2.f32 %v980_v31  ;;  %v976_v37 = vmul.f32 1.442695, %v968_v32  ;;  %v971_v38 = vsub.f32 0.0, %v963_v33  ;;  %v938_v39 = vadd.f32 %v937_v36, %v873_v11  ;;  %1200 = vrot.lane.b32.xlu1 %v3886_v30, %s3630_s22 }
 0x3cc   : > { %v961_v40 = vand.u32 2147483647, %v3889_v34  ;;  %v3895_v41 = vadd.f32 2.0, %v946_v35  ;;  %v3182_v42 = vpop.f32.mrf.mxu1  ;;  %v994_v31 = vmin.f32 %v3873_v18, 0.0  ;;  %vm1041_vm7 = vcmp.ge.f32.partialorder %v3889_v34, 0.0 }
 0x3cd   : > { %3496 = vpow2.f32 %v976_v37  ;;  %v982_v43 = vmul.f32 1.442695, %v971_v38  ;;  %v3897_v44 = vadd.f32 2.0, %v938_v39  ;;  %v949_v45 = vadd.f32 %v3182_v42, %v873_v11  ;;  %1078 = vrot.lane.b32.xlu0 %v933_v23, %s3633_s14 }
 0x3ce   : > { %v969_v46 = vsub.f32 0.0, %v961_v40  ;;  %v966_v47 = vand.u32 2147483647, %v3895_v41  ;;  %v940_v48 = vpop.f32.mrf.mxu1  ;;  %vm1046_vm11 = vcmp.ge.f32.partialorder %v3895_v41, 0.0 }
 0x3cf   : > { %3498 = vpow2.f32 %v982_v43  ;;  %v964_v49 = vand.u32 2147483647, %v3897_v44  ;;  %v3902_v58 = vadd.f32 2.0, %v949_v45  ;;  %v941_v61 = vadd.f32 %v940_v48, %v873_v11 }
 0x3d0   : > { %v978_v59 = vmul.f32 1.442695, %v969_v46  ;;  %v974_v60 = vsub.f32 0.0, %v966_v47  ;;  %v993_v46 = vmin.f32 %v3889_v34, 0.0  ;;  %vm1044_vm9 = vcmp.ge.f32.partialorder %v3897_v44, 0.0 }
 0x3d1   : > { %v972_v62 = vsub.f32 0.0, %v964_v49  ;;  %v967_v63 = vand.u32 2147483647, %v3902_v58  ;;  %v3905_v1 = vadd.f32 2.0, %v941_v61  ;;  %1080 = vrot.lane.b32.xlu0 %v938_v39, %s3633_s14  ;;  %1082 = vrot.lane.b32.xlu1 %v941_v61, %s3633_s14  ;;  %v995_v39 = vmin.f32 %v3880_v27, 0.0 }
 0x3d2   : > { %3500 = vpow2.f32 %v978_v59  ;;  %v988_v0 = vmul.f32 1.442695, %v974_v60  ;;  %v996_v59 = vmin.f32 %v3897_v44, 0.0  ;;  %vm1047_vm12 = vcmp.ge.f32.partialorder %v3902_v58, 0.0 }
 0x3d3   : > { %v984_v16 = vmul.f32 1.442695, %v972_v62  ;;  %v975_v2 = vsub.f32 0.0, %v967_v63  ;;  %v965_v3 = vand.u32 2147483647, %v3905_v1  ;;  %v998_v63 = vmin.f32 %v3895_v41, 0.0 }
 0x3d4   : > { %3502 = vpow2.f32 %v988_v0  ;;  %v997_v6 = vmin.f32 %v3905_v1, 0.0  ;;  %vm1045_vm10 = vcmp.ge.f32.partialorder %v3905_v1, 0.0 }
 0x3d5   : > { %3504 = vpow2.f32 %v984_v16  ;;  %v990_v5 = vmul.f32 1.442695, %v975_v2  ;;  %v973_v7 = vsub.f32 0.0, %v965_v3  ;;  %1084 = vrot.lane.b32.xlu0 %v946_v35, %s3633_s14  ;;  %1086 = vrot.lane.b32.xlu1 %v949_v45, %s3633_s14  ;;  %v992_v35 = vmin.f32 %v3877_v22, 0.0 }
 0x3d6   : > { %v999_v2 = vmin.f32 %v3902_v58, 0.0 }
 0x3d7   : > { %3506 = vpow2.f32 %v990_v5  ;;  %v986_v9 = vmul.f32 1.442695, %v973_v7 }
 0x3d8   : > { %v3917_v8 = vpop.eup %3494 }
 0x3d9   : > { %v1002_v10 = vadd.f32 1.0, %v3917_v8  ;;  %3508 = vpow2.f32 %v986_v9  ;;  %1421 = vrot.lane.b32.xlu0 %v3886_v30, %s3631_s25  ;;  %1530 = vrot.lane.b32.xlu1 %v3886_v30, %s3632_s30 }
 0x3da   : > { %v3920_v11 = vpop.eup %3496 }
 0x3db   : > { %v1000_v12 = vadd.f32 1.0, %v3920_v11  ;;  %3510 = vlog2.f32 %v1002_v10 }
 0x3dc   : > { %v3927_v13 = vpop.eup %3498 }
 0x3dd   : > { %v1003_v14 = vadd.f32 1.0, %v3927_v13  ;;  %3512 = vlog2.f32 %v1000_v12 }
 0x3df   : > { %v3930_v15 = vpop.eup %3500  ;;  %3514 = vlog2.f32 %v1003_v14 }
 0x3e0   : > { %v1001_v17 = vadd.f32 1.0, %v3930_v15 }
 0x3e1   : > { %v3933_v19 = vpop.eup %3502 }
 0x3e2   : > { %v3935_v20 = vpop.eup %3504  ;;  %3516 = vlog2.f32 %v1001_v17  ;;  %v1006_v24 = vadd.f32 1.0, %v3933_v19 }
 0x3e3   : > { %v1004_v21 = vadd.f32 1.0, %v3935_v20 }
 0x3e4   : > { %v3938_v23 = vpop.eup %3506 }
 0x3e5   : > { %v1007_v25 = vadd.f32 1.0, %v3938_v23  ;;  %3518 = vlog2.f32 %v1004_v21 }
 0x3e6   : > { %v3942_v26 = vpop.eup %3508  ;;  %3520 = vlog2.f32 %v1006_v24 }
 0x3e7   : > { %v1005_v28 = vadd.f32 1.0, %v3942_v26  ;;  %3522 = vlog2.f32 %v1007_v25 }
 0x3e8   : > { %v3511_v29 = vpop.eup %3510 }
 0x3e9   : > { %v1013_v32 = vmul.f32 0.6931472, %v3511_v29  ;;  %3524 = vlog2.f32 %v1005_v28 }
 0x3ea   : > { %v3513_v33 = vpop.eup %3512  ;;  %3526 = vrcp.f32 %v1000_v12 }
 0x3eb   : > { %v1009_v36 = vmul.f32 0.6931472, %v3513_v33  ;;  %v3947_v37 = vsub.f32 %v994_v31, %v1013_v32  ;;  %3528 = vrcp.f32 %v1002_v10 }
 0x3ec   : > { %v3515_v38 = vpop.eup %3514  ;;  %3530 = vrcp.f32 %v1001_v17 }
 0x3ed   : > { %5089 = vst [vmem:[#allocation3_spill] sm:$0xff] %v3947_v37  ;;  %v3950_v40 = vsub.f32 %v992_v35, %v1009_v36  ;;  %v1015_v42 = vmul.f32 0.6931472, %v3515_v38  ;;  %3532 = vrcp.f32 %v1003_v14 }
 0x3ee   : > { %3534 = vrcp.f32 %v1004_v21 }
 0x3ef   : > { %5090 = vst [vmem:[#allocation4_spill] sm:$0xff] %v3950_v40  ;;  %v3517_v43 = vpop.eup %3516  ;;  %v3952_v45 = vsub.f32 %v995_v39, %v1015_v42  ;;  %3536 = vrcp.f32 %v1005_v28 }
 0x3f0   : > { %v1011_v47 = vmul.f32 0.6931472, %v3517_v43  ;;  %3538 = vrcp.f32 %v1006_v24 }
 0x3f1   : > { %5091 = vst [vmem:[#allocation5_spill] sm:$0xff] %v3952_v45  ;;  %3540 = vrcp.f32 %v1007_v25 }
 0x3f2   : > { %v3519_v48 = vpop.eup %3518  ;;  %v3955_v49 = vsub.f32 %v993_v46, %v1011_v47 }
 0x3f3   : > { %v1017_v60 = vmul.f32 0.6931472, %v3519_v48  ;;  %v3521_v61 = vpop.eup %3520 }
 0x3f4   : > { %5092 = vst [vmem:[#allocation6_spill] sm:$0xff] %v3955_v49  ;;  %v3523_v62 = vpop.eup %3522  ;;  %v1021_v16 = vmul.f32 0.6931472, %v3521_v61 }
 0x3f5   : > { %v3959_v0 = vsub.f32 %v996_v59, %v1017_v60  ;;  %v1023_v3 = vmul.f32 0.6931472, %v3523_v62 }
 0x3f6   : > { %v3525_v4 = vpop.eup %3524  ;;  %v3962_v5 = vsub.f32 %v998_v63, %v1021_v16 }
 0x3f7   : > { %5093 = vst [vmem:[#allocation7_spill] sm:$0xff] %v3959_v0  ;;  %v1019_v7 = vmul.f32 0.6931472, %v3525_v4  ;;  %v3965_v9 = vsub.f32 %v999_v2, %v1023_v3  ;;  %v3527_v31 = vpop.eup %3526 }
 0x3f8   : > { %5094 = vst [vmem:[#allocation8_spill] sm:$0xff] %v3962_v5  ;;  %v3529_v32 = vpop.eup %3528  ;;  %v1048_v36 = vmul.f32 %v3527_v31, %v3920_v11 }
 0x3f9   : > { %5095 = vst [vmem:[#allocation9_spill] sm:$0xff] %v3965_v9  ;;  %v3967_v29 = vsub.f32 %v997_v6, %v1019_v7  ;;  %v3531_v35 = vpop.eup %3530  ;;  %v1050_v38 = vmul.f32 %v3529_v32, %v3917_v8 }
 0x3fa   : > { %v1049_v12 = vmul.f32 %v3531_v35, %v3930_v15  ;;  %v3533_v14 = vpop.eup %3532  ;;  %v1056_v17 = vsel %vm1040_vm5, %v3527_v31, %v1048_v36 }
 0x3fb   : > { %5096 = vst [vmem:[#allocation10_spill] sm:$0xff] %v3967_v29  ;;  %v1058_v21 = vsel %vm1042_vm6, %v3529_v32, %v1050_v38  ;;  %v3535_v11 = vpop.eup %3534  ;;  %v1051_v46 = vmul.f32 %v3533_v14, %v3927_v13 }
 0x3fc   : > { %v1057_v43 = vsel %vm1041_vm7, %v3531_v35, %v1049_v12  ;;  %v3537_v15 = vpop.eup %3536  ;;  %v1052_v62 = vmul.f32 %v3535_v11, %v3935_v20 }
 0x3fd   : > { %v3539_v60 = vpop.eup %3538  ;;  %v1059_v63 = vsel %vm1043_vm8, %v3533_v14, %v1051_v46  ;;  %v1053_v16 = vmul.f32 %v3537_v15, %v3942_v26 }
 0x3fe   : > { %v3541_v2 = vpop.eup %3540  ;;  %v1060_v31 = vsel %vm1044_vm9, %v3535_v11, %v1052_v62 }
 0x3ff   : > { %v1055_v1 = vmul.f32 %v3541_v2, %v3938_v23 }
 0x435   : > { %v1077_v33 = vpop.permute.xlu1 %1076 }
 0x436   : > { %v1098_v39 = vadd.f32 %v3805_v50, %v1077_v33  ;;  %v1061_v33 = vsel %vm1045_vm10, %v3537_v15, %v1053_v16 }
 0x438   : > { %v1106_v28 = vmul.f32 %v1098_v39, %v1058_v21 }
 0x439   : > { %v1073_v42 = vpop.permute.xlu1 %1072 }
 0x43a   : > { %v1096_v10 = vadd.f32 %v1073_v42, %v3809_v52  ;;  %v1178_v34 = vsel %vm653_vm3, %v3805_v50, %v1106_v28 }
 0x43b   : > { %v1075_v25 = vpop.permute.xlu0 %1074  ;;  %v1194_v50 = vadd.f32 %v3886_v30, %v1178_v34 }
 0x43c   : > { %v1104_v24 = vmul.f32 %v1096_v10, %v1056_v17  ;;  %v1097_v8 = vadd.f32 %v1075_v25, %v3817_v56  ;;  %v1063_v25 = vsel %vm1047_vm12, %v3541_v2, %v1055_v1  ;;  %v3488_v2 = vld [vmem:[%s5078_s5 + $0x10] sm:$0xff]   ;;  %vm2512_vm12 = vcmask 162816  }
 0x43d   : > { %v1201_v48 = vpop.permute.xlu1 %1200 }
 0x43e   : > { %v1176_v22 = vsel %vm653_vm3, %v3809_v52, %v1104_v24  ;;  %v1105_v47 = vmul.f32 %v1097_v8, %v1057_v43 }
 0x43f   : > { %v1192_v18 = vadd.f32 %v3886_v30, %v1176_v22  ;;  %v1079_v59 = vpop.permute.xlu0 %1078 }
 0x440   : > { %v1177_v61 = vsel %vm653_vm3, %v3817_v56, %v1105_v47  ;;  %v1099_v52 = vadd.f32 %v3813_v54, %v1079_v59  ;;  %v1054_v56 = vmul.f32 %v3539_v60, %v3933_v19  ;;  %v1205_v19 = vmul.f32 %v1201_v48, %v1194_v50  ;;  %v3487_v59 = vld [vmem:[%s5078_s5 + $0x18] sm:$0xff]  }
 0x441   : > { %v1193_v13 = vadd.f32 %v3886_v30, %v1177_v61  ;;  %v1203_v6 = vmul.f32 %v1201_v48, %v1192_v18  ;;  %3203 = vmatprep.subr.bf16.mxu0 %v3487_v59 }
 0x442   : > { %v1107_v3 = vmul.f32 %v1099_v52, %v1059_v63  ;;  %v1062_v42 = vsel %vm1046_vm11, %v3539_v60, %v1054_v56  ;;  %v3048_v56 = vld [vmem:[%s3845_s28 + $0x58] sm:$0xff]  ;;  %vm2503_vm11 = vcmask 130048  }
 0x443   : > { %v1081_v27 = vpop.permute.xlu0 %1080  ;;  %v1083_v4 = vpop.permute.xlu1 %1082  ;;  %v1204_v7 = vmul.f32 %v1201_v48, %v1193_v13 }
 0x444   : > { %v1179_v20 = vsel %vm653_vm3, %v3813_v54, %v1107_v3  ;;  %v1100_v26 = vadd.f32 %v1081_v27, %v3811_v53  ;;  %v1101_v32 = vadd.f32 %v1083_v4, %v3819_v57  ;;  %v3489_v3 = vld [vmem:[%s5079_s6 + $0x18] sm:$0xff]   ;;  %v3045_v4 = vld [vmem:[%s3845_s28 + $0x40] sm:$0xff] }
 0x445   : > { %v1195_v44 = vadd.f32 %v3886_v30, %v1179_v20  ;;  %v1213_v35 = vpack.c.bf16 %v1204_v7, %v1203_v6  ;;  %3215 = vmatprep.subr.bf16.mxu1 %v3489_v3  ;;  %v3047_v6 = vld [vmem:[%s3845_s28 + $0x50] sm:$0xff]  ;;  %v3046_v20 = vld [vmem:[%s3845_s28 + $0x48] sm:$0xff] }
 0x446   : > { %v1108_v36 = vmul.f32 %v1100_v26, %v1060_v31  ;;  %v1109_v38 = vmul.f32 %v1101_v32, %v1061_v33 }
 0x447   : > { %v1206_v39 = vmul.f32 %v1201_v48, %v1195_v44  ;;  %v1085_v10 = vpop.permute.xlu0 %1084  ;;  %v1087_v54 = vpop.permute.xlu1 %1086  ;;  %3185 = vmatprep.mubr.msk.bf16.mxu0 %vm558_vm1, %v1213_v35 }
 0x448   : > { %v1180_v12 = vsel %vm653_vm3, %v3811_v53, %v1108_v36  ;;  %v1181_v23 = vsel %vm653_vm3, %v3819_v57, %v1109_v38  ;;  %v1102_v14 = vadd.f32 %v3807_v51, %v1085_v10  ;;  %v1103_v17 = vadd.f32 %v3815_v55, %v1087_v54  ;;  %v3052_v10 = vld [vmem:[%s3845_s28 + $0x78] sm:$0xff] }
 0x449   : > { %v1214_v41 = vpack.c.bf16 %v1206_v39, %v1205_v19  ;;  %v1196_v21 = vadd.f32 %v3886_v30, %v1180_v12  ;;  %v1197_v24 = vadd.f32 %v3886_v30, %v1181_v23  ;;  %v3051_v12 = vld [vmem:[%s3845_s28 + $0x70] sm:$0xff] }
 0x44a   : > { %v1110_v58 = vmul.f32 %v1102_v14, %v1062_v42  ;;  %v1111_v28 = vmul.f32 %v1103_v17, %v1063_v25  ;;  %v3049_v42 = vld [vmem:[%s3845_s28 + $0x60] sm:$0xff]  ;;  %v3050_v17 = vld [vmem:[%s3845_s28 + $0x68] sm:$0xff]  ;;  %s3645_s28 = smov 20  }
 0x44b   : > { %3186 = vmatmul.mubr.msk.bf16.vlgmr.msra.gmra.mxu0 %vm558_vm1, %v1214_v41  ;;  %v1207_v8 = vmul.f32 %v1201_v48, %v1196_v21  ;;  %v1208_v11 = vmul.f32 %v1201_v48, %v1197_v24 }
 0x44c   : > { %v1182_v53 = vsel %vm653_vm3, %v3807_v51, %v1110_v58  ;;  %v1183_v57 = vsel %vm653_vm3, %v3815_v55, %v1111_v28  ;;  %3204 = vmatpush3.bf16.msra.mxu0 %v3487_v59  ;;  %v4095_v59 = vld [vmem:[%s5080_s7 + $0x28] sm:$0xff] }
 0x44d   : > { %v1198_v22 = vadd.f32 %v3886_v30, %v1182_v53  ;;  %v1199_v43 = vadd.f32 %v3886_v30, %v1183_v57  ;;  %v1215_v46 = vpack.c.bf16 %v1208_v11, %v1207_v8  ;;  %3205 = vmatprep.subr.bf16.mxu0 %v3488_v2 }
 0x44f   : > { %3189 = vmatprep.mubr.msk.bf16.mxu0 %vm558_vm1, %v1215_v46  ;;  %v1209_v15 = vmul.f32 %v1201_v48, %v1198_v22  ;;  %v1210_v47 = vmul.f32 %v1201_v48, %v1199_v43  ;;  %v3490_v43 = vld [vmem:[%s5079_s6 + $0x10] sm:$0xff]   ;;  %v4076_v46 = vld [vmem:[%s5080_s7] sm:$0xff] }
 0x450   : > { %3206 = vmatpush3.bf16.msra.mxu0 %v3488_v2  ;;  %v3636_v2 = vmov 3  }
 0x451   : > { %v1216_v18 = vpack.c.bf16 %v1210_v47, %v1209_v15  ;;  %v3634_v15 = vmov 1   ;;  %v4082_v47 = vld [vmem:[%s5080_s7 + $0x8] sm:$0xff] }
 0x452   : > { %3297 = vset.pattern.permute.xlu1 %v3634_v15  ;;  %3298 = vset.pattern.permute.xlu0 %v3634_v15 }
 0x453   : > { %3190 = vmatmul.mubr.msk.bf16.gmra.mxu0 %vm558_vm1, %v1216_v18  ;;  %1926 = vperm.xlu1 %3297, %v4076_v46   ;;  %v4090_v18 = vld [vmem:[%s5080_s7 + $0x10] sm:$0xff] }
 0x454   : > { %1930 = vperm.xlu0 %3298, %v4082_v47  }
 0x457   : > { %1934 = vperm.xlu1 %3297, %v4090_v18  }
 0x458   : > { %1946 = vperm.xlu0 %3298, %v4095_v59  }
 0x50b   : > { %v4024_v51 = vpop.f32.mrf.mxu0 }
 0x50d   : > { %v4026_v55 = vpop.f32.mrf.mxu0 }
 0x50f   : > { %v4028_v60 = vpop.f32.mrf.mxu0 }
 0x510   : > { %v1300_v34 = vpack.c.bf16 %v4028_v60, %v4024_v51 }
 0x511   : > { %v4030_v30 = vpop.f32.mrf.mxu0 }
 0x512   : > { %v1299_v48 = vpack.c.bf16 %v4030_v30, %v4026_v55 }
 0x513   : > { %v4036_v61 = vpop.f32.mrf.mxu0 }
 0x514   : > { %3195 = vmatprep.mubr.msk.bf16.mxu1 %vm653_vm3, %v1299_v48  ;;  %v4102_v48 = vld [vmem:[%s5080_s7 + $0x18] sm:$0xff] }
 0x515   : > { %v4039_v52 = vpop.f32.mrf.mxu0  ;;  %3196 = vmatmul.mubr.msk.bf16.vlgmr.msra.gmra.mxu1 %vm653_vm3, %v1300_v34  ;;  %v4107_v34 = vld [vmem:[%s5080_s7 + $0x30] sm:$0xff]  ;;  %1938 = vperm.xlu1 %3297, %v4102_v48  }
 0x516   : > { %3216 = vmatpush3.bf16.msra.mxu1 %v3489_v3  ;;  %1950 = vperm.xlu0 %3298, %v4107_v34   ;;  %v4125_v3 = vld [vmem:[%s5080_s7 + $0x38] sm:$0xff] }
 0x517   : > { %v4042_v62 = vpop.f32.mrf.mxu0  ;;  %3217 = vmatprep.subr.bf16.mxu1 %v3490_v43 }
 0x518   : > { %v1302_v16 = vpack.c.bf16 %v4042_v62, %v4036_v61 }
 0x519   : > { %v4044_v13 = vpop.f32.mrf.mxu0 }
 0x51a   : > { %5097 = vst [vmem:[#allocation11_spill] sm:$0xff] %v4044_v13  ;;  %v1301_v63 = vpack.c.bf16 %v4044_v13, %v4039_v52  ;;  %3218 = vmatpush3.bf16.msra.mxu1 %v3490_v43 }
 0x51c   : > { %3199 = vmatprep.mubr.msk.bf16.mxu1 %vm653_vm3, %v1301_v63  ;;  %v3635_v63 = vmov 2  }
 0x51d   : > { %3200 = vmatmul.mubr.msk.bf16.gmra.mxu1 %vm653_vm3, %v1302_v16  ;;  %3299 = vset.pattern.permute.xlu1 %v3635_v63  ;;  %v4118_v16 = vld [vmem:[%s5080_s7 + $0x20] sm:$0xff] }
 0x51e   : > { %3307 = vset.pattern.permute.xlu0 %v3635_v63  ;;  %1987 = vperm.xlu1 %3299, %v4082_v47  }
 0x51f   : > { %1983 = vperm.xlu0 %3307, %v4076_v46  }
 0x522   : > { %1995 = vperm.xlu1 %3299, %v4102_v48  }
 0x523   : > { %1991 = vperm.xlu0 %3307, %v4090_v18  }
 0x526   : > { %3300 = vset.pattern.permute.xlu1 %v3636_v2 }
 0x527   : > { %1999 = vperm.xlu0 %3307, %v4118_v16   ;;  %2027 = vperm.xlu1 %3300, %v4082_v47  }
 0x52b   : > { %2011 = vperm.xlu0 %3307, %v4125_v3   ;;  %2031 = vperm.xlu1 %3300, %v4090_v18  }
 0x52f   : > { %3310 = vset.pattern.permute.xlu0 %v3636_v2 }
 0x530   : > { %2023 = vperm.xlu0 %3310, %v4076_v46  }
 0x534   : > { %2035 = vperm.xlu0 %3310, %v4102_v48  }
 0x538   : > { %2043 = vperm.xlu0 %3310, %v4095_v59  }
 0x5d5   : > { %v3197_v50 = vpop.f32.mrf.mxu1 }
 0x5d6   : > { %v1370_v32 = vadd.f32 %v3197_v50, %v3047_v6  ;;  %v3637_v50 = vmov 5  }
 0x5d7   : > { %v1361_v27 = vpop.f32.mrf.mxu1  ;;  %3301 = vset.pattern.permute.xlu1 %v3637_v50  ;;  %3312 = vset.pattern.permute.xlu0 %v3637_v50 }
 0x5d8   : > { %v1362_v31 = vadd.f32 %v3045_v4, %v1361_v27  ;;  %v1394_v19 = vmax.f32 %v1370_v32, 0.0  ;;  %2063 = vperm.xlu1 %3301, %v4076_v46   ;;  %v3638_v27 = vmov 6   ;;  %2067 = vperm.xlu0 %3312, %v4082_v47   ;;  %v3639_v4 = vmov 7  }
 0x5d9   : > { %v3198_v7 = vpop.f32.mrf.mxu1 }
 0x5da   : > { %v1373_v26 = vadd.f32 %v3198_v7, %v3048_v56  ;;  %v1392_v36 = vmax.f32 %v1362_v31, 0.0  ;;  %v5085_v56 = vmov 8  }
 0x5db   : > { %v1364_v44 = vpop.f32.mrf.mxu1 }
 0x5dc   : > { %v1365_v33 = vadd.f32 %v3046_v20, %v1364_v44  ;;  %v1395_v1 = vmax.f32 %v1373_v26, 0.0  ;;  %2071 = vperm.xlu1 %3301, %v4090_v18   ;;  %2075 = vperm.xlu0 %3312, %v4102_v48   ;;  %v1422_v20 = vpop.permute.xlu0 %1421 }
 0x5dd   : > { %v3201_v35 = vpop.f32.mrf.mxu1 }
 0x5de   : > { %v1393_v38 = vmax.f32 %v1365_v33, 0.0  ;;  %v1406_v23 = vpack.c.bf16 %v1395_v1, %v1394_v19  ;;  %v1386_v24 = vadd.f32 %v3201_v35, %v3051_v12 }
 0x5df   : > { %v1377_v39 = vpop.f32.mrf.mxu1 }
 0x5e0   : > { %v1405_v54 = vpack.c.bf16 %v1393_v38, %v1392_v36  ;;  %v1378_v41 = vadd.f32 %v3049_v42, %v1377_v39  ;;  %v1398_v53 = vmax.f32 %v1386_v24, 0.0  ;;  %3302 = vset.pattern.permute.xlu1 %v3638_v27  ;;  %2079 = vperm.xlu0 %3312, %v4118_v16  }
 0x5e1   : > { %v3202_v14 = vpop.f32.mrf.mxu1  ;;  %2103 = vperm.xlu1 %3302, %v4076_v46  }
 0x5e2   : > { %v1389_v21 = vadd.f32 %v3202_v14, %v3052_v10  ;;  %3207 = vmatprep.mubr.msk.bf16.mxu0 %vm766_vm4, %v1405_v54  ;;  %v1396_v8 = vmax.f32 %v1378_v41, 0.0 }
 0x5e3   : > { %v1380_v25 = vpop.f32.mrf.mxu1  ;;  %3208 = vmatmul.mubr.msk.bf16.vlgmr.msra.gmra.mxu0 %vm766_vm4, %v1406_v23 }
 0x5e4   : > { %v1381_v58 = vadd.f32 %v3050_v17, %v1380_v25  ;;  %v1399_v28 = vmax.f32 %v1389_v21, 0.0  ;;  %2091 = vperm.xlu0 %3312, %v4125_v3  }
 0x5e5   : > { %2111 = vperm.xlu1 %3302, %v4090_v18  }
 0x5e6   : > { %v1397_v11 = vmax.f32 %v1381_v58, 0.0  ;;  %v1408_v22 = vpack.c.bf16 %v1399_v28, %v1398_v53  ;;  %v3641_v53 = vmov 0  }
 0x5e8   : > { %v1407_v57 = vpack.c.bf16 %v1397_v11, %v1396_v8  ;;  %3314 = vset.pattern.permute.xlu0 %v3638_v27 }
 0x5e9   : > { %2115 = vperm.xlu1 %3302, %v4102_v48   ;;  %2107 = vperm.xlu0 %3314, %v4082_v47  }
 0x5ea   : > { %3211 = vmatprep.mubr.msk.bf16.mxu0 %vm766_vm4, %v1407_v57  ;;  %v4184_v57 = vpop.permute.xlu1 %1530 }
 0x5eb   : > { %3212 = vmatmul.mubr.msk.bf16.gmra.mxu0 %vm766_vm4, %v1408_v22 }
 0x5ed   : > { %3303 = vset.pattern.permute.xlu1 %v3639_v4  ;;  %2123 = vperm.xlu0 %3314, %v4095_v59  }
 0x5ee   : > { %2147 = vperm.xlu1 %3303, %v4082_v47   ;;  %v4186_v22 = vpop.permute.xlu1 %1926 }
 0x5f1   : > { %3316 = vset.pattern.permute.xlu0 %v3639_v4 }
 0x5f2   : > { %2155 = vperm.xlu1 %3303, %v4102_v48   ;;  %2143 = vperm.xlu0 %3316, %v4076_v46   ;;  %v4188_v43 = vpop.permute.xlu1 %1934 }
 0x5f6   : > { %3304 = vset.pattern.permute.xlu1 %v5085_v56  ;;  %2151 = vperm.xlu0 %3316, %v4090_v18  }
 0x5f7   : > { %2187 = vperm.xlu1 %3304, %v4082_v47  }
 0x5fa   : > { %2159 = vperm.xlu0 %3316, %v4118_v16  }
 0x5fb   : > { %3305 = vset.pattern.permute.xlu1 %v3634_v15 }
 0x5fc   : > { %1942 = vperm.xlu1 %3305, %v4118_v16  }
 0x5fe   : > { %2171 = vperm.xlu0 %3316, %v4125_v3  }
 0x600   : > { %3306 = vset.pattern.permute.xlu1 %v5085_v56 }
 0x601   : > { %2191 = vperm.xlu1 %3306, %v4090_v18  }
 0x602   : > { %3318 = vset.pattern.permute.xlu0 %v5085_v56 }
 0x603   : > { %2183 = vperm.xlu0 %3318, %v4076_v46  }
 0x605   : > { %2195 = vperm.xlu1 %3306, %v4102_v48  }
 0x607   : > { %2203 = vperm.xlu0 %3318, %v4095_v59  }
 0x609   : > { %3308 = vset.pattern.permute.xlu1 %v3634_v15  ;;  %v4190_v15 = vpop.permute.xlu1 %1938 }
 0x60a   : > { %1954 = vperm.xlu1 %3308, %v4125_v3  }
 0x60b   : > { %3320 = vset.pattern.permute.xlu0 %v3641_v53 }
 0x60e   : > { %3309 = vset.pattern.permute.xlu1 %v3635_v63  ;;  %v4192_v63 = vpop.permute.xlu1 %1987 }
 0x60f   : > { %2003 = vperm.xlu1 %3309, %v4095_v59   ;;  %5098 = vst [vmem:[#allocation12_spill] sm:$0xff] %v4192_v63 }
 0x613   : > { %2007 = vperm.xlu1 %3309, %v4107_v34  }
 0x617   : > { %3311 = vset.pattern.permute.xlu1 %v3636_v2  ;;  %v4194_v2 = vpop.permute.xlu1 %1995 }
 0x618   : > { %2039 = vperm.xlu1 %3311, %v4118_v16  }
 0x61c   : > { %2047 = vperm.xlu1 %3311, %v4107_v34  }
 0x620   : > { %2051 = vperm.xlu1 %3311, %v4125_v3  }
 0x624   : > { %3313 = vset.pattern.permute.xlu1 %v3637_v50  ;;  %v4196_v50 = vpop.permute.xlu1 %2027 }
 0x625   : > { %2083 = vperm.xlu1 %3313, %v4095_v59   ;;  %5099 = vst [vmem:[#allocation13_spill] sm:$0xff] %v4196_v50 }
 0x629   : > { %2087 = vperm.xlu1 %3313, %v4107_v34  }
 0x62d   : > { %3315 = vset.pattern.permute.xlu1 %v3638_v27  ;;  %v4198_v27 = vpop.permute.xlu1 %2031 }
 0x62e   : > { %2119 = vperm.xlu1 %3315, %v4118_v16  }
 0x632   : > { %2127 = vperm.xlu1 %3315, %v4107_v34  }
 0x636   : > { %2131 = vperm.xlu1 %3315, %v4125_v3  }
 0x63a   : > { %3317 = vset.pattern.permute.xlu1 %v3639_v4 }
 0x63b   : > { %2163 = vperm.xlu1 %3317, %v4095_v59  }
 0x63f   : > { %2167 = vperm.xlu1 %3317, %v4107_v34  }
 0x643   : > { %3319 = vset.pattern.permute.xlu1 %v5085_v56 }
 0x644   : > { %2199 = vperm.xlu1 %3319, %v4118_v16  }
 0x648   : > { %2207 = vperm.xlu1 %3319, %v4107_v34  }
 0x64c   : > { %2211 = vperm.xlu1 %3319, %v4125_v3  }
 0x650   : > { %3321 = vset.pattern.permute.xlu1 %v3641_v53 }
 0x653   : > { %v4200_v4 = vpop.permute.xlu1 %2063 }
 0x6a3   : > { %v3209_v6 = vpop.f32.mrf.mxu0 }
 0x6a4   : > { %v1479_v44 = vadd.f32 %v3209_v6, %v1422_v20  ;;  %v4202_v6 = vpop.permute.xlu1 %2071 }
 0x6a5   : > { %v1470_v7 = vpop.f32.mrf.mxu0  ;;  %5100 = vst [vmem:[#allocation14_spill] sm:$0xff] %v4202_v6 }
 0x6a6   : > { %v1471_v26 = vadd.f32 %v1470_v7, %v1422_v20  ;;  %v1503_v39 = vmax.f32 %v1479_v44, 0.0 }
 0x6a7   : > { %v3210_v31 = vpop.f32.mrf.mxu0 }
 0x6a8   : > { %v1482_v32 = vadd.f32 %v3210_v31, %v1422_v20  ;;  %v1501_v38 = vmax.f32 %v1471_v26, 0.0  ;;  %v4204_v7 = vpop.permute.xlu1 %2103 }
 0x6a9   : > { %v1473_v33 = vpop.f32.mrf.mxu0 }
 0x6aa   : > { %v1474_v1 = vadd.f32 %v1473_v33, %v1422_v20  ;;  %v1504_v35 = vmax.f32 %v1482_v32, 0.0  ;;  %v4212_v32 = vpop.permute.xlu0 %1930 }
 0x6ab   : > { %v3213_v36 = vpop.f32.mrf.mxu0 }
 0x6ac   : > { %v1502_v19 = vmax.f32 %v1474_v1, 0.0  ;;  %v1515_v54 = vpack.c.bf16 %v1504_v35, %v1503_v39  ;;  %v1495_v17 = vadd.f32 %v3213_v36, %v1422_v20 }
 0x6ad   : > { %v1486_v42 = vpop.f32.mrf.mxu0 }
 0x6ae   : > { %v1514_v10 = vpack.c.bf16 %v1502_v19, %v1501_v38  ;;  %v1487_v23 = vadd.f32 %v1486_v42, %v1422_v20  ;;  %v1507_v28 = vmax.f32 %v1495_v17, 0.0  ;;  %v4217_v35 = vpop.permute.xlu0 %1946 }
 0x6af   : > { %v3214_v12 = vpop.f32.mrf.mxu0 }
 0x6b0   : > { %v1498_v14 = vadd.f32 %v3214_v12, %v1422_v20  ;;  %3219 = vmatprep.mubr.msk.bf16.mxu1 %vm766_vm4, %v1514_v10  ;;  %v1505_v25 = vmax.f32 %v1487_v23, 0.0 }
 0x6b1   : > { %v1489_v41 = vpop.f32.mrf.mxu0  ;;  %3220 = vmatmul.mubr.msk.bf16.vlgmr.msra.gmra.mxu1 %vm766_vm4, %v1515_v54 }
 0x6b2   : > { %v1490_v21 = vadd.f32 %v1489_v41, %v1422_v20  ;;  %v1508_v24 = vmax.f32 %v1498_v14, 0.0  ;;  %v4206_v20 = vpop.permute.xlu1 %2111 }
 0x6b3   : > { %5101 = vst [vmem:[#allocation15_spill] sm:$0xff] %v4206_v20 }
 0x6b4   : > { %v1506_v58 = vmax.f32 %v1490_v21, 0.0  ;;  %v1517_v11 = vpack.c.bf16 %v1508_v24, %v1507_v28  ;;  %v4233_v21 = vpop.permute.xlu0 %1950 }
 0x6b5   : > { %5103 = vst [vmem:[#allocation17_spill] sm:$0xff] %v4233_v21 }
 0x6b6   : > { %v1516_v8 = vpack.c.bf16 %v1506_v58, %v1505_v25  ;;  %v4208_v31 = vpop.permute.xlu1 %2115 }
 0x6b7   : > { %5102 = vst [vmem:[#allocation16_spill] sm:$0xff] %v4208_v31 }
 0x6b8   : > { %3223 = vmatprep.mubr.msk.bf16.mxu1 %vm766_vm4, %v1516_v8 }
 0x6b9   : > { %3224 = vmatmul.mubr.msk.bf16.gmra.mxu1 %vm766_vm4, %v1517_v11 }
 0x6ba   : > { %v4210_v26 = vpop.permute.xlu1 %2147 }
 0x6be   : > { %v4214_v44 = vpop.permute.xlu1 %2155 }
 0x6c2   : > { %v4223_v39 = vpop.permute.xlu1 %2187 }
 0x6c6   : > { %v4238_v11 = vpop.permute.xlu1 %1942 }
 0x771   : > { %v3221_v33 = vpop.f32.mrf.mxu1 }
 0x772   : > { %v1588_v1 = vadd.f32 %v3221_v33, %v4184_v57 }
 0x773   : > { %v1579_v36 = vpop.f32.mrf.mxu1 }
 0x774   : > { %v4219_v38 = vadd.f32 2.0, %v1588_v1  ;;  %v1580_v19 = vadd.f32 %v1579_v36, %v4184_v57  ;;  %1734 = vrot.lane.b32.xlu1 %v1588_v1, %s3633_s14 }
 0x775   : > { %v3222_v42 = vpop.f32.mrf.mxu1 }
 0x776   : > { %v1620_v10 = vand.u32 2147483647, %v4219_v38  ;;  %v4226_v54 = vadd.f32 2.0, %v1580_v19  ;;  %v1591_v12 = vadd.f32 %v3222_v42, %v4184_v57  ;;  %1730 = vrot.lane.b32.xlu0 %v1580_v19, %s3633_s14  ;;  %vm1700_vm13 = vcmp.ge.f32.partialorder %v4219_v38, 0.0 }
 0x777   : > { %v1582_v23 = vpop.f32.mrf.mxu1 }
 0x778   : > { %v1628_v14 = vsub.f32 0.0, %v1620_v10  ;;  %v1618_v17 = vand.u32 2147483647, %v4226_v54  ;;  %v4231_v41 = vadd.f32 2.0, %v1591_v12  ;;  %v1583_v24 = vadd.f32 %v1582_v23, %v4184_v57 }
 0x779   : > { %v3225_v25 = vpop.f32.mrf.mxu1  ;;  %vm1698_vm14 = vcmp.ge.f32.partialorder %v4226_v54, 0.0 }
 0x77a   : > { %v1638_v58 = vmul.f32 1.442695, %v1628_v14  ;;  %v1626_v28 = vsub.f32 0.0, %v1618_v17  ;;  %v1621_v8 = vand.u32 2147483647, %v4231_v41  ;;  %1736 = vrot.lane.b32.xlu0 %v1591_v12, %s3633_s14  ;;  %v4240_v53 = vadd.f32 2.0, %v1583_v24  ;;  %1732 = vrot.lane.b32.xlu1 %v1583_v24, %s3633_s14 }
 0x77b   : > { %v1604_v33 = vadd.f32 %v3225_v25, %v4184_v57  ;;  %v1595_v1 = vpop.f32.mrf.mxu1  ;;  %v4251_v25 = vpop.permute.xlu0 %1983  ;;  %vm1701_vm0 = vcmp.ge.f32.partialorder %v4231_v41, 0.0 }
 0x77c   : > { %3542 = vpow2.f32 %v1638_v58  ;;  %v1634_v36 = vmul.f32 1.442695, %v1626_v28  ;;  %v1629_v19 = vsub.f32 0.0, %v1621_v8  ;;  %v1596_v42 = vadd.f32 %v1595_v1, %v4184_v57  ;;  %5104 = vst [vmem:[#allocation18_spill] sm:$0xff] %v4251_v25 }
 0x77d   : > { %v1619_v10 = vand.u32 2147483647, %v4240_v53  ;;  %v4246_v23 = vadd.f32 2.0, %v1604_v33  ;;  %v3226_v14 = vpop.f32.mrf.mxu1  ;;  %v1651_v20 = vmin.f32 %v4240_v53, 0.0  ;;  %vm1699_vm15 = vcmp.ge.f32.partialorder %v4240_v53, 0.0 }
 0x77e   : > { %3544 = vpow2.f32 %v1634_v36  ;;  %v1640_v12 = vmul.f32 1.442695, %v1629_v19  ;;  %v4248_v17 = vadd.f32 2.0, %v1596_v42  ;;  %v1607_v56 = vadd.f32 %v3226_v14, %v4184_v57  ;;  %1742 = vrot.lane.b32.xlu1 %v1604_v33, %s3633_s14  ;;  %v4259_v36 = vpop.permute.xlu1 %2191 }
 0x77f   : > { %v1627_v24 = vsub.f32 0.0, %v1619_v10  ;;  %v1624_v58 = vand.u32 2147483647, %v4246_v23  ;;  %v1598_v28 = vpop.f32.mrf.mxu1  ;;  %5105 = vst [vmem:[#allocation19_spill] sm:$0xff] %v4259_v36  ;;  %vm1704_vm5 = vcmp.ge.f32.partialorder %v4246_v23, 0.0 }
 0x780   : > { %3546 = vpow2.f32 %v1640_v12  ;;  %v1622_v8 = vand.u32 2147483647, %v4248_v17  ;;  %v4256_v1 = vadd.f32 2.0, %v1607_v56  ;;  %1744 = vrot.lane.b32.xlu0 %v1607_v56, %s3633_s14  ;;  %v1599_v14 = vadd.f32 %v1598_v28, %v4184_v57  ;;  %v4267_v56 = vpop.permute.xlu0 %1991 }
 0x781   : > { %v1636_v19 = vmul.f32 1.442695, %v1627_v24  ;;  %v1632_v9 = vsub.f32 0.0, %v1624_v58  ;;  %vm1702_vm8 = vcmp.ge.f32.partialorder %v4248_v17, 0.0 }
 0x782   : > { %v1630_v5 = vsub.f32 0.0, %v1622_v8  ;;  %v1625_v10 = vand.u32 2147483647, %v4256_v1  ;;  %v4263_v33 = vadd.f32 2.0, %v1599_v14  ;;  %1738 = vrot.lane.b32.xlu1 %v1596_v42, %s3633_s14  ;;  %v4270_v58 = vpop.permute.xlu1 %2195  ;;  %vm1705_vm7 = vcmp.ge.f32.partialorder %v4256_v1, 0.0 }
 0x783   : > { %3548 = vpow2.f32 %v1636_v19  ;;  %v1646_v29 = vmul.f32 1.442695, %v1632_v9  ;;  %5106 = vst [vmem:[#allocation20_spill] sm:$0xff] %v4270_v58 }
 0x784   : > { %v1642_v12 = vmul.f32 1.442695, %v1630_v5  ;;  %v1633_v0 = vsub.f32 0.0, %v1625_v10  ;;  %1879 = vperm.xlu0 %3320, %v4076_v46   ;;  %v1623_v24 = vand.u32 2147483647, %v4263_v33  ;;  %v4279_v42 = vpop.permute.xlu0 %1999  ;;  %vm1703_vm10 = vcmp.ge.f32.partialorder %v4263_v33, 0.0 }
 0x785   : > { %3550 = vpow2.f32 %v1646_v29  ;;  %5107 = vst [vmem:[#allocation21_spill] sm:$0xff] %v4279_v42 }
 0x786   : > { %3552 = vpow2.f32 %v1642_v12  ;;  %v1648_v57 = vmul.f32 1.442695, %v1633_v0  ;;  %v1631_v28 = vsub.f32 0.0, %v1623_v24  ;;  %1884 = vperm.xlu1 %3321, %v4082_v47   ;;  %v4288_v47 = vpop.permute.xlu1 %1954 }
 0x787   : > { %5108 = vst [vmem:[#allocation22_spill] sm:$0xff] %v4288_v47  ;;  %v1653_v47 = vmin.f32 %v4231_v41, 0.0 }
 0x788   : > { %3554 = vpow2.f32 %v1648_v57  ;;  %1894 = vperm.xlu0 %3320, %v4102_v48   ;;  %v1644_v5 = vmul.f32 1.442695, %v1631_v28 }
 0x789   : > { %v4274_v9 = vpop.eup %3542 }
 0x78a   : > { %v4277_v46 = vadd.f32 1.0, %v4274_v9  ;;  %3556 = vpow2.f32 %v1644_v5  ;;  %1740 = vrot.lane.b32.xlu1 %v1599_v14, %s3633_s14  ;;  %v4301_v14 = vpop.permute.xlu0 %2011  ;;  %v4309_v12 = vpop.permute.xlu1 %2003 }
 0x78b   : > { %v4281_v29 = vpop.eup %3544  ;;  %5109 = vst [vmem:[#allocation23_spill] sm:$0xff] %v4301_v14  ;;  %5110 = vst [vmem:[#allocation24_spill] sm:$0xff] %v4309_v12  ;;  %v1652_v14 = vmin.f32 %v4219_v38, 0.0  ;;  %v1650_v12 = vmin.f32 %v4226_v54, 0.0 }
 0x78c   : > { %v4285_v0 = vadd.f32 1.0, %v4281_v29  ;;  %1899 = vperm.xlu0 %3320, %v4118_v16   ;;  %3558 = vlog2.f32 %v4277_v46 }
 0x78d   : > { %v4290_v48 = vpop.eup %3546 }
 0x78e   : > { %v4294_v8 = vadd.f32 1.0, %v4290_v48  ;;  %1889 = vperm.xlu1 %3321, %v4090_v18   ;;  %3560 = vlog2.f32 %v4285_v0  ;;  %v4317_v57 = vpop.permute.xlu0 %2023  ;;  %v4333_v37 = vpop.permute.xlu1 %2007 }
 0x78f   : > { %5111 = vst [vmem:[#allocation25_spill] sm:$0xff] %v4317_v57  ;;  %5113 = vst [vmem:[#allocation26_spill] sm:$0xff] %v4333_v37 }
 0x790   : > { %v4298_v19 = vpop.eup %3548  ;;  %1909 = vperm.xlu0 %3320, %v4107_v34   ;;  %3562 = vlog2.f32 %v4294_v8  ;;  %v5112_v34 = vmov 8  }
 0x791   : > { %v4304_v16 = vadd.f32 1.0, %v4298_v19 }
 0x792   : > { %v4307_v10 = vpop.eup %3550  ;;  %1904 = vperm.xlu1 %3321, %v4095_v59   ;;  %v4339_v40 = vpop.permute.xlu0 %2035 }
 0x793   : > { %v4311_v24 = vpop.eup %3552  ;;  %3564 = vlog2.f32 %v4304_v16  ;;  %v4324_v5 = vadd.f32 1.0, %v4307_v10  ;;  %v4347_v50 = vpop.permute.xlu1 %2039 }
 0x794   : > { %v4315_v18 = vadd.f32 1.0, %v4311_v24  ;;  %3482 = vset.pattern.permute.xlu0 %v5112_v34  ;;  %5115 = vst [vmem:[#allocation28_spill] sm:$0xff] %v4347_v50 }
 0x795   : > { %v4321_v28 = vpop.eup %3554 }
 0x796   : > { %v4327_v45 = vadd.f32 1.0, %v4321_v28  ;;  %1914 = vperm.xlu1 %3321, %v4125_v3   ;;  %3566 = vlog2.f32 %v4315_v18  ;;  %v4352_v63 = vpop.permute.xlu0 %2043 }
 0x797   : > { %v4331_v59 = vpop.eup %3556  ;;  %3568 = vlog2.f32 %v4324_v5  ;;  %5117 = vst [vmem:[#allocation30_spill] sm:$0xff] %v4352_v63 }
 0x798   : > { %v4336_v49 = vadd.f32 1.0, %v4331_v59  ;;  %3570 = vlog2.f32 %v4327_v45 }
 0x799   : > { %v3559_v34 = vpop.eup %3558 }
 0x79a   : > { %v1671_v42 = vmul.f32 0.6931472, %v3559_v34  ;;  %3572 = vlog2.f32 %v4336_v49 }
 0x79b   : > { %v3561_v3 = vpop.eup %3560  ;;  %3574 = vrcp.f32 %v4277_v46 }
 0x79c   : > { %v1667_v36 = vmul.f32 0.6931472, %v3561_v3  ;;  %v4345_v37 = vsub.f32 %v1652_v14, %v1671_v42  ;;  %v4357_v3 = vpop.permute.xlu1 %2047  ;;  %v1654_v14 = vmin.f32 %v4248_v17, 0.0  ;;  %3576 = vrcp.f32 %v4285_v0 }
 0x79d   : > { %v3563_v58 = vpop.eup %3562  ;;  %5119 = vst [vmem:[#allocation32_spill] sm:$0xff] %v4357_v3  ;;  %3578 = vrcp.f32 %v4294_v8 }
 0x79e   : > { %5114 = vst [vmem:[#allocation27_spill] sm:$0xff] %v4345_v37  ;;  %v4350_v57 = vsub.f32 %v1650_v12, %v1667_v36  ;;  %v1673_v21 = vmul.f32 0.6931472, %v3563_v58  ;;  %v4362_v36 = vpop.permute.xlu0 %2067  ;;  %v1656_v12 = vmin.f32 %v4246_v23, 0.0  ;;  %3580 = vrcp.f32 %v4304_v16 }
 0x79f   : > { %3582 = vrcp.f32 %v4324_v5  ;;  %v5088_v5 = vlaneseq }
 0x7a0   : > { %5116 = vst [vmem:[#allocation29_spill] sm:$0xff] %v4350_v57  ;;  %v3565_v25 = vpop.eup %3564  ;;  %v4354_v34 = vsub.f32 %v1653_v47, %v1673_v21  ;;  %v1657_v47 = vmin.f32 %v4256_v1, 0.0  ;;  %3584 = vrcp.f32 %v4315_v18 }
 0x7a1   : > { %v1669_v31 = vmul.f32 0.6931472, %v3565_v25  ;;  %3586 = vrcp.f32 %v4327_v45 }
 0x7a2   : > { %5118 = vst [vmem:[#allocation31_spill] sm:$0xff] %v4354_v34  ;;  %v4375_v3 = vpop.permute.xlu0 %2075  ;;  %3588 = vrcp.f32 %v4336_v49 }
 0x7a3   : > { %v3567_v6 = vpop.eup %3566  ;;  %v4359_v42 = vsub.f32 %v1651_v20, %v1669_v31  ;;  %v1655_v20 = vmin.f32 %v4263_v33, 0.0  ;;  %v4371_v31 = vpop.permute.xlu1 %2051 }
 0x7a4   : > { %v1675_v37 = vmul.f32 0.6931472, %v3567_v6  ;;  %v3569_v50 = vpop.eup %3568  ;;  %5123 = vst [vmem:[#allocation36_spill] sm:$0xff] %v4371_v31 }
 0x7a5   : > { %5120 = vst [vmem:[#allocation33_spill] sm:$0xff] %v4359_v42  ;;  %v3571_v58 = vpop.eup %3570  ;;  %v1679_v21 = vmul.f32 0.6931472, %v3569_v50 }
 0x7a6   : > { %v4365_v57 = vsub.f32 %v1654_v14, %v1675_v37  ;;  %v1681_v25 = vmul.f32 0.6931472, %v3571_v58  ;;  %v4381_v50 = vpop.permute.xlu0 %2079 }
 0x7a7   : > { %v3573_v34 = vpop.eup %3572  ;;  %v4368_v63 = vsub.f32 %v1656_v12, %v1679_v21  ;;  %v4379_v37 = vpop.permute.xlu1 %2083  ;;  %5127 = vst [vmem:[#allocation40_spill] sm:$0xff] %v4381_v50 }
 0x7a8   : > { %5121 = vst [vmem:[#allocation34_spill] sm:$0xff] %v4365_v57  ;;  %v1677_v6 = vmul.f32 0.6931472, %v3573_v34  ;;  %v4373_v42 = vsub.f32 %v1657_v47, %v1681_v25  ;;  %5126 = vst [vmem:[#allocation39_spill] sm:$0xff] %v4379_v37  ;;  %v3575_v46 = vpop.eup %3574 }
 0x7a9   : > { %5122 = vst [vmem:[#allocation35_spill] sm:$0xff] %v4368_v63  ;;  %v3577_v0 = vpop.eup %3576  ;;  %v1708_v16 = vmul.f32 %v3575_v46, %v4274_v9 }
 0x7aa   : > { %5124 = vst [vmem:[#allocation37_spill] sm:$0xff] %v4373_v42  ;;  %v4377_v13 = vsub.f32 %v1655_v20, %v1677_v6  ;;  %v4385_v58 = vpop.permute.xlu0 %2091  ;;  %v3579_v8 = vpop.eup %3578  ;;  %v1706_v45 = vmul.f32 %v3577_v0, %v4281_v29 }
 0x7ab   : > { %v4383_v14 = vpop.permute.xlu1 %2087  ;;  %5129 = vst [vmem:[#allocation42_spill] sm:$0xff] %v4385_v58  ;;  %v4431_v58 = vshrl.u32 %v5088_v5, 7 }
 0x7ac   : > { %5125 = vst [vmem:[#allocation38_spill] sm:$0xff] %v4377_v13  ;;  %5128 = vst [vmem:[#allocation41_spill] sm:$0xff] %v4383_v14  ;;  %v1714_v29 = vsel %vm1698_vm14, %v3577_v0, %v1706_v45  ;;  %vm2530_vm14 = vcmask 228352  }
 0x7ad   : > { %vm1973_vm6 = vcmp.lt.s32.totalorder %v4431_v58, 7  ;;  %vm1860_vm9 = vcmp.lt.s32.totalorder %v4431_v58, 1 }
 0x7ae   : > { %v4389_v21 = vpop.permute.xlu0 %2107 }
 0x7af   : > { %v4387_v12 = vpop.permute.xlu1 %2119 }
 0x7b0   : > { %5130 = vst [vmem:[#allocation43_spill] sm:$0xff] %v4387_v12 }
 0x7b2   : > { %v4393_v34 = vpop.permute.xlu0 %2123 }
 0x7b3   : > { %v4391_v63 = vpop.permute.xlu1 %2127  ;;  %5132 = vst [vmem:[#allocation45_spill] sm:$0xff] %v4393_v34 }
 0x7b4   : > { %5131 = vst [vmem:[#allocation44_spill] sm:$0xff] %v4391_v63 }
 0x7b6   : > { %v4397_v25 = vpop.permute.xlu0 %2143 }
 0x7b7   : > { %v4395_v47 = vpop.permute.xlu1 %2131 }
 0x7b8   : > { %5133 = vst [vmem:[#allocation46_spill] sm:$0xff] %v4395_v47 }
 0x7ba   : > { %v4401_v6 = vpop.permute.xlu0 %2151 }
 0x7bb   : > { %v4399_v20 = vpop.permute.xlu1 %2163 }
 0x7be   : > { %v4405_v13 = vpop.permute.xlu0 %2159 }
 0x7bf   : > { %v4403_v42 = vpop.permute.xlu1 %2167 }
 0x7c0   : > { %5134 = vst [vmem:[#allocation47_spill] sm:$0xff] %v4403_v42 }
 0x7c2   : > { %v4414_v34 = vpop.permute.xlu0 %2171 }
 0x7c3   : > { %v4408_v57 = vpop.permute.xlu1 %2199  ;;  %5136 = vst [vmem:[#allocation49_spill] sm:$0xff] %v4414_v34  ;;  %v3581_v34 = vpop.eup %3580 }
 0x7c4   : > { %5135 = vst [vmem:[#allocation48_spill] sm:$0xff] %v4408_v57  ;;  %v3583_v50 = vpop.eup %3582 }
 0x7c5   : > { %v3585_v31 = vpop.eup %3584 }
 0x7c6   : > { %v4420_v42 = vpop.permute.xlu0 %2183  ;;  %v3587_v47 = vpop.eup %3586 }
 0x7c7   : > { %v4418_v12 = vpop.permute.xlu1 %2207  ;;  %v1713_v14 = vmul.f32 %v3587_v47, %v4321_v28 }
 0x7c8   : > { %5137 = vst [vmem:[#allocation50_spill] sm:$0xff] %v4418_v12 }
 0x7ca   : > { %v4424_v37 = vpop.permute.xlu0 %2203 }
 0x7cb   : > { %v4422_v57 = vpop.permute.xlu1 %2211  ;;  %5139 = vst [vmem:[#allocation52_spill] sm:$0xff] %v4424_v37 }
 0x7cc   : > { %5138 = vst [vmem:[#allocation51_spill] sm:$0xff] %v4422_v57  ;;  %v1716_v57 = vsel %vm1700_vm13, %v3575_v46, %v1708_v16  ;;  %v1709_v46 = vmul.f32 %v3579_v8, %v4290_v48  ;;  %v1712_v16 = vmul.f32 %v3583_v50, %v4307_v10  ;;  %v1721_v10 = vsel %vm1705_vm7, %v3587_v47, %v1713_v14 }
 0x7cd   : > { %vm2521_vm13 = vcmask 195584  }
 0x7ce   : > { %v1717_v23 = vsel %vm1701_vm0, %v3579_v8, %v1709_v46 }
 0x7e6   : > { %v1735_v18 = vpop.permute.xlu1 %1734 }
 0x7e7   : > { %v1756_v12 = vadd.f32 %v4024_v51, %v1735_v18  ;;  %v1707_v18 = vmul.f32 %v3581_v34, %v4298_v19  ;;  %v1720_v19 = vsel %vm1704_vm5, %v3583_v50, %v1712_v16 }
 0x7e8   : > { %v1731_v63 = vpop.permute.xlu0 %1730 }
 0x7e9   : > { %v1764_v9 = vmul.f32 %v1756_v12, %v1716_v57  ;;  %v1754_v38 = vadd.f32 %v1731_v63, %v4026_v55  ;;  %v1710_v57 = vmul.f32 %v3585_v31, %v4311_v24  ;;  %v1715_v41 = vsel %vm1699_vm15, %v3581_v34, %v1707_v18 }
 0x7ea   : > { %vm2571_vm15 = vcmask 293888  }
 0x7eb   : > { %v4447_v5 = vsel %vm653_vm3, %v4024_v51, %v1764_v9  ;;  %v1762_v37 = vmul.f32 %v1754_v38, %v1714_v29  ;;  %v1718_v24 = vsel %vm1702_vm8, %v3585_v31, %v1710_v57 }
 0x7ec   : > { %1844 = vst.msk [vmem:[%s4438_s12 + $0x10] sm:$0xff] %vm558_vm1, %v4447_v5  ;;  %v1737_v63 = vpop.permute.xlu0 %1736  ;;  %v1733_v54 = vpop.permute.xlu1 %1732  ;;  %v1960_v17 = vmul.f32 %v4190_v15, %v4447_v5  ;;  %v2175_v28 = vmul.f32 %v4210_v26, %v4447_v5  ;;  %v1852_v50 = vrot.slane %v4447_v5, 7 }
 0x7ed   : > { %v4460_v51 = vsel %vm653_vm3, %v4026_v55, %v1762_v37  ;;  %v1757_v48 = vadd.f32 %v4028_v60, %v1737_v63  ;;  %v1755_v53 = vadd.f32 %v1733_v54, %v4030_v30  ;;  %v1967_v37 = vrot.slane %v4447_v5, 1 }
 0x7ee   : > { %1842 = vst.msk [vmem:[%s4438_s12] sm:$0xff] %vm558_vm1, %v4460_v51  ;;  %v1965_v49 = vrot.slane %v4460_v51, 1  ;;  %v1850_v31 = vrot.slane %v4460_v51, 7 }
 0x7ef   : > { %v1765_v55 = vmul.f32 %v1757_v48, %v1717_v23  ;;  %v1763_v1 = vmul.f32 %v1755_v53, %v1715_v41 }
 0x7f0   : > { %v1743_v34 = vpop.permute.xlu1 %1742 }
 0x7f1   : > { %v4478_v12 = vsel %vm653_vm3, %v4028_v60, %v1765_v55  ;;  %v4485_v14 = vsel %vm653_vm3, %v4030_v30, %v1763_v1  ;;  %v1760_v15 = vadd.f32 %v4036_v61, %v1743_v34  ;;  %v3589_v1 = vpop.eup %3588 }
 0x7f2   : > { %1845 = vst.msk [vmem:[%s4438_s12 + $0x18] sm:$0xff] %vm558_vm1, %v4478_v12  ;;  %v1745_v26 = vpop.permute.xlu0 %1744  ;;  %v3322_v60 = vpack.i.bf16 %v4478_v12, %v4447_v5  ;;  %v1968_v47 = vrot.slane %v4478_v12, 1  ;;  %1843 = vst.msk [vmem:[%s4438_s12 + $0x8] sm:$0xff] %vm558_vm1, %v4485_v14  ;;  %v3327_v30 = vpack.i.bf16 %v4485_v14, %v4460_v51  ;;  %v1959_v8 = vmul.f32 %v4188_v43, %v4485_v14 }
 0x7f3   : > { %v1761_v0 = vadd.f32 %v4042_v62, %v1745_v26  ;;  %v2174_v45 = vmul.f32 %v4397_v25, %v4485_v14  ;;  %v1768_v9 = vmul.f32 %v1760_v15, %v1720_v19  ;;  %v1966_v38 = vrot.slane %v4485_v14, 1 }
 0x7f4   : > { %3323 = vrot.lane.b32.xlu0 %v3322_v60, %s3642_s19  ;;  %v4510_v29 = vsel %vm1973_vm6, %v1967_v37, %v1968_v47  ;;  %v1851_v18 = vrot.slane %v4485_v14, 7  ;;  %3328 = vrot.lane.b32.xlu1 %v3327_v30, %s3642_s19  ;;  %v1739_v25 = vpop.permute.xlu1 %1738  ;;  %v3332_v46 = vpack.i.bf16 %v1960_v17, %v1959_v8  ;;  %v1853_v19 = vrot.slane %v4478_v12, 7  ;;  %v5140_v8 = vld [vmem:[#allocation11_spill] sm:$0xff] }
 0x7f5   : > { %v1769_v43 = vmul.f32 %v1761_v0, %v1721_v10  ;;  %v3337_v16 = vpack.i.bf16 %v2175_v28, %v2174_v45  ;;  %v2017_v57 = vmul.f32 %v4194_v2, %v4510_v29  ;;  %v4518_v63 = vsel %vm653_vm3, %v4036_v61, %v1768_v9 }
 0x7f6   : > { %v1758_v54 = vadd.f32 %v1739_v25, %v4039_v52  ;;  %v1979_v48 = vsel %vm1973_vm6, %v1966_v38, %v1967_v37  ;;  %v4527_v41 = vsel %vm1973_vm6, %v1965_v49, %v1966_v38  ;;  %1848 = vst.msk [vmem:[%s4438_s12 + $0x30] sm:$0xff] %vm558_vm1, %v4518_v63  ;;  %v4562_v10 = vsel %vm1860_vm9, %v1852_v50, %v1853_v19 }
 0x7f7   : > { %v4534_v2 = vsel %vm653_vm3, %v4042_v62, %v1769_v43  ;;  %v2016_v61 = vmul.f32 %v4267_v56, %v1979_v48  ;;  %v2094_v53 = vmul.f32 %v4200_v4, %v4527_v41  ;;  %v2095_v23 = vmul.f32 %v4362_v36, %v1979_v48 }
 0x7f8   : > { %1849 = vst.msk [vmem:[%s4438_s12 + $0x38] sm:$0xff] %vm558_vm1, %v4534_v2  ;;  %v1766_v55 = vmul.f32 %v1758_v54, %v1718_v24  ;;  %3333 = vrot.lane.b32.xlu0 %v3332_v46, %s3633_s14  ;;  %3338 = vrot.lane.b32.xlu1 %v3337_v16, %s3643_s23  ;;  %v4548_v62 = vsel %vm1860_vm9, %v1851_v18, %v1852_v50  ;;  %v1972_v33 = vrot.slane %v4534_v2, 1  ;;  %v1857_v54 = vrot.slane %v4534_v2, 7 }
 0x7f9   : > { %v4554_v4 = vsel %vm1860_vm9, %v1850_v31, %v1851_v18  ;;  %v3342_v36 = vpack.i.bf16 %v2017_v57, %v2016_v61  ;;  %v2056_v24 = vmul.f32 %v4198_v27, %v4548_v62  ;;  %v3352_v17 = vpack.i.bf16 %v2095_v23, %v2094_v53  ;;  %v3491_v61 = vld [vmem:[%s5081_s8 + $0x10] ss:$0 sps:$4 sm:$0x33]   ;;  %v5142_v53 = vld [vmem:[#allocation16_spill] sm:$0xff] }
 0x7fa   : > { %v4558_v56 = vsel %vm653_vm3, %v4039_v52, %v1766_v55  ;;  %v2057_v28 = vmul.f32 %v4339_v40, %v4562_v10  ;;  %v2134_v52 = vmul.f32 %v4204_v7, %v4554_v4  ;;  %v2135_v37 = vmul.f32 %v4389_v21, %v4548_v62  ;;  %3248 = vmatprep.subr.msk.bf16.mxu0 %vm666_vm2, %v3491_v61 }
 0x7fb   : > { %1846 = vst.msk [vmem:[%s4438_s12 + $0x20] sm:$0xff] %vm558_vm1, %v4558_v56  ;;  %v2177_v34 = vmul.f32 %v4214_v44, %v4558_v56  ;;  %v2214_v15 = vmul.f32 %v4420_v42, %v1979_v48  ;;  %v2215_v40 = vmul.f32 %v4223_v39, %v4510_v29  ;;  %v2176_v7 = vmul.f32 %v4401_v6, %v4478_v12 }
 0x7fc   : > { %3343 = vrot.lane.b32.xlu0 %v3342_v36, %s3644_s13  ;;  %3353 = vrot.lane.b32.xlu1 %v3352_v17, %s3645_s28  ;;  %v3347_v27 = vpack.i.bf16 %v2057_v28, %v2056_v24  ;;  %v3357_v50 = vpack.i.bf16 %v2135_v37, %v2134_v52  ;;  %v1962_v44 = vmul.f32 %v4217_v35, %v4558_v56  ;;  %v1969_v39 = vrot.slane %v4558_v56, 1  ;;  %v5144_v36 = vld [vmem:[#allocation18_spill] sm:$0xff]  ;;  %v5145_v52 = vld [vmem:[#allocation12_spill] sm:$0xff] }
 0x7fd   : > { %v3367_v26 = vpack.i.bf16 %v2177_v34, %v2176_v7  ;;  %v3362_v60 = vpack.i.bf16 %v2215_v40, %v2214_v15  ;;  %v1957_v42 = vmul.f32 %v4186_v22, %v4534_v2  ;;  %v1711_v0 = vmul.f32 %v3589_v1, %v4331_v59  ;;  %v5147_v15 = vld [vmem:[#allocation25_spill] sm:$0xff] }
 0x7fe   : > { %v1961_v6 = vmul.f32 %v4238_v11, %v4478_v12  ;;  %v1958_v30 = vmul.f32 %v4212_v32, %v4460_v51  ;;  %v1854_v38 = vrot.slane %v4558_v56, 7  ;;  %v4607_v11 = vsel %vm1973_vm6, %v1968_v47, %v1969_v39 }
 0x7ff   : > { %v1719_v59 = vsel %vm1703_vm10, %v3589_v1, %v1711_v0  ;;  %v3377_v18 = vpack.i.bf16 %v4534_v2, %v4518_v63  ;;  %v2097_v43 = vmul.f32 %v4375_v3, %v4607_v11  ;;  %v5141_v3 = vld [vmem:[#allocation14_spill] sm:$0xff]  ;;  %v4641_v48 = vsel %vm1973_vm6, %v1972_v33, %v1965_v49  ;;  %v5143_v49 = vld [vmem:[#allocation15_spill] sm:$0xff]  ;;  %v5149_v0 = vld [vmem:[#allocation13_spill] sm:$0xff] }
 0x800   : > { %3348 = vrot.lane.b32.xlu0 %v3347_v27, %s3646_s15  ;;  %3358 = vrot.lane.b32.xlu1 %v3357_v50, %s3647_s16  ;;  %v3372_v22 = vpack.i.bf16 %v1962_v44, %v1961_v6  ;;  %v3382_v9 = vpack.i.bf16 %v1958_v30, %v1957_v42  ;;  %v4624_v47 = vsel %vm1860_vm9, %v1853_v19, %v1854_v38  ;;  %v1971_v17 = vrot.slane %v4518_v63, 1  ;;  %v5146_v27 = vld [vmem:[#allocation17_spill] sm:$0xff]  ;;  %v3492_v50 = vld [vmem:[%s5081_s8 + $0x8] sm:$0xff]  }
 0x801   : > { %v4586_v21 = vpop.permute.xlu1 %1884  ;;  %v2096_v16 = vmul.f32 %v5141_v3, %v4510_v29  ;;  %v2137_v23 = vmul.f32 %v5142_v53, %v4624_v47  ;;  %v2136_v19 = vmul.f32 %v5143_v49, %v4562_v10  ;;  %v2014_v24 = vmul.f32 %v5144_v36, %v4641_v48  ;;  %v5157_v36 = vld [vmem:[#allocation21_spill] sm:$0xff] }
 0x802   : > { %v4661_v1 = vsel %vm1860_vm9, %v1857_v54, %v1850_v31  ;;  %v2015_v37 = vmul.f32 %v5145_v52, %v4527_v41  ;;  %v4675_v31 = vsel %vm1973_vm6, %v1971_v17, %v1972_v33  ;;  %v1856_v42 = vrot.slane %v4518_v63, 7  ;;  %v5152_v33 = vld [vmem:[#allocation20_spill] sm:$0xff]  ;;  %v5159_v52 = vld [vmem:[#allocation30_spill] sm:$0xff] }
 0x803   : > { %v3392_v29 = vpack.i.bf16 %v2097_v43, %v2096_v16  ;;  %v3397_v28 = vpack.i.bf16 %v2137_v23, %v2136_v19  ;;  %v2054_v40 = vmul.f32 %v5147_v15, %v4661_v1  ;;  %v2055_v6 = vmul.f32 %v5149_v0, %v4554_v4  ;;  %v5165_v0 = vld [vmem:[#allocation39_spill] sm:$0xff] }
 0x804   : > { %3368 = vrot.lane.b32.xlu0 %v3367_v26, %s3643_s23  ;;  %3363 = vrot.lane.b32.xlu1 %v3362_v60, %s3648_s26  ;;  %v3412_v7 = vpack.i.bf16 %v2015_v37, %v2014_v24  ;;  %v5148_v26 = vld [vmem:[#allocation22_spill] sm:$0xff]  ;;  %v2585_v60 = vsel %vm666_vm2, %v3491_v61, 0  ;;  %v2018_v24 = vmul.f32 %v5157_v36, %v4607_v11  ;;  %vm2494_vm2 = vcmask 97280  }
 0x805   : > { %v1741_v35 = vpop.permute.xlu1 %1740  ;;  %v1964_v44 = vmul.f32 %v5148_v26, %v4518_v63  ;;  %3228 = vmatpush3.bf16.msra.mxu0 %v2585_v60  ;;  %v5164_v60 = vld [vmem:[#allocation40_spill] sm:$0xff] }
 0x806   : > { %v1759_v45 = vadd.f32 %v1741_v35, %v5140_v8  ;;  %3229 = vmatprep.subr.bf16.mxu0 %v3492_v50 }
 0x808   : > { %3373 = vrot.lane.b32.xlu0 %v3372_v22, %s3633_s14  ;;  %v1767_v32 = vmul.f32 %v1759_v45, %v1719_v59  ;;  %3383 = vrot.lane.b32.xlu1 %v3382_v9, %s3633_s14  ;;  %v5150_v22 = vld [vmem:[#allocation41_spill] sm:$0xff]  ;;  %v5151_v45 = vld [vmem:[#allocation42_spill] sm:$0xff]  ;;  %v3493_v59 = vld [vmem:[%s5081_s8] sm:$0xff]  }
 0x809   : > { %v2101_v9 = vmul.f32 %v5151_v45, %v4641_v48  ;;  %3230 = vmatpush3.bf16.msra.mxu0 %v3492_v50  ;;  %v5161_v50 = vld [vmem:[#allocation28_spill] sm:$0xff]  ;;  %v5167_v45 = vld [vmem:[#allocation43_spill] sm:$0xff] }
 0x80a   : > { %v4618_v25 = vsel %vm653_vm3, %v5140_v8, %v1767_v32  ;;  %v2100_v8 = vmul.f32 %v5150_v22, %v4675_v31  ;;  %v4698_v32 = vsel %vm1860_vm9, %v1856_v42, %v1857_v54  ;;  %v5155_v54 = vld [vmem:[#allocation46_spill] sm:$0xff]  ;;  %3231 = vmatprep.subr.bf16.mxu0 %v3493_v59  ;;  %v2058_v15 = vmul.f32 %v5161_v50, %v4624_v47  ;;  %v5166_v22 = vld [vmem:[#allocation47_spill] sm:$0xff] }
 0x80b   : > { %1847 = vst.msk [vmem:[%s4438_s12 + $0x28] sm:$0xff] %vm558_vm1, %v4618_v25  ;;  %v3387_v46 = vpack.i.bf16 %v4618_v25, %v4558_v56  ;;  %v2178_v57 = vmul.f32 %v4405_v13, %v4618_v25  ;;  %v2179_v13 = vmul.f32 %v4399_v20, %v4518_v63  ;;  %v1970_v20 = vrot.slane %v4618_v25, 1 }
 0x80c   : > { %3378 = vrot.lane.b32.xlu0 %v3377_v18, %s3642_s19  ;;  %v1963_v34 = vmul.f32 %v5146_v27, %v4618_v25  ;;  %v1855_v43 = vrot.slane %v4618_v25, 7  ;;  %v3422_v16 = vpack.i.bf16 %v2101_v9, %v2100_v8  ;;  %v2141_v53 = vmul.f32 %v5155_v54, %v4661_v1  ;;  %v5160_v27 = vld [vmem:[#allocation23_spill] sm:$0xff]  ;;  %v5172_v54 = vld [vmem:[#allocation48_spill] sm:$0xff] }
 0x80d   : > { %3388 = vrot.lane.b32.xlu1 %v3387_v46, %s3642_s19  ;;  %v3407_v55 = vpack.i.bf16 %v2179_v13, %v2178_v57  ;;  %v1976_v30 = vsel %vm1973_vm6, %v1969_v39, %v1970_v20  ;;  %v3417_v39 = vpack.i.bf16 %v2055_v6, %v2054_v40  ;;  %v5153_v46 = vld [vmem:[#allocation19_spill] sm:$0xff]  ;;  %v5154_v57 = vld [vmem:[#allocation44_spill] sm:$0xff]  ;;  %v1975_v23 = vsel %vm1973_vm6, %v1970_v20, %v1971_v17 }
 0x80e   : > { %v3402_v35 = vpack.i.bf16 %v1964_v44, %v1963_v34  ;;  %v2217_v18 = vmul.f32 %v5152_v33, %v1976_v30  ;;  %v2216_v3 = vmul.f32 %v5153_v46, %v4607_v11  ;;  %v2140_v61 = vmul.f32 %v5154_v57, %v4698_v32  ;;  %v5156_v13 = vld [vmem:[#allocation24_spill] sm:$0xff]  ;;  %3232 = vmatpush3.bf16.msra.mxu0 %v3493_v59  ;;  %v5168_v59 = vld [vmem:[#allocation45_spill] sm:$0xff]  ;;  %v5170_v46 = vld [vmem:[#allocation50_spill] sm:$0xff] }
 0x80f   : > { %v4718_v49 = vsel %vm1860_vm9, %v1854_v38, %v1855_v43  ;;  %v4726_v20 = vsel %vm1860_vm9, %v1855_v43, %v1856_v42  ;;  %v2021_v34 = vmul.f32 %v5160_v27, %v4675_v31  ;;  %v5162_v11 = vld [vmem:[#allocation32_spill] sm:$0xff]  ;;  %v2098_v42 = vmul.f32 %v5164_v60, %v1976_v30  ;;  %v5171_v57 = vld [vmem:[#allocation51_spill] sm:$0xff] }
 0x810   : > { %3393 = vrot.lane.b32.xlu0 %v3392_v29, %s3645_s28  ;;  %v3432_v29 = vpack.i.bf16 %v2217_v18, %v2216_v3  ;;  %v3427_v19 = vpack.i.bf16 %v2141_v53, %v2140_v61  ;;  %v2059_v37 = vmul.f32 %v5159_v52, %v4718_v49  ;;  %v2060_v40 = vmul.f32 %v5162_v11, %v4726_v20  ;;  %v5169_v18 = vld [vmem:[#allocation49_spill] sm:$0xff] }
 0x811   : > { %3408 = vrot.lane.b32.xlu1 %v3407_v55, %s3643_s23  ;;  %v2019_v55 = vmul.f32 %v5156_v13, %v1976_v30  ;;  %v2099_v6 = vmul.f32 %v5165_v0, %v1975_v23  ;;  %v2180_v8 = vmul.f32 %v5166_v22, %v4534_v2  ;;  %v2138_v9 = vmul.f32 %v5167_v45, %v4718_v49  ;;  %v5173_v13 = vld [vmem:[#allocation52_spill] sm:$0xff] }
 0x812   : > { %v3447_v44 = vpack.i.bf16 %v2059_v37, %v2058_v15  ;;  %v2181_v30 = vmul.f32 %v5169_v18, %v4460_v51  ;;  %v2220_v3 = vmul.f32 %v5170_v46, %v4641_v48  ;;  %v2221_v61 = vmul.f32 %v5171_v57, %v4527_v41  ;;  %v4768_v48 = vld [vmem:[%s5082_s9] ss:$0 sm:$0xff]  ;;  %v1880_v41 = vpop.permute.xlu0 %1879 }
 0x813   : > { %v3437_v38 = vpack.i.bf16 %v2019_v55, %v2018_v24  ;;  %v3462_v33 = vpack.i.bf16 %v2099_v6, %v2098_v42  ;;  %v2218_v53 = vmul.f32 %v5172_v54, %v1975_v23  ;;  %v2219_v55 = vmul.f32 %v5173_v13, %v4675_v31 }
 0x814   : > { %3398 = vrot.lane.b32.xlu0 %v3397_v28, %s3647_s16  ;;  %v5158_v28 = vld [vmem:[#allocation26_spill] sm:$0xff]  ;;  %v3457_v43 = vpack.i.bf16 %v2181_v30, %v2180_v8  ;;  %v1917_v0 = vmul.f32 %v1880_v41, %v4698_v32  ;;  %v1918_v6 = vmul.f32 %v4586_v21, %v4661_v1 }
 0x815   : > { %3413 = vrot.lane.b32.xlu1 %v3412_v7, %s3644_s13  ;;  %v2020_v17 = vmul.f32 %v5158_v28, %v1975_v23  ;;  %v5163_v7 = vld [vmem:[#allocation36_spill] sm:$0xff]  ;;  %v1890_v23 = vpop.permute.xlu1 %1889 }
 0x816   : > { %v2061_v26 = vmul.f32 %v5163_v7, %v4698_v32  ;;  %v1895_v36 = vpop.permute.xlu0 %1894 }
 0x817   : > { %v3442_v58 = vpack.i.bf16 %v2021_v34, %v2020_v17  ;;  %v1920_v8 = vmul.f32 %v1895_v36, %v4548_v62 }
 0x818   : > { %3403 = vrot.lane.b32.xlu0 %v3402_v35, %s3633_s14  ;;  %v3452_v35 = vpack.i.bf16 %v2061_v26, %v2060_v40 }
 0x819   : > { %3418 = vrot.lane.b32.xlu1 %v3417_v39, %s3646_s15  ;;  %v2139_v39 = vmul.f32 %v5168_v59, %v4726_v20  ;;  %v4772_v24 = vpop.permute.xlu1 %1904 }
 0x81a   : > { %v4774_v28 = vpop.permute.xlu0 %1899 }
 0x81c   : > { %3423 = vrot.lane.b32.xlu0 %v3422_v16, %s3645_s28  ;;  %v3467_v16 = vpack.i.bf16 %v2139_v39, %v2138_v9  ;;  %v1919_v39 = vmul.f32 %v1890_v23, %v4554_v4 }
 0x81d   : > { %3433 = vrot.lane.b32.xlu1 %v3432_v29, %s3648_s26  ;;  %v3477_v29 = vpack.i.bf16 %v2221_v61, %v2220_v3  ;;  %v4778_v17 = vpop.permute.xlu1 %1914 }
 0x81e   : > { %v4776_v31 = vpop.permute.xlu0 %1909 }
 0x820   : > { %3428 = vrot.lane.b32.xlu0 %v3427_v19, %s3647_s16  ;;  %v3472_v19 = vpack.i.bf16 %v2219_v55, %v2218_v53 }
 0x821   : > { %3438 = vrot.lane.b32.xlu1 %v3437_v38, %s3644_s13 }
 0x824   : > { %3443 = vrot.lane.b32.xlu0 %v3442_v58, %s3644_s13 }
 0x825   : > { %3448 = vrot.lane.b32.xlu1 %v3447_v44, %s3646_s15 }
 0x828   : > { %3453 = vrot.lane.b32.xlu0 %v3452_v35, %s3646_s15 }
 0x829   : > { %3463 = vrot.lane.b32.xlu1 %v3462_v33, %s3645_s28 }
 0x82c   : > { %3458 = vrot.lane.b32.xlu0 %v3457_v43, %s3643_s23  ;;  %s3015_s23 = sshll.u32 %s5197_s20, 3 }
 0x82d   : > { %3468 = vrot.lane.b32.xlu1 %v3467_v16, %s3647_s16 }
 0x830   : > { %3478 = vrot.lane.b32.xlu0 %v3477_v29, %s3648_s26 }
 0x831   : > { %3473 = vrot.lane.b32.xlu1 %v3472_v19, %s3648_s26  ;;  %s517_s26 = scalar_lea.vmem %s5084_s11, %s3015_s23 }
 0x835   : > { %2667 = vrot.lane.b32.xlu1 %v4768_v48, %s3630_s22  ;;  %s3649_s22 = smov 124  }
 0x866   : > { %v3324_v52 = vpop.permute.xlu0 %3323  ;;  %v4780_v37 = vpop.permute.xlu1 %3328 }
 0x867   : > { %v3326_v30 = vunpack.i.h.bf16 %v3324_v52  ;;  %v3325_v43 = vunpack.i.l.bf16 %v3324_v52  ;;  %v3331_v32 = vunpack.i.h.bf16 %v4780_v37  ;;  %v3330_v1 = vunpack.i.l.bf16 %v4780_v37 }
 0x86a   : > { %v3334_v38 = vpop.permute.xlu0 %3333  ;;  %v4782_v27 = vpop.permute.xlu1 %3338 }
 0x86b   : > { %v3336_v35 = vunpack.i.h.bf16 %v3334_v38  ;;  %v3335_v22 = vunpack.i.l.bf16 %v3334_v38  ;;  %v3341_v3 = vunpack.i.h.bf16 %v4782_v27  ;;  %v3340_v4 = vunpack.i.l.bf16 %v4782_v27 }
 0x86d   : > { %v2481_v62 = vsel %vm653_vm3, %v1920_v8, %v3336_v35  ;;  %v2480_v46 = vsel %vm653_vm3, %v1919_v39, %v3335_v22 }
 0x86e   : > { %v3344_v34 = vpop.permute.xlu0 %3343  ;;  %v4784_v50 = vpop.permute.xlu1 %3353 }
 0x86f   : > { %v3346_v45 = vunpack.i.h.bf16 %v3344_v34  ;;  %v3345_v9 = vunpack.i.l.bf16 %v3344_v34  ;;  %v3356_v61 = vunpack.i.h.bf16 %v4784_v50  ;;  %v3355_v37 = vunpack.i.l.bf16 %v4784_v50 }
 0x871   : > { %v2488_v16 = vsel %vm558_vm1, %v2480_v46, %v3345_v9  ;;  %v2489_v57 = vsel %vm558_vm1, %v2481_v62, %v3346_v45 }
 0x872   : > { %v3349_v15 = vpop.permute.xlu0 %3348  ;;  %v4786_v11 = vpop.permute.xlu1 %3358 }
 0x873   : > { %v3351_v33 = vunpack.i.h.bf16 %v3349_v15  ;;  %v3350_v18 = vunpack.i.l.bf16 %v3349_v15  ;;  %v3361_v38 = vunpack.i.h.bf16 %v4786_v11  ;;  %v3360_v15 = vunpack.i.l.bf16 %v4786_v11 }
 0x875   : > { %v2497_v53 = vsel %vm2494_vm2, %v2488_v16, %v3350_v18  ;;  %v2498_v29 = vsel %vm2494_vm2, %v2489_v57, %v3351_v33 }
 0x876   : > { %v4788_v40 = vpop.permute.xlu0 %3368  ;;  %v4790_v58 = vpop.permute.xlu1 %3363  ;;  %v2506_v22 = vsel %vm2503_vm11, %v2497_v53, %v3325_v43 }
 0x877   : > { %v3371_v35 = vunpack.i.h.bf16 %v4788_v40  ;;  %v3366_v62 = vunpack.i.h.bf16 %v4790_v58  ;;  %v3370_v46 = vunpack.i.l.bf16 %v4788_v40 }
 0x87a   : > { %v4792_v7 = vpop.permute.xlu0 %3373  ;;  %v3384_v26 = vpop.permute.xlu1 %3383 }
 0x87b   : > { %v3386_v13 = vunpack.i.h.bf16 %v3384_v26  ;;  %v3385_v55 = vunpack.i.l.bf16 %v3384_v26  ;;  %v2507_v26 = vsel %vm2503_vm11, %v2498_v29, %v3326_v30 }
 0x87d   : > { %v2478_v45 = vsel %vm653_vm3, %v1917_v0, %v3385_v55 }
 0x87e   : > { %v4794_v44 = vpop.permute.xlu0 %3378 }
 0x87f   : > { %v4796_v60 = vpop.permute.xlu1 %3388 }
 0x882   : > { %v3394_v42 = vpop.permute.xlu0 %3393 }
 0x883   : > { %v4802_v59 = vpop.permute.xlu1 %3408  ;;  %v3396_v19 = vunpack.i.h.bf16 %v3394_v42  ;;  %v3395_v41 = vunpack.i.l.bf16 %v3394_v42  ;;  %v2479_v42 = vsel %vm653_vm3, %v1918_v6, %v3386_v13 }
 0x885   : > { %v2516_v50 = vsel %vm2512_vm12, %v2507_v26, %v3396_v19  ;;  %v2515_v33 = vsel %vm2512_vm12, %v2506_v22, %v3395_v41 }
 0x886   : > { %v3399_v21 = vpop.permute.xlu0 %3398 }
 0x887   : > { %v3414_v54 = vpop.permute.xlu1 %3413  ;;  %v3401_v27 = vunpack.i.h.bf16 %v3399_v21  ;;  %v3400_v34 = vunpack.i.l.bf16 %v3399_v21 }
 0x888   : > { %v3416_v23 = vunpack.i.h.bf16 %v3414_v54  ;;  %v3415_v36 = vunpack.i.l.bf16 %v3414_v54 }
 0x889   : > { %v2525_v43 = vsel %vm2521_vm13, %v2516_v50, %v3401_v27  ;;  %v2524_v30 = vsel %vm2521_vm13, %v2515_v33, %v3400_v34  ;;  %v3375_v27 = vunpack.i.l.bf16 %v4792_v7 }
 0x88a   : > { %v4816_v52 = vpop.permute.xlu0 %3403  ;;  %v2487_v18 = vsel %vm558_vm1, %v2479_v42, %v3416_v23  ;;  %v2486_v11 = vsel %vm558_vm1, %v2478_v45, %v3415_v36  ;;  %v2533_v19 = vsel %vm2530_vm14, %v2524_v30, %v3370_v46  ;;  %v2534_v41 = vsel %vm2530_vm14, %v2525_v43, %v3371_v35 }
 0x88b   : > { %v3419_v8 = vpop.permute.xlu1 %3418  ;;  %v3406_v42 = vunpack.i.h.bf16 %v4816_v52 }
 0x88c   : > { %v3421_v9 = vunpack.i.h.bf16 %v3419_v8  ;;  %v3420_v39 = vunpack.i.l.bf16 %v3419_v8  ;;  %v1922_v8 = vmul.f32 %v4772_v24, %v4624_v47 }
 0x88e   : > { %v4830_v21 = vpop.permute.xlu0 %3423  ;;  %v2495_v6 = vsel %vm2494_vm2, %v2486_v11, %v3420_v39  ;;  %v2496_v0 = vsel %vm2494_vm2, %v2487_v18, %v3421_v9  ;;  %v3380_v18 = vunpack.i.l.bf16 %v4794_v44 }
 0x88f   : > { %v2504_v16 = vsel %vm2503_vm11, %v2495_v6, %v3330_v1  ;;  %v2505_v57 = vsel %vm2503_vm11, %v2496_v0, %v3331_v32  ;;  %v3434_v54 = vpop.permute.xlu1 %3433  ;;  %v3365_v1 = vunpack.i.l.bf16 %v4790_v58  ;;  %v3376_v32 = vunpack.i.h.bf16 %v4792_v7 }
 0x890   : > { %v2513_v53 = vsel %vm2512_vm12, %v2504_v16, %v3355_v37  ;;  %v2514_v29 = vsel %vm2512_vm12, %v2505_v57, %v3356_v61  ;;  %v3436_v13 = vunpack.i.h.bf16 %v3434_v54  ;;  %v3435_v55 = vunpack.i.l.bf16 %v3434_v54 }
 0x891   : > { %v2522_v36 = vsel %vm2521_vm13, %v2513_v53, %v3360_v15  ;;  %v2523_v40 = vsel %vm2521_vm13, %v2514_v29, %v3361_v38  ;;  %v1921_v15 = vmul.f32 %v4774_v28, %v4562_v10  ;;  %v3405_v7 = vunpack.i.l.bf16 %v4816_v52 }
 0x892   : > { %v4844_v23 = vpop.permute.xlu0 %3428  ;;  %v2541_v37 = vsel %vm766_vm4, %v2533_v19, %v3435_v55  ;;  %v2542_v61 = vsel %vm766_vm4, %v2534_v41, %v3436_v13  ;;  %v2531_v35 = vsel %vm2530_vm14, %v2522_v36, %v3340_v4  ;;  %v2532_v26 = vsel %vm2530_vm14, %v2523_v40, %v3341_v3 }
 0x893   : > { %v2553_v34 = vpack.c.bf16 %v2542_v61, %v2541_v37  ;;  %v3439_v22 = vpop.permute.xlu1 %3438  ;;  %v2539_v38 = vsel %vm766_vm4, %v2531_v35, %v3365_v1  ;;  %v2540_v58 = vsel %vm766_vm4, %v2532_v26, %v3366_v62  ;;  %v1923_v3 = vmul.f32 %v4776_v31, %v4718_v49 }
 0x894   : > { %v2552_v45 = vpack.c.bf16 %v2540_v58, %v2539_v38  ;;  %v1924_v10 = vmul.f32 %v4778_v17, %v4726_v20  ;;  %v3441_v28 = vunpack.i.h.bf16 %v3439_v22  ;;  %v3440_v4 = vunpack.i.l.bf16 %v3439_v22 }
 0x895   : > { %v2482_v39 = vsel %vm653_vm3, %v1921_v15, %v3375_v27  ;;  %v2483_v50 = vsel %vm653_vm3, %v1922_v8, %v3376_v32  ;;  %v3381_v52 = vunpack.i.h.bf16 %v4794_v44  ;;  %v3391_v20 = vunpack.i.h.bf16 %v4796_v60 }
 0x896   : > { %v3444_v9 = vpop.permute.xlu0 %3443  ;;  %3233 = vmatprep.mubr.msk.bf16.mxu0 %vm2571_vm15, %v2552_v45  ;;  %v3390_v17 = vunpack.i.l.bf16 %v4796_v60  ;;  %v2485_v11 = vsel %vm653_vm3, %v1924_v10, %v3406_v42  ;;  %v2484_v43 = vsel %vm653_vm3, %v1923_v3, %v3405_v7  ;;  %v2490_v6 = vsel %vm558_vm1, %v2482_v39, %v3440_v4 }
 0x897   : > { %v3446_v47 = vunpack.i.h.bf16 %v3444_v9  ;;  %v3445_v24 = vunpack.i.l.bf16 %v3444_v9  ;;  %v3449_v33 = vpop.permute.xlu1 %3448  ;;  %3234 = vmatmul.mubr.msk.bf16.vlgmr.msra.gmra.mxu0 %vm2571_vm15, %v2553_v34  ;;  %v2491_v0 = vsel %vm558_vm1, %v2483_v50, %v3441_v28  ;;  %v3426_v53 = vunpack.i.h.bf16 %v4830_v21 }
 0x898   : > { %v3451_v49 = vunpack.i.h.bf16 %v3449_v33  ;;  %v3450_v31 = vunpack.i.l.bf16 %v3449_v33  ;;  %v3425_v29 = vunpack.i.l.bf16 %v4830_v21  ;;  %v3431_v32 = vunpack.i.h.bf16 %v4844_v23 }
 0x899   : > { %v2492_v44 = vsel %vm558_vm1, %v2484_v43, %v3445_v24  ;;  %v2493_v16 = vsel %vm558_vm1, %v2485_v11, %v3446_v47  ;;  %v3430_v37 = vunpack.i.l.bf16 %v4844_v23  ;;  %v3411_v28 = vunpack.i.h.bf16 %v4802_v59 }
 0x89a   : > { %v3454_v30 = vpop.permute.xlu0 %3453  ;;  %v2500_v57 = vsel %vm2494_vm2, %v2491_v0, %v3451_v49  ;;  %v2499_v54 = vsel %vm2494_vm2, %v2490_v6, %v3450_v31  ;;  %v3410_v4 = vunpack.i.l.bf16 %v4802_v59  ;;  %vm2840_vm1 = vcmask 7168  }
 0x89b   : > { %v3456_v62 = vunpack.i.h.bf16 %v3454_v30  ;;  %v3455_v46 = vunpack.i.l.bf16 %v3454_v30  ;;  %v3464_v60 = vpop.permute.xlu1 %3463  ;;  %v2508_v61 = vsel %vm2503_vm11, %v2499_v54, %v3390_v17  ;;  %v2509_v27 = vsel %vm2503_vm11, %v2500_v57, %v3391_v20 }
 0x89c   : > { %v3466_v36 = vunpack.i.h.bf16 %v3464_v60  ;;  %v3465_v40 = vunpack.i.l.bf16 %v3464_v60 }
 0x89d   : > { %v2501_v13 = vsel %vm2494_vm2, %v2492_v44, %v3455_v46  ;;  %v2502_v55 = vsel %vm2494_vm2, %v2493_v16, %v3456_v62 }
 0x89e   : > { %v2510_v19 = vsel %vm2503_vm11, %v2501_v13, %v3380_v18  ;;  %v2511_v41 = vsel %vm2503_vm11, %v2502_v55, %v3381_v52  ;;  %v3459_v1 = vpop.permute.xlu0 %3458  ;;  %v2517_v42 = vsel %vm2512_vm12, %v2508_v61, %v3465_v40  ;;  %v2518_v23 = vsel %vm2512_vm12, %v2509_v27, %v3466_v36 }
 0x89f   : > { %v3461_v21 = vunpack.i.h.bf16 %v3459_v1  ;;  %v3460_v34 = vunpack.i.l.bf16 %v3459_v1  ;;  %v2519_v22 = vsel %vm2512_vm12, %v2510_v19, %v3425_v29  ;;  %v2520_v35 = vsel %vm2512_vm12, %v2511_v41, %v3426_v53  ;;  %v3469_v26 = vpop.permute.xlu1 %3468 }
 0x8a0   : > { %v2528_v15 = vsel %vm2521_vm13, %v2519_v22, %v3430_v37  ;;  %v2529_v38 = vsel %vm2521_vm13, %v2520_v35, %v3431_v32  ;;  %v3471_v58 = vunpack.i.h.bf16 %v3469_v26  ;;  %v3470_v8 = vunpack.i.l.bf16 %v3469_v26  ;;  %v5175_v22 = vld [vmem:[#allocation6_spill] sm:$0xff]  ;;  %v5177_v35 = vld [vmem:[#allocation33_spill] sm:$0xff]  ;;  %v5178_v26 = vld [vmem:[#allocation3_spill] sm:$0xff] }
 0x8a1   : > { %v2537_v39 = vsel %vm2530_vm14, %v2528_v15, %v3460_v34  ;;  %v2538_v50 = vsel %vm2530_vm14, %v2529_v38, %v3461_v21  ;;  %v5174_v34 = vld [vmem:[#allocation4_spill] sm:$0xff]  ;;  %v5179_v15 = vld [vmem:[#allocation27_spill] sm:$0xff]  ;;  %v5180_v38 = vld [vmem:[#allocation5_spill] sm:$0xff] }
 0x8a2   : > { %v3479_v7 = vpop.permute.xlu0 %3478  ;;  %v2526_v45 = vsel %vm2521_vm13, %v2517_v42, %v3470_v8  ;;  %v2527_v9 = vsel %vm2521_vm13, %v2518_v23, %v3471_v58  ;;  %v5181_v58 = vld [vmem:[#allocation31_spill] sm:$0xff]  ;;  %v5182_v8 = vld [vmem:[#allocation34_spill] sm:$0xff] }
 0x8a3   : > { %v3481_v3 = vunpack.i.h.bf16 %v3479_v7  ;;  %v3480_v10 = vunpack.i.l.bf16 %v3479_v7  ;;  %v3474_v47 = vpop.permute.xlu1 %3473  ;;  %v2535_v31 = vsel %vm2530_vm14, %v2526_v45, %v3410_v4  ;;  %v2536_v20 = vsel %vm2530_vm14, %v2527_v9, %v3411_v28  ;;  %v5183_v42 = vld [vmem:[#allocation7_spill] sm:$0xff]  ;;  %v5184_v23 = vld [vmem:[#allocation10_spill] sm:$0xff]  ;;  %v5187_v9 = vld [vmem:[#allocation8_spill] sm:$0xff] }
 0x8a4   : > { %v3476_v52 = vunpack.i.h.bf16 %v3474_v47  ;;  %v3475_v18 = vunpack.i.l.bf16 %v3474_v47  ;;  %v5185_v7 = vld [vmem:[#allocation38_spill] sm:$0xff]  ;;  %v5186_v45 = vld [vmem:[#allocation35_spill] sm:$0xff] }
 0x8a5   : > { %v2545_v24 = vsel %vm766_vm4, %v2537_v39, %v3480_v10  ;;  %v2546_v33 = vsel %vm766_vm4, %v2538_v50, %v3481_v3  ;;  %v5188_v3 = vld [vmem:[#allocation9_spill] sm:$0xff] }
 0x8a6   : > { %v2555_v49 = vpack.c.bf16 %v2546_v33, %v2545_v24  ;;  %v2543_v17 = vsel %vm766_vm4, %v2535_v31, %v3475_v18  ;;  %v2544_v59 = vsel %vm766_vm4, %v2536_v20, %v3476_v52 }
 0x8a7   : > { %v2554_v11 = vpack.c.bf16 %v2544_v59, %v2543_v17  ;;  %v2668_v0 = vpop.permute.xlu1 %2667 }
 0x8a9   : > { %3237 = vmatprep.mubr.msk.bf16.mxu0 %vm2571_vm15, %v2554_v11 }
 0x8aa   : > { %3238 = vmatmul.mubr.msk.bf16.gmra.mxu0 %vm2571_vm15, %v2555_v49 }
 0x957   : > { %v3235_v43 = vpop.f32.mrf.mxu0 }
 0x958   : > { %v2661_v46 = vmul.f32 %v3235_v43, %v4768_v48 }
 0x959   : > { %v2621_v30 = vpop.f32.mrf.mxu0 }
 0x95a   : > { %v2659_v6 = vmul.f32 %v4768_v48, %v2621_v30  ;;  %v4923_v53 = vadd.f32 %v2668_v0, %v2661_v46 }
 0x95b   : > { %v3236_v62 = vpop.f32.mrf.mxu0 }
 0x95c   : > { %v4915_v44 = vadd.f32 %v2668_v0, %v2659_v6  ;;  %v2662_v54 = vmul.f32 %v3236_v62, %v4768_v48  ;;  %v2752_v10 = vmul.f32 -2.0, %v4923_v53  ;;  %v2720_v43 = vsub.f32 1.837877, %v4923_v53 }
 0x95d   : > { %v2624_v16 = vpop.f32.mrf.mxu0 }
 0x95e   : > { %v2660_v57 = vmul.f32 %v4768_v48, %v2624_v16  ;;  %2686 = vrot.lane.b32.xlu0 %v4915_v44, %s3633_s14  ;;  %v4929_v29 = vadd.f32 %v2668_v0, %v2662_v54  ;;  %v2750_v28 = vmul.f32 -2.0, %v4915_v44  ;;  %v2762_v39 = vmul.f32 1.442695, %v2752_v10 }
 0x95f   : > { %v2718_v11 = vsub.f32 1.837877, %v4915_v44 }
 0x960   : > { %v4921_v60 = vadd.f32 %v2668_v0, %v2660_v57  ;;  %v2753_v4 = vmul.f32 -2.0, %v4929_v29  ;;  %v2758_v50 = vmul.f32 1.442695, %v2750_v28  ;;  %3590 = vpow2.f32 %v2762_v39 }
 0x962   : > { %2688 = vrot.lane.b32.xlu1 %v4921_v60, %s3633_s14  ;;  %2690 = vrot.lane.b32.xlu0 %v4923_v53, %s3633_s14  ;;  %v2764_v47 = vmul.f32 1.442695, %v2753_v4  ;;  %v2751_v24 = vmul.f32 -2.0, %v4921_v60  ;;  %3592 = vpow2.f32 %v2758_v50 }
 0x964   : > { %3594 = vpow2.f32 %v2764_v47  ;;  %v2760_v18 = vmul.f32 1.442695, %v2751_v24 }
 0x966   : > { %2692 = vrot.lane.b32.xlu1 %v4929_v29, %s3633_s14  ;;  %3596 = vpow2.f32 %v2760_v18 }
 0x96a   : > { %v3239_v13 = vpop.f32.mrf.mxu0 }
 0x96b   : > { %v2665_v36 = vmul.f32 %v3239_v13, %v4768_v48 }
 0x96c   : > { %v2637_v55 = vpop.f32.mrf.mxu0 }
 0x96d   : > { %v2663_v19 = vmul.f32 %v4768_v48, %v2637_v55  ;;  %v4940_v37 = vadd.f32 %v2668_v0, %v2665_v36  ;;  %v3591_v44 = vpop.eup %3590 }
 0x96e   : > { %v3240_v41 = vpop.f32.mrf.mxu0 }
 0x96f   : > { %v4935_v40 = vadd.f32 %v2668_v0, %v2663_v19  ;;  %v2666_v61 = vmul.f32 %v3240_v41, %v4768_v48  ;;  %v2756_v6 = vmul.f32 -2.0, %v4940_v37 }
 0x970   : > { %v2640_v1 = vpop.f32.mrf.mxu0 }
 0x971   : > { %v2664_v32 = vmul.f32 %v4768_v48, %v2640_v1  ;;  %2694 = vrot.lane.b32.xlu0 %v4935_v40, %s3633_s14  ;;  %v4949_v21 = vadd.f32 %v2668_v0, %v2666_v61  ;;  %v5176_v48 = vld [vmem:[#allocation29_spill] sm:$0xff]  ;;  %v2770_v55 = vmul.f32 1.442695, %v2756_v6  ;;  %v2754_v53 = vmul.f32 -2.0, %v4935_v40 }
 0x973   : > { %v4943_v27 = vadd.f32 %v2668_v0, %v2664_v32  ;;  %v2757_v19 = vmul.f32 -2.0, %v4949_v21  ;;  %3598 = vpow2.f32 %v2770_v55 }
 0x975   : > { %2698 = vrot.lane.b32.xlu0 %v4940_v37, %s3633_s14  ;;  %2696 = vrot.lane.b32.xlu1 %v4943_v27, %s3633_s14  ;;  %v2723_v28 = vsub.f32 1.837877, %v4943_v27 }
 0x979   : > { %2700 = vrot.lane.b32.xlu1 %v4949_v21, %s3633_s14  ;;  %1120 = vrot.lane.b32.xlu0 %v5174_v34, %s3649_s22  ;;  %v3593_v34 = vpop.eup %3592 }
 0x97d   : > { %1122 = vrot.lane.b32.xlu1 %v5175_v22, %s3649_s22  ;;  %1778 = vrot.lane.b32.xlu0 %v5176_v48, %s3649_s22 }
 0x981   : > { %1780 = vrot.lane.b32.xlu1 %v5177_v35, %s3649_s22  ;;  %1124 = vrot.lane.b32.xlu0 %v5178_v26, %s3649_s22 }
 0x985   : > { %1782 = vrot.lane.b32.xlu1 %v5179_v15, %s3649_s22  ;;  %1126 = vrot.lane.b32.xlu0 %v5180_v38, %s3649_s22 }
 0x989   : > { %1784 = vrot.lane.b32.xlu1 %v5181_v58, %s3649_s22  ;;  %1786 = vrot.lane.b32.xlu0 %v5182_v8, %s3649_s22 }
 0x98d   : > { %1128 = vrot.lane.b32.xlu1 %v5183_v42, %s3649_s22  ;;  %1130 = vrot.lane.b32.xlu0 %v5184_v23, %s3649_s22 }
 0x991   : > { %1788 = vrot.lane.b32.xlu1 %v5185_v7, %s3649_s22  ;;  %1790 = vrot.lane.b32.xlu0 %v5186_v45, %s3649_s22 }
 0x995   : > { %1132 = vrot.lane.b32.xlu1 %v5187_v9, %s3649_s22  ;;  %1134 = vrot.lane.b32.xlu0 %v5188_v3, %s3649_s22  ;;  %v2724_v3 = vsub.f32 1.837877, %v4940_v37  ;;  %v2725_v37 = vsub.f32 1.837877, %v4949_v21 }
 0x9d0   : > { %v2687_v33 = vpop.permute.xlu0 %2686 }
 0x9d1   : > { %v2710_v52 = vsub.f32 %v4460_v51, %v2687_v33  ;;  %v2755_v51 = vmul.f32 -2.0, %v4943_v27  ;;  %v5189_v33 = vld [vmem:[#allocation37_spill] sm:$0xff] }
 0x9d3   : > { %v2726_v20 = vmul.f32 %v2710_v52, %v2710_v52  ;;  %v2768_v41 = vmul.f32 1.442695, %v2755_v51 }
 0x9d4   : > { %v2689_v49 = vpop.permute.xlu1 %2688  ;;  %v2691_v31 = vpop.permute.xlu0 %2690 }
 0x9d5   : > { %v2711_v17 = vsub.f32 %v4485_v14, %v2689_v49  ;;  %v2712_v59 = vsub.f32 %v4447_v5, %v2691_v31  ;;  %v2734_v62 = vadd.f32 %v2726_v20, %v2718_v11  ;;  %v2719_v14 = vsub.f32 1.837877, %v4921_v60 }
 0x9d6   : > { %v2721_v5 = vsub.f32 1.837877, %v4929_v29  ;;  %v2766_v60 = vmul.f32 1.442695, %v2754_v53  ;;  %v2772_v29 = vmul.f32 1.442695, %v2757_v19  ;;  %3600 = vpow2.f32 %v2768_v41 }
 0x9d7   : > { %v2728_v30 = vmul.f32 %v2712_v59, %v2712_v59  ;;  %v2727_v46 = vmul.f32 %v2711_v17, %v2711_v17  ;;  %v2742_v36 = vmul.f32 -0.5, %v2734_v62 }
 0x9d8   : > { %v2693_v0 = vpop.permute.xlu1 %2692  ;;  %3602 = vpow2.f32 %v2766_v60 }
 0x9d9   : > { %v2736_v16 = vadd.f32 %v2728_v30, %v2720_v43  ;;  %v2713_v57 = vsub.f32 %v4478_v12, %v2693_v0  ;;  %v2735_v1 = vadd.f32 %v2727_v46, %v2719_v14  ;;  %v3595_v12 = vpop.eup %3594  ;;  %v2774_v48 = vmul.f32 %v3593_v34, %v2742_v36 }
 0x9da   : > { %v3597_v58 = vpop.eup %3596  ;;  %3604 = vpow2.f32 %v2772_v29 }
 0x9db   : > { %v2744_v54 = vmul.f32 -0.5, %v2736_v16  ;;  %v2729_v13 = vmul.f32 %v2713_v57, %v2713_v57  ;;  %v2743_v35 = vmul.f32 -0.5, %v2735_v1  ;;  %v3599_v52 = vpop.eup %3598 }
 0x9dd   : > { %v2776_v32 = vmul.f32 %v3591_v44, %v2744_v54  ;;  %v2737_v61 = vadd.f32 %v2729_v13, %v2721_v5  ;;  %v2775_v8 = vmul.f32 %v3597_v58, %v2743_v35 }
 0x9df   : > { %v2745_v22 = vmul.f32 -0.5, %v2737_v61  ;;  %2794 = vrot.lane.b32.xlu0 %v2776_v32, %s3649_s22 }
 0x9e1   : > { %v2777_v26 = vmul.f32 %v3595_v12, %v2745_v22 }
 0x9e3   : > { %v2695_v15 = vpop.permute.xlu0 %2694  ;;  %2796 = vrot.lane.b32.xlu1 %v2777_v26, %s3649_s22  ;;  %2790 = vrot.lane.b32.xlu0 %v2774_v48, %s3649_s22 }
 0x9e4   : > { %v2714_v38 = vsub.f32 %v4558_v56, %v2695_v15  ;;  %v2722_v56 = vsub.f32 1.837877, %v4935_v40  ;;  %v3601_v40 = vpop.eup %3600 }
 0x9e5   : > { %v3603_v59 = vpop.eup %3602 }
 0x9e6   : > { %v2730_v7 = vmul.f32 %v2714_v38, %v2714_v38 }
 0x9e7   : > { %v2699_v42 = vpop.permute.xlu0 %2698  ;;  %v2697_v23 = vpop.permute.xlu1 %2696  ;;  %2792 = vrot.lane.b32.xlu1 %v2775_v8, %s3649_s22 }
 0x9e8   : > { %v2716_v45 = vsub.f32 %v4518_v63, %v2699_v42  ;;  %v2715_v9 = vsub.f32 %v4618_v25, %v2697_v23  ;;  %v2738_v50 = vadd.f32 %v2730_v7, %v2722_v56  ;;  %v3605_v43 = vpop.eup %3604 }
 0x9ea   : > { %v2732_v10 = vmul.f32 %v2716_v45, %v2716_v45  ;;  %v2731_v4 = vmul.f32 %v2715_v9, %v2715_v9  ;;  %v2746_v31 = vmul.f32 -0.5, %v2738_v50 }
 0x9eb   : > { %v2701_v39 = vpop.permute.xlu1 %2700  ;;  %1792 = vrot.lane.b32.xlu1 %v5189_v33, %s3649_s22  ;;  %v1121_v21 = vpop.permute.xlu0 %1120 }
 0x9ec   : > { %v2740_v47 = vadd.f32 %v2732_v10, %v2724_v3  ;;  %v2739_v24 = vadd.f32 %v2731_v4, %v2723_v28  ;;  %v2717_v63 = vsub.f32 %v4534_v2, %v2701_v39  ;;  %v2778_v30 = vmul.f32 %v3603_v59, %v2746_v31 }
 0x9ed   : > { %v1144_v46 = vsel %vm653_vm3, %v1121_v21, 0.0 }
 0x9ee   : > { %v2748_v18 = vmul.f32 -0.5, %v2740_v47  ;;  %v2747_v25 = vmul.f32 -0.5, %v2739_v24  ;;  %v2733_v49 = vmul.f32 %v2717_v63, %v2717_v63 }
 0x9ef   : > { %v1123_v6 = vpop.permute.xlu1 %1122  ;;  %v1779_v51 = vpop.permute.xlu0 %1778 }
 0x9f0   : > { %v2780_v20 = vmul.f32 %v3599_v52, %v2748_v18  ;;  %v2779_v27 = vmul.f32 %v3601_v40, %v2747_v25  ;;  %v2741_v17 = vadd.f32 %v2733_v49, %v2725_v37  ;;  %v1802_v57 = vsel %vm653_vm3, %v1779_v51, 0.0 }
 0x9f1   : > { %v1147_v54 = vsel %vm653_vm3, %v1123_v6, 0.0 }
 0x9f2   : > { %v2749_v11 = vmul.f32 -0.5, %v2741_v17  ;;  %2800 = vrot.lane.b32.xlu1 %v2779_v27, %s3649_s22  ;;  %2802 = vrot.lane.b32.xlu0 %v2780_v20, %s3649_s22 }
 0x9f3   : > { %v1781_v0 = vpop.permute.xlu1 %1780  ;;  %v1125_v62 = vpop.permute.xlu0 %1124 }
 0x9f4   : > { %v2781_v2 = vmul.f32 %v3605_v43, %v2749_v11  ;;  %v1805_v13 = vsel %vm653_vm3, %v1781_v0, 0.0  ;;  %v1150_v44 = vsel %vm653_vm3, %v1125_v62, 0.0 }
 0x9f6   : > { %2804 = vrot.lane.b32.xlu1 %v2781_v2, %s3649_s22  ;;  %2798 = vrot.lane.b32.xlu0 %v2778_v30, %s3649_s22 }
 0x9f7   : > { %v1783_v16 = vpop.permute.xlu1 %1782  ;;  %v1127_v14 = vpop.permute.xlu0 %1126 }
 0x9f8   : > { %v1808_v53 = vsel %vm653_vm3, %v1783_v16, 0.0  ;;  %v1153_v19 = vsel %vm653_vm3, %v1127_v14, 0.0 }
 0x9fb   : > { %v1785_v5 = vpop.permute.xlu1 %1784  ;;  %v1787_v55 = vpop.permute.xlu0 %1786 }
 0x9fc   : > { %v1811_v36 = vsel %vm653_vm3, %v1785_v5, 0.0  ;;  %v1814_v32 = vsel %vm653_vm3, %v1787_v55, 0.0 }
 0x9ff   : > { %v1129_v41 = vpop.permute.xlu1 %1128  ;;  %v1131_v1 = vpop.permute.xlu0 %1130 }
 0xa00   : > { %v1156_v34 = vsel %vm653_vm3, %v1129_v41, 0.0  ;;  %v1159_v22 = vsel %vm653_vm3, %v1131_v1, 0.0 }
 0xa03   : > { %v1789_v61 = vpop.permute.xlu1 %1788  ;;  %v1791_v12 = vpop.permute.xlu0 %1790 }
 0xa04   : > { %v1817_v60 = vsel %vm653_vm3, %v1789_v61, 0.0  ;;  %v1820_v29 = vsel %vm653_vm3, %v1791_v12, 0.0 }
 0xa07   : > { %v1133_v48 = vpop.permute.xlu1 %1132  ;;  %v1135_v26 = vpop.permute.xlu0 %1134 }
 0xa08   : > { %v1162_v35 = vsel %vm653_vm3, %v1133_v48, 0.0  ;;  %v1165_v45 = vsel %vm653_vm3, %v1135_v26, 0.0 }
 0xa15   : > { %1145 = vadd.xlane.f32.xlu0 %v1144_v46 }
 0xa19   : > { %1803 = vadd.xlane.f32.xlu0 %v1802_v57 }
 0xa1a   : > { %1148 = vadd.xlane.f32.xlu1 %v1147_v54 }
 0xa1d   : > { %1806 = vadd.xlane.f32.xlu0 %v1805_v13 }
 0xa1e   : > { %1151 = vadd.xlane.f32.xlu1 %v1150_v44 }
 0xa21   : > { %1809 = vadd.xlane.f32.xlu0 %v1808_v53 }
 0xa22   : > { %1154 = vadd.xlane.f32.xlu1 %v1153_v19 }
 0xa25   : > { %1812 = vadd.xlane.f32.xlu0 %v1811_v36 }
 0xa26   : > { %1815 = vadd.xlane.f32.xlu1 %v1814_v32 }
 0xa29   : > { %1157 = vadd.xlane.f32.xlu0 %v1156_v34 }
 0xa2a   : > { %1160 = vadd.xlane.f32.xlu1 %v1159_v22 }
 0xa2d   : > { %1818 = vadd.xlane.f32.xlu0 %v1817_v60 }
 0xa2e   : > { %1821 = vadd.xlane.f32.xlu1 %v1820_v29 }
 0xa31   : > { %1163 = vadd.xlane.f32.xlu0 %v1162_v35 }
 0xa51   : > { %v2795_v15 = vpop.permute.xlu0 %2794 }
 0xa52   : > { %v2820_v38 = vsel %vm653_vm3, %v2795_v15, 0.0 }
 0xa53   : > { %2821 = vadd.xlane.f32.xlu1 %v2820_v38 }
 0xa55   : > { %v2797_v58 = vpop.permute.xlu1 %2796  ;;  %v2791_v8 = vpop.permute.xlu0 %2790 }
 0xa56   : > { %v2823_v42 = vsel %vm653_vm3, %v2797_v58, 0.0  ;;  %v2814_v23 = vsel %vm653_vm3, %v2791_v8, 0.0 }
 0xa57   : > { %2824 = vadd.xlane.f32.xlu0 %v2823_v42  ;;  %2815 = vadd.xlane.f32.xlu1 %v2814_v23 }
 0xa59   : > { %v2793_v7 = vpop.permute.xlu1 %2792 }
 0xa5a   : > { %v2817_v9 = vsel %vm653_vm3, %v2793_v7, 0.0 }
 0xa5b   : > { %2818 = vadd.xlane.f32.xlu0 %v2817_v9  ;;  %1166 = vadd.xlane.f32.xlu1 %v1165_v45 }
 0xa5d   : > { %v1793_v3 = vpop.permute.xlu1 %1792 }
 0xa5e   : > { %v1823_v56 = vsel %vm653_vm3, %v1793_v3, 0.0 }
 0xa5f   : > { %1824 = vadd.xlane.f32.xlu0 %v1823_v56 }
 0xa64   : > { %v2801_v10 = vpop.permute.xlu1 %2800  ;;  %v2803_v28 = vpop.permute.xlu0 %2802 }
 0xa65   : > { %v2829_v4 = vsel %vm653_vm3, %v2801_v10, 0.0  ;;  %v2832_v33 = vsel %vm653_vm3, %v2803_v28, 0.0 }
 0xa66   : > { %2830 = vadd.xlane.f32.xlu0 %v2829_v4 }
 0xa68   : > { %v2805_v39 = vpop.permute.xlu1 %2804  ;;  %v2799_v50 = vpop.permute.xlu0 %2798 }
 0xa69   : > { %v2835_v47 = vsel %vm653_vm3, %v2805_v39, 0.0  ;;  %v2826_v24 = vsel %vm653_vm3, %v2799_v50, 0.0 }
 0xa6a   : > { %2836 = vadd.xlane.f32.xlu0 %v2835_v47  ;;  %2827 = vadd.xlane.f32.xlu1 %v2826_v24 }
 0xa6e   : > { %2833 = vadd.xlane.f32.xlu1 %v2832_v33 }
 0xa9e   : > { %v1146_v63 = vpop.xlane.xlu0 %1145 }
 0xaa2   : > { %v1804_v52 = vpop.xlane.xlu0 %1803 }
 0xaa3   : > { %v1149_v18 = vpop.xlane.xlu1 %1148  ;;  %v1826_v30 = vadd.f32 %v1804_v52, %v1146_v63 }
 0xaa5   : > { %v2841_v62 = vsel %vm2840_vm1, %v1826_v30, 0.0 }
 0xaa6   : > { %v1807_v25 = vpop.xlane.xlu0 %1806 }
 0xaa7   : > { %v1152_v37 = vpop.xlane.xlu1 %1151  ;;  %v1827_v43 = vadd.f32 %v1807_v25, %v1149_v18 }
 0xaa9   : > { %v2842_v51 = vsel %vm2840_vm1, %v1827_v43, 0.0 }
 0xaaa   : > { %v1810_v49 = vpop.xlane.xlu0 %1809  ;;  %v2843_v57 = vadd.f32 %v2842_v51, %v2841_v62 }
 0xaab   : > { %v1155_v40 = vpop.xlane.xlu1 %1154  ;;  %v1828_v2 = vadd.f32 %v1810_v49, %v1152_v37 }
 0xaad   : > { %v2844_v46 = vsel %vm2840_vm1, %v1828_v2, 0.0 }
 0xaae   : > { %v1813_v31 = vpop.xlane.xlu0 %1812  ;;  %v2845_v13 = vadd.f32 %v2844_v46, %v2843_v57 }
 0xaaf   : > { %v1816_v20 = vpop.xlane.xlu1 %1815  ;;  %v1829_v0 = vadd.f32 %v1813_v31, %v1155_v40 }
 0xab1   : > { %v2846_v54 = vsel %vm2840_vm1, %v1829_v0, 0.0 }
 0xab2   : > { %v1158_v27 = vpop.xlane.xlu0 %1157  ;;  %v2847_v19 = vadd.f32 %v2846_v54, %v2845_v13 }
 0xab3   : > { %v1161_v17 = vpop.xlane.xlu1 %1160  ;;  %v1830_v16 = vadd.f32 %v1816_v20, %v1158_v27 }
 0xab5   : > { %v2848_v55 = vsel %vm2840_vm1, %v1830_v16, 0.0 }
 0xab6   : > { %v1819_v59 = vpop.xlane.xlu0 %1818  ;;  %v2849_v1 = vadd.f32 %v2848_v55, %v2847_v19 }
 0xab7   : > { %v1822_v11 = vpop.xlane.xlu1 %1821  ;;  %v1831_v5 = vadd.f32 %v1819_v59, %v1161_v17 }
 0xab9   : > { %v2850_v36 = vsel %vm2840_vm1, %v1831_v5, 0.0 }
 0xaba   : > { %v1164_v21 = vpop.xlane.xlu0 %1163  ;;  %v2851_v34 = vadd.f32 %v2850_v36, %v2849_v1 }
 0xabb   : > { %v1832_v53 = vadd.f32 %v1822_v11, %v1164_v21  ;;  %v5190_v11 = vlaneseq }
 0xabd   : > { %v2852_v32 = vsel %vm2840_vm1, %v1832_v53, 0.0  ;;  %v2839_v43 = vand.u32 127, %v5190_v11 }
 0xabe   : > { %v2853_v48 = vadd.f32 %v2852_v32, %v2851_v34 }
 0xabf   : > { %vm2889_vm3 = vcmp.eq.s32.totalorder %v2839_v43, 0  ;;  %vm2892_vm4 = vcmp.eq.s32.totalorder %v2839_v43, 1 }
 0xadc   : > { %v2822_v6 = vpop.xlane.xlu1 %2821 }
 0xadd   : > { %v2868_v38 = vsel %vm2840_vm1, %v2822_v6, 0.0 }
 0xae0   : > { %v2825_v14 = vpop.xlane.xlu0 %2824  ;;  %v2816_v44 = vpop.xlane.xlu1 %2815 }
 0xae1   : > { %v2865_v60 = vsel %vm2840_vm1, %v2816_v44, 0.0  ;;  %v2870_v42 = vsel %vm2840_vm1, %v2825_v14, 0.0 }
 0xae4   : > { %v2819_v41 = vpop.xlane.xlu0 %2818  ;;  %v1167_v22 = vpop.xlane.xlu1 %1166 }
 0xae5   : > { %v2866_v61 = vsel %vm2840_vm1, %v2819_v41, 0.0 }
 0xae6   : > { %v2867_v35 = vadd.f32 %v2866_v61, %v2865_v60 }
 0xae8   : > { %v1825_v12 = vpop.xlane.xlu0 %1824  ;;  %v2869_v58 = vadd.f32 %v2868_v38, %v2867_v35 }
 0xae9   : > { %v1833_v29 = vadd.f32 %v1825_v12, %v1167_v22 }
 0xaea   : > { %v2871_v7 = vadd.f32 %v2870_v42, %v2869_v58 }
 0xaeb   : > { %v2854_v26 = vsel %vm2840_vm1, %v1833_v29, 0.0 }
 0xaec   : > { %v2855_v15 = vadd.f32 %v2854_v26, %v2853_v48 }
 0xaee   : > { %2856 = vadd.xlane.f32.xlu1 %v2855_v15 }
 0xaef   : > { %v2831_v8 = vpop.xlane.xlu0 %2830 }
 0xaf0   : > { %v2874_v3 = vsel %vm2840_vm1, %v2831_v8, 0.0 }
 0xaf3   : > { %v2828_v23 = vpop.xlane.xlu1 %2827  ;;  %v2837_v56 = vpop.xlane.xlu0 %2836 }
 0xaf4   : > { %v2872_v45 = vsel %vm2840_vm1, %v2828_v23, 0.0  ;;  %v2878_v50 = vsel %vm2840_vm1, %v2837_v56, 0.0 }
 0xaf5   : > { %v2873_v9 = vadd.f32 %v2872_v45, %v2871_v7 }
 0xaf7   : > { %v2834_v10 = vpop.xlane.xlu1 %2833  ;;  %v2875_v28 = vadd.f32 %v2874_v3, %v2873_v9 }
 0xaf8   : > { %v2876_v4 = vsel %vm2840_vm1, %v2834_v10, 0.0 }
 0xaf9   : > { %v2877_v39 = vadd.f32 %v2876_v4, %v2875_v28 }
 0xafb   : > { %v2879_v47 = vadd.f32 %v2878_v50, %v2877_v39 }
 0xafd   : > { %2880 = vadd.xlane.f32.xlu0 %v2879_v47 }
 0xb77   : > { %v2857_v24 = vpop.xlane.xlu1 %2856 }
 0xb78   : > { %v2858_v33 = vrot.slane %v2857_v24, 4 }
 0xb7a   : > { %v2859_v63 = vadd.f32 %v2858_v33, %v2857_v24 }
 0xb7c   : > { %v2860_v52 = vrot.slane %v2859_v63, 2 }
 0xb7e   : > { %v2861_v18 = vadd.f32 %v2860_v52, %v2859_v63 }
 0xb80   : > { %v2862_v25 = vrot.slane %v2861_v18, 1 }
 0xb82   : > { %v2863_v37 = vadd.f32 %v2862_v25, %v2861_v18 }
 0xb84   : > { %3249 = vpush %v2863_v37 }
 0xb86   : > { %v2881_v49 = vpop.xlane.xlu0 %2880 }
 0xb87   : > { %v2882_v40 = vrot.slane %v2881_v49, 4 }
 0xb89   : > { %v2883_v31 = vadd.f32 %v2882_v40, %v2881_v49 }
 0xb8b   : > { %v2884_v20 = vrot.slane %v2883_v31, 2 }
 0xb8d   : > { %v2885_v27 = vadd.f32 %v2884_v20, %v2883_v31 }
 0xb8f   : > { %v2886_v17 = vrot.slane %v2885_v27, 1 }
 0xb91   : > { %v2887_v59 = vadd.f32 %v2886_v17, %v2885_v27 }
 0xb93   : > { %3251 = vpush %v2887_v59 }
 0xbb5   : > { %s3250_s14 = spop %3249 }
 0xbb6   : > { %v2890_v30 = vstv %s3250_s14 }
 0xbb7   : > { %v2891_v21 = vsel %vm2889_vm3, %v2890_v30, 0.0 }
 0xbc4   : > { %s3252_s28 = spop %3251 }
 0xbc5   : > { %v2893_v2 = vstv %s3252_s28 }
 0xbc6   : > { %v2894_v6 = vsel %vm2892_vm4, %v2893_v2, 0.0 }
 0xbc7   : > { %v2895_v51 = vadd.f32 %v2894_v6, %v2891_v21 }
 0xbc9   : > { %2896 = vst [vmem:[%s517_s26] sm:$0xff] %v2895_v51 }
 0xbca PF: > { %p19_p10 = scmp.ge.s32.totalorder %s3729_s21, 4   ;;  %s5191_s17 = smov %s3624_s18 }
 0xbcb   : > { %s5192_s18 = smov %s3738_s24  ;;  %s5193_s19 = smov %s3729_s21 }
 0xbcc   :  { %21 = sbr.rel (!%p19_p10) target bundleno = 2 (0x2), region = 154 }

</bundles_post_ra>
